<compile_context>
chip_gen: v7x
topology: tpu7x:2x2x1
jax: 0.10.0
libtpu: 0.0.40
codegen_flags: <defaults>
</compile_context>

<pallas_src>
from functools import partial

import jax
import jax.numpy as jnp
import numpy as np
from jax.experimental import pallas as pl
from jax.experimental.pallas import tpu as pltpu

MEAN_BGR = (104.0, 117.0, 128.0)   # normalization mean from the module (std = 1.0)
NUM_CLASSES = 5                    # TSN(num_class=5)


def _vmem_spec():
    return pl.BlockSpec(memory_space=pltpu.MemorySpace.VMEM)


def _argmax_last_keepdims(x):
    """argmax over last axis (ties -> lowest index), returns (..., 1) int32."""
    mx = jnp.max(x, axis=-1, keepdims=True)
    iota = jax.lax.broadcasted_iota(jnp.int32, x.shape, x.ndim - 1)
    big = jnp.iinfo(jnp.int32).max
    return jnp.min(jnp.where(x == mx, iota, big), axis=-1, keepdims=True)


# ---------------------------------------------------------------------------
# Generation-aware VMEM budgets (block cap, scoped vmem limit).
def _vmem_budget():
    phys = 64 * 1024 * 1024                 # conservative default = v7x (64 MiB/TC)
    try:
        info = pltpu.get_tpu_info()
        for attr in ("vmem_capacity_bytes", "vmem_bytes", "vmem_size_bytes"):
            v = getattr(info, attr, None)
            if v:
                phys = int(v)
                break
    except Exception:
        pass
    if phys >= 128 * 1024 * 1024:           # v5e / v6e: 128 MiB physical VMEM
        return 16 * 1024 * 1024, 64 * 1024 * 1024
    return 12 * 1024 * 1024, 40 * 1024 * 1024   # v7x: 64 MiB physical VMEM


def _choose_tile_rows(rows, row_bytes, max_block_bytes, min_steps=2):
    """Largest multiple-of-8 divisor of `rows` whose (tile, HW) input block fits
    `max_block_bytes`, preferring >= min_steps grid steps so the 'parallel'
    grid axis can be split across both v7x TensorCores."""
    assert rows % 8 == 0
    candidates = [t for t in range(8, rows + 1, 8)
                  if rows % t == 0 and t * row_bytes <= max_block_bytes]
    if not candidates:
        return 8                             # smallest legal tile; still pipelined
    multi = [t for t in candidates if rows // t >= min_steps]
    return max(multi) if multi else max(candidates)


# ---------------------------------------------------------------------------
# Kernel 1: streaming global-average-pool over the spatial (lane) axis.
# Stands in for model.forward_feature's spatial reduction.
# TODO(synk): the BNInception TSN backbone (forward_feature) has no clean Pallas
#             equivalent; replaced by a deterministic GAP + linear stand-in.
def _pool_kernel(x_ref, pooled_ref):
    # x_ref: (TILE_ROWS, HW) with H*W lane-dense; accumulate the mean in f32
    # regardless of the streamed dtype (frames may be fed as bf16 for 2x HBM BW).
    pooled_ref[...] = jnp.mean(x_ref[...].astype(jnp.float32), axis=-1,
                               keepdims=True)


def _pool_frames(x, tile_rows=None):
    rows, hw = x.shape
    itemsize = jnp.dtype(x.dtype).itemsize
    max_block_bytes, vmem_limit_bytes = _vmem_budget()
    if tile_rows is None:
        tile_rows = _choose_tile_rows(rows, hw * itemsize, max_block_bytes)
    assert rows % tile_rows == 0 and tile_rows % 8 == 0
    grid = (rows // tile_rows,)
    bytes_accessed = rows * hw * itemsize + rows * 4   # exact: no sublane padding
    return pl.pallas_call(
        _pool_kernel,
        out_shape=jax.ShapeDtypeStruct((rows, 1), jnp.float32),
        grid_spec=pltpu.PrefetchScalarGridSpec(
            num_scalar_prefetch=0,
            grid=grid,
            in_specs=[pl.BlockSpec((tile_rows, hw), lambda i: (i, 0))],
            out_specs=pl.BlockSpec((tile_rows, 1), lambda i: (i, 0)),
        ),
        compiler_params=pltpu.CompilerParams(
            dimension_semantics=("parallel",),          # megacore split on v7x
            vmem_limit_bytes=vmem_limit_bytes),
        cost_estimate=pl.CostEstimate(
            flops=int(rows * hw), transcendentals=0,
            bytes_accessed=int(bytes_accessed)),
    )(x)


# ---------------------------------------------------------------------------
# Kernel 2: fused (mean-subtract -> feature head -> classifier -> per-shot
# aggregation -> Lloyd KMeans).  Everything stays in VMEM/vregs; one launch.
def _head_cluster_kernel(pooled_ref, mean_ref, w1_ref, b1_ref, w2_ref, b2_ref,
                         shot_feat_ref, label_ref, pred_ref,
                         *, num_shots, num_segments, n_clusters, kmeans_iters):
    s, t = num_shots, num_segments
    n = s * t

    # mean subtraction hoisted after pooling (std == 1 so it commutes).
    pooled = pooled_ref[...] - mean_ref[...]                        # (N, C)

    # feature head: K=3 contraction on the (otherwise idle) MXU — a zero-padded
    # push is effectively free and avoids 3x cross-lane broadcasts on the VPU.
    feats = jnp.maximum(
        jnp.dot(pooled, w1_ref[...], preferred_element_type=jnp.float32)
        + b1_ref[...], 0.0)                                         # (N, D)

    # per-shot mean over segments (num_crops == 1) via an (S, N) averaging matmul.
    row = jax.lax.broadcasted_iota(jnp.int32, (s, n), 0)
    col = jax.lax.broadcasted_iota(jnp.int32, (s, n), 1)
    in_shot = (col >= row * t) & (col < (row + 1) * t)
    seg_avg = jnp.where(in_shot, jnp.float32(1.0 / t), jnp.float32(0.0))
    shot_feats = jnp.dot(seg_avg, feats,
                         preferred_element_type=jnp.float32)        # (S, D)

    # classifier head commutes with the segment mean (affine), so apply at shot
    # level directly: mean_T(feats @ w2 + b2) == shot_feats @ w2 + b2.
    shot_logits = jnp.dot(shot_feats, w2_ref[...],
                          preferred_element_type=jnp.float32) + b2_ref[...]
    preds = _argmax_last_keepdims(shot_logits)                      # (S, 1) int32

    # --- fused Lloyd KMeans: all iterations in one kernel, centroids in vregs ---
    k = n_clusters

    def _assign(cents):
        # running argmin over K centroids; direct (p - c)^2, ties -> lowest index
        d0 = shot_feats - cents[0:1, :]
        best_d = jnp.sum(d0 * d0, axis=-1, keepdims=True)           # (S, 1)
        best_k = jnp.zeros_like(best_d, dtype=jnp.int32)            # (S, 1)
        for kk in range(1, k):
            dk = shot_feats - cents[kk:kk + 1, :]
            dist = jnp.sum(dk * dk, axis=-1, keepdims=True)
            better = dist < best_d
            best_d = jnp.where(better, dist, best_d)
            best_k = jnp.where(better, jnp.int32(kk), best_k)
        return best_k

    # TODO(synk): sklearn k-means++ init (random_state=0) is not reproducible
    #             here; deterministic first-K init + fixed Lloyd iterations.
    cents = shot_feats[:k, :]                                       # (K, D)
    for _ in range(kmeans_iters):       # static full unroll, all in-VMEM
        labels = _assign(cents)
        new_rows = []
        for kk in range(k):
            m = labels == kk                                        # (S, 1)
            cnt = jnp.sum(m.astype(jnp.float32), axis=0, keepdims=True)   # (1, 1)
            ssum = jnp.sum(jnp.where(m, shot_feats, 0.0),
                           axis=0, keepdims=True)                   # (1, D)
            new_rows.append(jnp.where(cnt > 0.0,
                                      ssum / jnp.maximum(cnt, 1.0),
                                      cents[kk:kk + 1, :]))
        cents = jnp.concatenate(new_rows, axis=0)                   # (K, D)
    labels = _assign(cents)             # labels w.r.t. final centroids (sklearn)

    shot_feat_ref[...] = shot_feats
    label_ref[...] = labels
    pred_ref[...] = preds


def _head_and_cluster(pooled, mean, w1, b1, w2, b2, *, num_shots, num_segments,
                      n_clusters, kmeans_iters):
    d = w1.shape[1]
    kernel = partial(_head_cluster_kernel, num_shots=num_shots,
                     num_segments=num_segments, n_clusters=n_clusters,
                     kmeans_iters=kmeans_iters)
    return pl.pallas_call(
        kernel,
        out_shape=(jax.ShapeDtypeStruct((num_shots, d), jnp.float32),
                   jax.ShapeDtypeStruct((num_shots, 1), jnp.int32),
                   jax.ShapeDtypeStruct((num_shots, 1), jnp.int32)),
        in_specs=[_vmem_spec() for _ in range(6)],
        out_specs=(_vmem_spec(), _vmem_spec(), _vmem_spec()),
        compiler_params=pltpu.CompilerParams(vmem_limit_bytes=32 * 1024 * 1024),
    )(pooled, mean, w1, b1, w2, b2)


# ---------------------------------------------------------------------------
@partial(jax.jit, static_argnames=("num_shots", "num_segments", "n_pseudo_cams",
                                   "kmeans_iters", "tile_rows"))
def shot_scale_cluster_forward(frames, mean, w1, b1, w2, b2, *,
                               num_shots, num_segments, n_pseudo_cams=6,
                               kmeans_iters=10, tile_rows=None):
    """frames: (num_shots*num_segments, C, H, W) preprocessed frames (num_crops=1).

    Returns (kmeans_labels + 1, per-shot scale prediction, per-shot features),
    mirroring ShotScaleCluster.forward / get_predictions.
    """
    n, c, h, w = frames.shape
    assert n == num_shots * num_segments, "frames must be num_shots*num_segments"
    assert num_shots >= n_pseudo_cams, "need at least as many shots as clusters"
    hw = h * w
    rows = n * c
    # fold the channel axis into the row axis: (N, C, H, W) -> (N*C, H*W).
    # H*W is lane-dense and sublanes are fully packed (no 3->8 padding).
    x = frames.reshape(rows, hw)
    pad = (-rows) % 8
    if pad:      # keep the sublane constraint without whole-array fallback blocks
        x = jnp.pad(x, ((0, pad), (0, 0)))
    pooled = _pool_frames(x, tile_rows)[:rows, 0].reshape(n, c)     # (N, C)
    shot_feats, labels, preds = _head_and_cluster(
        pooled, mean, w1, b1, w2, b2,
        num_shots=num_shots, num_segments=num_segments,
        n_clusters=n_pseudo_cams, kmeans_iters=kmeans_iters)
    return labels[:, 0] + 1, preds[:, 0], shot_feats


if __name__ == "__main__":
    key = jax.random.PRNGKey(0)
    k_frames, k_w1, k_b1, k_w2, k_b2 = jax.random.split(key, 5)

    # 8 shots x 4 segments, 16x16 BGR frames (NCHW like the module after
    # permute), 128-dim feature head stand-in, 5 scale classes, 3 pseudo cams.
    S, T, C, H, W, D, K = 8, 4, 3, 16, 16, 128, 3
    N = S * T

    frames = jax.random.uniform(k_frames, (N, C, H, W),
                                dtype=jnp.float32, minval=0.0, maxval=255.0)

    mean = jnp.asarray(MEAN_BGR, dtype=jnp.float32).reshape(1, C)
    w1 = jax.random.normal(k_w1, (C, D), dtype=jnp.float32) * 0.1
    b1 = jax.random.normal(k_b1, (1, D), dtype=jnp.float32) * 0.01
    w2 = jax.random.normal(k_w2, (D, NUM_CLASSES), dtype=jnp.float32) * 0.1
    b2 = jax.random.normal(k_b2, (1, NUM_CLASSES), dtype=jnp.float32) * 0.01

    labels, preds, shot_feats = shot_scale_cluster_forward(
        frames, mean, w1, b1, w2, b2,
        num_shots=S, num_segments=T, n_pseudo_cams=K, kmeans_iters=10)
    jax.block_until_ready((labels, preds, shot_feats))

    # shape / range sanity checks
    assert labels.shape == (S,) and preds.shape == (S,) and shot_feats.shape == (S, D)
    assert bool(jnp.all(labels >= 1)) and bool(jnp.all(labels <= K))
    assert bool(jnp.all(preds >= 0)) and bool(jnp.all(preds < NUM_CLASSES))

    # loose numerical check of the pooled->head->shot-average path vs pure JAX
    pooled_ref = frames.reshape(N, C, H * W).mean(axis=-1)
    feats_ref = jnp.maximum((pooled_ref - mean) @ w1 + b1, 0.0)
    shot_feats_ref = feats_ref.reshape(S, T, D).mean(axis=1)
    assert np.allclose(np.asarray(shot_feats), np.asarray(shot_feats_ref),
                       rtol=5e-2, atol=5e-1), "shot feature mismatch vs reference"

    print("KERNEL_OK")
</pallas_src>

<mosaic_0001>
module attributes {stable_mosaic.version = 11 : i64} {
  func.func @_pool_kernel(%arg0: i32, %arg1: memref<48x256xf32, #tpu.memory_space<vmem>>, %arg2: memref<48x1xf32, #tpu.memory_space<vmem>>) attributes {dimension_semantics = [#tpu.dimension_semantics<parallel>], iteration_bounds = array<i64: 2>, scalar_prefetch = 0 : i64, scratch_operands = 0 : i64, tpu.core_type = #tpu.core_type<tc>, window_params = [{transform_indices = @transform_0, window_bounds = array<i64: 48, 256>}, {transform_indices = @transform_1, window_bounds = array<i64: 48, 1>}]} {
    %c0 = arith.constant 0 : index
    %c0_0 = arith.constant 0 : index
    %0 = vector.load %arg1[%c0, %c0_0] : memref<48x256xf32, #tpu.memory_space<vmem>>, vector<48x256xf32>
    %cst = arith.constant dense<0.000000e+00> : vector<48xf32>
    %1 = vector.multi_reduction <add>, %0, %cst [1] : vector<48x256xf32> to vector<48xf32>
    %2 = vector.shape_cast %1 : vector<48xf32> to vector<48x1xf32>
    %cst_1 = arith.constant 2.560000e+02 : f32
    %3 = vector.broadcast %cst_1 : f32 to vector<48x1xf32>
    %4 = arith.divf %2, %3 : vector<48x1xf32>
    %c0_2 = arith.constant 0 : index
    %c0_3 = arith.constant 0 : index
    %5 = vector.load %arg2[%c0_2, %c0_3] : memref<48x1xf32, #tpu.memory_space<vmem>>, vector<48x1xf32>
    tpu.vector_store %arg2[%c0_2, %c0_3], %4 {strides = array<i32>} : memref<48x1xf32, #tpu.memory_space<vmem>>, vector<48x1xf32>,
    return
  }
  func.func @transform_0(%arg0: i32) -> (i32, i32) {
    %c0_i32 = arith.constant 0 : i32
    %c0_i32_0 = arith.constant 0 : i32
    return %arg0, %c0_i32 : i32, i32
  }
  func.func @transform_1(%arg0: i32) -> (i32, i32) {
    %c0_i32 = arith.constant 0 : i32
    %c0_i32_0 = arith.constant 0 : i32
    return %arg0, %c0_i32 : i32, i32
  }
}

module attributes {stable_mosaic.version = 11 : i64} {
  func.func @_head_cluster_kernel(%arg0: memref<32x3xf32, #tpu.memory_space<vmem>>, %arg1: memref<1x3xf32, #tpu.memory_space<vmem>>, %arg2: memref<3x128xf32, #tpu.memory_space<vmem>>, %arg3: memref<1x128xf32, #tpu.memory_space<vmem>>, %arg4: memref<128x5xf32, #tpu.memory_space<vmem>>, %arg5: memref<1x5xf32, #tpu.memory_space<vmem>>, %arg6: memref<8x128xf32, #tpu.memory_space<vmem>>, %arg7: memref<8x1xi32, #tpu.memory_space<vmem>>, %arg8: memref<8x1xi32, #tpu.memory_space<vmem>>) attributes {dimension_semantics = [], scalar_prefetch = 0 : i64, scratch_operands = 0 : i64, tpu.core_type = #tpu.core_type<tc>} {
    %c0 = arith.constant 0 : index
    %c0_0 = arith.constant 0 : index
    %0 = vector.load %arg0[%c0, %c0_0] : memref<32x3xf32, #tpu.memory_space<vmem>>, vector<32x3xf32>
    %c0_1 = arith.constant 0 : index
    %c0_2 = arith.constant 0 : index
    %1 = vector.load %arg1[%c0_1, %c0_2] : memref<1x3xf32, #tpu.memory_space<vmem>>, vector<1x3xf32>
    %2 = vector.broadcast %1 : vector<1x3xf32> to vector<32x3xf32>
    %3 = arith.subf %0, %2 : vector<32x3xf32>
    %c0_3 = arith.constant 0 : index
    %c0_4 = arith.constant 0 : index
    %4 = vector.load %arg2[%c0_3, %c0_4] : memref<3x128xf32, #tpu.memory_space<vmem>>, vector<3x128xf32>
    %cst = arith.constant dense<0.000000e+00> : vector<32x128xf32>
    %5 = tpu.matmul %3, %4, %cst {dimension_numbers = #tpu.dot_dimension_numbers<[1], [0], [0], [1], [0, 0, 1, 1], [], []>} : vector<32x3xf32>, vector<3x128xf32>, vector<32x128xf32> -> vector<32x128xf32>
    %c0_5 = arith.constant 0 : index
    %c0_6 = arith.constant 0 : index
    %6 = vector.load %arg3[%c0_5, %c0_6] : memref<1x128xf32, #tpu.memory_space<vmem>>, vector<1x128xf32>
    %7 = vector.broadcast %6 : vector<1x128xf32> to vector<32x128xf32>
    %8 = arith.addf %5, %7 : vector<32x128xf32>
    %cst_7 = arith.constant 0.000000e+00 : f32
    %9 = vector.broadcast %cst_7 : f32 to vector<32x128xf32>
    %10 = arith.maximumf %8, %9 : vector<32x128xf32>
    %11 = tpu.iota {dimensions = array<i32: 0>} : vector<8x32xi32>
    %12 = tpu.iota {dimensions = array<i32: 1>} : vector<8x32xi32>
    %c4_i32 = arith.constant 4 : i32
    %13 = vector.broadcast %c4_i32 : i32 to vector<8x32xi32>
    %14 = arith.muli %11, %13 : vector<8x32xi32>
    %15 = arith.cmpi sge, %12, %14 : vector<8x32xi32>
    %c1_i32 = arith.constant 1 : i32
    %16 = vector.broadcast %c1_i32 : i32 to vector<8x32xi32>
    %17 = arith.addi %11, %16 : vector<8x32xi32>
    %c4_i32_8 = arith.constant 4 : i32
    %18 = vector.broadcast %c4_i32_8 : i32 to vector<8x32xi32>
    %19 = arith.muli %17, %18 : vector<8x32xi32>
    %20 = arith.cmpi slt, %12, %19 : vector<8x32xi32>
    %21 = arith.andi %15, %20 : vector<8x32xi1>
    %cst_9 = arith.constant 2.500000e-01 : f32
    %cst_10 = arith.constant 0.000000e+00 : f32
    %22 = vector.broadcast %cst_9 : f32 to vector<8x32xf32>
    %23 = vector.broadcast %cst_10 : f32 to vector<8x32xf32>
    %24 = arith.select %21, %22, %23 : vector<8x32xi1>, vector<8x32xf32>
    %cst_11 = arith.constant dense<0.000000e+00> : vector<8x128xf32>
    %25 = tpu.matmul %24, %10, %cst_11 {dimension_numbers = #tpu.dot_dimension_numbers<[1], [0], [0], [1], [0, 0, 1, 1], [], []>} : vector<8x32xf32>, vector<32x128xf32>, vector<8x128xf32> -> vector<8x128xf32>
    %c0_12 = arith.constant 0 : index
    %c0_13 = arith.constant 0 : index
    %26 = vector.load %arg4[%c0_12, %c0_13] : memref<128x5xf32, #tpu.memory_space<vmem>>, vector<128x5xf32>
    %cst_14 = arith.constant dense<0.000000e+00> : vector<8x5xf32>
    %27 = tpu.matmul %25, %26, %cst_14 {dimension_numbers = #tpu.dot_dimension_numbers<[1], [0], [0], [1], [0, 0, 1, 1], [], []>} : vector<8x128xf32>, vector<128x5xf32>, vector<8x5xf32> -> vector<8x5xf32>
    %c0_15 = arith.constant 0 : index
    %c0_16 = arith.constant 0 : index
    %28 = vector.load %arg5[%c0_15, %c0_16] : memref<1x5xf32, #tpu.memory_space<vmem>>, vector<1x5xf32>
    %29 = vector.broadcast %28 : vector<1x5xf32> to vector<8x5xf32>
    %30 = arith.addf %27, %29 : vector<8x5xf32>
    %cst_17 = arith.constant dense<0xFF800000> : vector<8xf32>
    %31 = vector.multi_reduction <maximumf>, %30, %cst_17 [1] : vector<8x5xf32> to vector<8xf32>
    %32 = vector.shape_cast %31 : vector<8xf32> to vector<8x1xf32>
    %33 = tpu.iota {dimensions = array<i32: 1>} : vector<8x5xi32>
    %34 = vector.broadcast %32 : vector<8x1xf32> to vector<8x5xf32>
    %35 = arith.cmpf oeq, %30, %34 : vector<8x5xf32>
    %c2147483647_i32 = arith.constant 2147483647 : i32
    %36 = vector.broadcast %c2147483647_i32 : i32 to vector<8x5xi32>
    %37 = arith.select %35, %33, %36 : vector<8x5xi1>, vector<8x5xi32>
    %cst_18 = arith.constant dense<2147483647> : vector<8xi32>
    %38 = vector.multi_reduction <minsi>, %37, %cst_18 [1] : vector<8x5xi32> to vector<8xi32>
    %39 = vector.shape_cast %38 : vector<8xi32> to vector<8x1xi32>
    %40 = vector.extract_strided_slice %25 {offsets = [0, 0], sizes = [3, 128], strides = [1, 1]} : vector<8x128xf32> to vector<3x128xf32>
    %41 = vector.extract_strided_slice %40 {offsets = [0, 0], sizes = [1, 128], strides = [1, 1]} : vector<3x128xf32> to vector<1x128xf32>
    %42 = vector.broadcast %41 : vector<1x128xf32> to vector<8x128xf32>
    %43 = arith.subf %25, %42 : vector<8x128xf32>
    %44 = arith.mulf %43, %43 : vector<8x128xf32>
    %cst_19 = arith.constant dense<0.000000e+00> : vector<8xf32>
    %45 = vector.multi_reduction <add>, %44, %cst_19 [1] : vector<8x128xf32> to vector<8xf32>
    %46 = vector.shape_cast %45 : vector<8xf32> to vector<8x1xf32>
    %c0_i32 = arith.constant 0 : i32
    %47 = vector.broadcast %c0_i32 : i32 to vector<8x1xi32>
    %48 = vector.extract_strided_slice %40 {offsets = [1, 0], sizes = [1, 128], strides = [1, 1]} : vector<3x128xf32> to vector<1x128xf32>
    %49 = vector.broadcast %48 : vector<1x128xf32> to vector<8x128xf32>
    %50 = arith.subf %25, %49 : vector<8x128xf32>
    %51 = arith.mulf %50, %50 : vector<8x128xf32>
    %cst_20 = arith.constant dense<0.000000e+00> : vector<8xf32>
    %52 = vector.multi_reduction <add>, %51, %cst_20 [1] : vector<8x128xf32> to vector<8xf32>
    %53 = vector.shape_cast %52 : vector<8xf32> to vector<8x1xf32>
    %54 = arith.cmpf olt, %53, %46 : vector<8x1xf32>
    %55 = arith.select %54, %53, %46 : vector<8x1xi1>, vector<8x1xf32>
    %c1_i32_21 = arith.constant 1 : i32
    %56 = vector.broadcast %c1_i32_21 : i32 to vector<8x1xi32>
    %57 = arith.select %54, %56, %47 : vector<8x1xi1>, vector<8x1xi32>
    %58 = vector.extract_strided_slice %40 {offsets = [2, 0], sizes = [1, 128], strides = [1, 1]} : vector<3x128xf32> to vector<1x128xf32>
    %59 = vector.broadcast %58 : vector<1x128xf32> to vector<8x128xf32>
    %60 = arith.subf %25, %59 : vector<8x128xf32>
    %61 = arith.mulf %60, %60 : vector<8x128xf32>
    %cst_22 = arith.constant dense<0.000000e+00> : vector<8xf32>
    %62 = vector.multi_reduction <add>, %61, %cst_22 [1] : vector<8x128xf32> to vector<8xf32>
    %63 = vector.shape_cast %62 : vector<8xf32> to vector<8x1xf32>
    %64 = arith.cmpf olt, %63, %55 : vector<8x1xf32>
    %c2_i32 = arith.constant 2 : i32
    %65 = vector.broadcast %c2_i32 : i32 to vector<8x1xi32>
    %66 = arith.select %64, %65, %57 : vector<8x1xi1>, vector<8x1xi32>
    %c0_i32_23 = arith.constant 0 : i32
    %67 = vector.broadcast %c0_i32_23 : i32 to vector<8x1xi32>
    %68 = arith.cmpi eq, %66, %67 : vector<8x1xi32>
    %69 = arith.extui %68 : vector<8x1xi1> to vector<8x1xi32>
    %70 = arith.sitofp %69 : vector<8x1xi32> to vector<8x1xf32>
    %cst_24 = arith.constant dense<0.000000e+00> : vector<1xf32>
    %71 = vector.multi_reduction <add>, %70, %cst_24 [0] : vector<8x1xf32> to vector<1xf32>
    %72 = vector.shape_cast %71 : vector<1xf32> to vector<1x1xf32>
    %cst_25 = arith.constant 0.000000e+00 : f32
    %73 = vector.shape_cast %68 : vector<8x1xi1> to vector<8x1xi1>
    %74 = vector.broadcast %73 : vector<8x1xi1> to vector<8x128xi1>
    %75 = vector.broadcast %cst_25 : f32 to vector<8x128xf32>
    %76 = arith.select %74, %25, %75 : vector<8x128xi1>, vector<8x128xf32>
    %cst_26 = arith.constant dense<0.000000e+00> : vector<128xf32>
    %77 = vector.multi_reduction <add>, %76, %cst_26 [0] : vector<8x128xf32> to vector<128xf32>
    %78 = vector.shape_cast %77 : vector<128xf32> to vector<1x128xf32>
    %cst_27 = arith.constant 0.000000e+00 : f32
    %79 = vector.broadcast %cst_27 : f32 to vector<1x1xf32>
    %80 = arith.cmpf ogt, %72, %79 : vector<1x1xf32>
    %cst_28 = arith.constant 1.000000e+00 : f32
    %81 = vector.broadcast %cst_28 : f32 to vector<1x1xf32>
    %82 = arith.maximumf %72, %81 : vector<1x1xf32>
    %83 = vector.broadcast %82 : vector<1x1xf32> to vector<1x128xf32>
    %84 = arith.divf %78, %83 : vector<1x128xf32>
    %85 = vector.extract_strided_slice %40 {offsets = [0, 0], sizes = [1, 128], strides = [1, 1]} : vector<3x128xf32> to vector<1x128xf32>
    %86 = vector.shape_cast %80 : vector<1x1xi1> to vector<1x1xi1>
    %87 = vector.broadcast %86 : vector<1x1xi1> to vector<1x128xi1>
    %88 = arith.select %87, %84, %85 : vector<1x128xi1>, vector<1x128xf32>
    %c1_i32_29 = arith.constant 1 : i32
    %89 = vector.broadcast %c1_i32_29 : i32 to vector<8x1xi32>
    %90 = arith.cmpi eq, %66, %89 : vector<8x1xi32>
    %91 = arith.extui %90 : vector<8x1xi1> to vector<8x1xi32>
    %92 = arith.sitofp %91 : vector<8x1xi32> to vector<8x1xf32>
    %cst_30 = arith.constant dense<0.000000e+00> : vector<1xf32>
    %93 = vector.multi_reduction <add>, %92, %cst_30 [0] : vector<8x1xf32> to vector<1xf32>
    %94 = vector.shape_cast %93 : vector<1xf32> to vector<1x1xf32>
    %cst_31 = arith.constant 0.000000e+00 : f32
    %95 = vector.shape_cast %90 : vector<8x1xi1> to vector<8x1xi1>
    %96 = vector.broadcast %95 : vector<8x1xi1> to vector<8x128xi1>
    %97 = vector.broadcast %cst_31 : f32 to vector<8x128xf32>
    %98 = arith.select %96, %25, %97 : vector<8x128xi1>, vector<8x128xf32>
    %cst_32 = arith.constant dense<0.000000e+00> : vector<128xf32>
    %99 = vector.multi_reduction <add>, %98, %cst_32 [0] : vector<8x128xf32> to vector<128xf32>
    %100 = vector.shape_cast %99 : vector<128xf32> to vector<1x128xf32>
    %cst_33 = arith.constant 0.000000e+00 : f32
    %101 = vector.broadcast %cst_33 : f32 to vector<1x1xf32>
    %102 = arith.cmpf ogt, %94, %101 : vector<1x1xf32>
    %cst_34 = arith.constant 1.000000e+00 : f32
    %103 = vector.broadcast %cst_34 : f32 to vector<1x1xf32>
    %104 = arith.maximumf %94, %103 : vector<1x1xf32>
    %105 = vector.broadcast %104 : vector<1x1xf32> to vector<1x128xf32>
    %106 = arith.divf %100, %105 : vector<1x128xf32>
    %107 = vector.extract_strided_slice %40 {offsets = [1, 0], sizes = [1, 128], strides = [1, 1]} : vector<3x128xf32> to vector<1x128xf32>
    %108 = vector.shape_cast %102 : vector<1x1xi1> to vector<1x1xi1>
    %109 = vector.broadcast %108 : vector<1x1xi1> to vector<1x128xi1>
    %110 = arith.select %109, %106, %107 : vector<1x128xi1>, vector<1x128xf32>
    %c2_i32_35 = arith.constant 2 : i32
    %111 = vector.broadcast %c2_i32_35 : i32 to vector<8x1xi32>
    %112 = arith.cmpi eq, %66, %111 : vector<8x1xi32>
    %113 = arith.extui %112 : vector<8x1xi1> to vector<8x1xi32>
    %114 = arith.sitofp %113 : vector<8x1xi32> to vector<8x1xf32>
    %cst_36 = arith.constant dense<0.000000e+00> : vector<1xf32>
    %115 = vector.multi_reduction <add>, %114, %cst_36 [0] : vector<8x1xf32> to vector<1xf32>
    %116 = vector.shape_cast %115 : vector<1xf32> to vector<1x1xf32>
    %cst_37 = arith.constant 0.000000e+00 : f32
    %117 = vector.shape_cast %112 : vector<8x1xi1> to vector<8x1xi1>
    %118 = vector.broadcast %117 : vector<8x1xi1> to vector<8x128xi1>
    %119 = vector.broadcast %cst_37 : f32 to vector<8x128xf32>
    %120 = arith.select %118, %25, %119 : vector<8x128xi1>, vector<8x128xf32>
    %cst_38 = arith.constant dense<0.000000e+00> : vector<128xf32>
    %121 = vector.multi_reduction <add>, %120, %cst_38 [0] : vector<8x128xf32> to vector<128xf32>
    %122 = vector.shape_cast %121 : vector<128xf32> to vector<1x128xf32>
    %cst_39 = arith.constant 0.000000e+00 : f32
    %123 = vector.broadcast %cst_39 : f32 to vector<1x1xf32>
    %124 = arith.cmpf ogt, %116, %123 : vector<1x1xf32>
    %cst_40 = arith.constant 1.000000e+00 : f32
    %125 = vector.broadcast %cst_40 : f32 to vector<1x1xf32>
    %126 = arith.maximumf %116, %125 : vector<1x1xf32>
    %127 = vector.broadcast %126 : vector<1x1xf32> to vector<1x128xf32>
    %128 = arith.divf %122, %127 : vector<1x128xf32>
    %129 = vector.extract_strided_slice %40 {offsets = [2, 0], sizes = [1, 128], strides = [1, 1]} : vector<3x128xf32> to vector<1x128xf32>
    %130 = vector.shape_cast %124 : vector<1x1xi1> to vector<1x1xi1>
    %131 = vector.broadcast %130 : vector<1x1xi1> to vector<1x128xi1>
    %132 = arith.select %131, %128, %129 : vector<1x128xi1>, vector<1x128xf32>
    %133 = tpu.concatenate %88, %110, %132 in 0 : vector<1x128xf32>, vector<1x128xf32>, vector<1x128xf32> -> vector<3x128xf32>
    %134 = vector.extract_strided_slice %133 {offsets = [0, 0], sizes = [1, 128], strides = [1, 1]} : vector<3x128xf32> to vector<1x128xf32>
    %135 = vector.broadcast %134 : vector<1x128xf32> to vector<8x128xf32>
    %136 = arith.subf %25, %135 : vector<8x128xf32>
    %137 = arith.mulf %136, %136 : vector<8x128xf32>
    %cst_41 = arith.constant dense<0.000000e+00> : vector<8xf32>
    %138 = vector.multi_reduction <add>, %137, %cst_41 [1] : vector<8x128xf32> to vector<8xf32>
    %139 = vector.shape_cast %138 : vector<8xf32> to vector<8x1xf32>
    %c0_i32_42 = arith.constant 0 : i32
    %140 = vector.broadcast %c0_i32_42 : i32 to vector<8x1xi32>
    %141 = vector.extract_strided_slice %133 {offsets = [1, 0], sizes = [1, 128], strides = [1, 1]} : vector<3x128xf32> to vector<1x128xf32>
    %142 = vector.broadcast %141 : vector<1x128xf32> to vector<8x128xf32>
    %143 = arith.subf %25, %142 : vector<8x128xf32>
    %144 = arith.mulf %143, %143 : vector<8x128xf32>
    %cst_43 = arith.constant dense<0.000000e+00> : vector<8xf32>
    %145 = vector.multi_reduction <add>, %144, %cst_43 [1] : vector<8x128xf32> to vector<8xf32>
    %146 = vector.shape_cast %145 : vector<8xf32> to vector<8x1xf32>
    %147 = arith.cmpf olt, %146, %139 : vector<8x1xf32>
    %148 = arith.select %147, %146, %139 : vector<8x1xi1>, vector<8x1xf32>
    %c1_i32_44 = arith.constant 1 : i32
    %149 = vector.broadcast %c1_i32_44 : i32 to vector<8x1xi32>
    %150 = arith.select %147, %149, %140 : vector<8x1xi1>, vector<8x1xi32>
    %151 = vector.extract_strided_slice %133 {offsets = [2, 0], sizes = [1, 128], strides = [1, 1]} : vector<3x128xf32> to vector<1x128xf32>
    %152 = vector.broadcast %151 : vector<1x128xf32> to vector<8x128xf32>
    %153 = arith.subf %25, %152 : vector<8x128xf32>
    %154 = arith.mulf %153, %153 : vector<8x128xf32>
    %cst_45 = arith.constant dense<0.000000e+00> : vector<8xf32>
    %155 = vector.multi_reduction <add>, %154, %cst_45 [1] : vector<8x128xf32> to vector<8xf32>
    %156 = vector.shape_cast %155 : vector<8xf32> to vector<8x1xf32>
    %157 = arith.cmpf olt, %156, %148 : vector<8x1xf32>
    %c2_i32_46 = arith.constant 2 : i32
    %158 = vector.broadcast %c2_i32_46 : i32 to vector<8x1xi32>
    %159 = arith.select %157, %158, %150 : vector<8x1xi1>, vector<8x1xi32>
    %c0_i32_47 = arith.constant 0 : i32
    %160 = vector.broadcast %c0_i32_47 : i32 to vector<8x1xi32>
    %161 = arith.cmpi eq, %159, %160 : vector<8x1xi32>
    %162 = arith.extui %161 : vector<8x1xi1> to vector<8x1xi32>
    %163 = arith.sitofp %162 : vector<8x1xi32> to vector<8x1xf32>
    %cst_48 = arith.constant dense<0.000000e+00> : vector<1xf32>
    %164 = vector.multi_reduction <add>, %163, %cst_48 [0] : vector<8x1xf32> to vector<1xf32>
    %165 = vector.shape_cast %164 : vector<1xf32> to vector<1x1xf32>
    %cst_49 = arith.constant 0.000000e+00 : f32
    %166 = vector.shape_cast %161 : vector<8x1xi1> to vector<8x1xi1>
    %167 = vector.broadcast %166 : vector<8x1xi1> to vector<8x128xi1>
    %168 = vector.broadcast %cst_49 : f32 to vector<8x128xf32>
    %169 = arith.select %167, %25, %168 : vector<8x128xi1>, vector<8x128xf32>
    %cst_50 = arith.constant dense<0.000000e+00> : vector<128xf32>
    %170 = vector.multi_reduction <add>, %169, %cst_50 [0] : vector<8x128xf32> to vector<128xf32>
    %171 = vector.shape_cast %170 : vector<128xf32> to vector<1x128xf32>
    %cst_51 = arith.constant 0.000000e+00 : f32
    %172 = vector.broadcast %cst_51 : f32 to vector<1x1xf32>
    %173 = arith.cmpf ogt, %165, %172 : vector<1x1xf32>
    %cst_52 = arith.constant 1.000000e+00 : f32
    %174 = vector.broadcast %cst_52 : f32 to vector<1x1xf32>
    %175 = arith.maximumf %165, %174 : vector<1x1xf32>
    %176 = vector.broadcast %175 : vector<1x1xf32> to vector<1x128xf32>
    %177 = arith.divf %171, %176 : vector<1x128xf32>
    %178 = vector.extract_strided_slice %133 {offsets = [0, 0], sizes = [1, 128], strides = [1, 1]} : vector<3x128xf32> to vector<1x128xf32>
    %179 = vector.shape_cast %173 : vector<1x1xi1> to vector<1x1xi1>
    %180 = vector.broadcast %179 : vector<1x1xi1> to vector<1x128xi1>
    %181 = arith.select %180, %177, %178 : vector<1x128xi1>, vector<1x128xf32>
    %c1_i32_53 = arith.constant 1 : i32
    %182 = vector.broadcast %c1_i32_53 : i32 to vector<8x1xi32>
    %183 = arith.cmpi eq, %159, %182 : vector<8x1xi32>
    %184 = arith.extui %183 : vector<8x1xi1> to vector<8x1xi32>
    %185 = arith.sitofp %184 : vector<8x1xi32> to vector<8x1xf32>
    %cst_54 = arith.constant dense<0.000000e+00> : vector<1xf32>
    %186 = vector.multi_reduction <add>, %185, %cst_54 [0] : vector<8x1xf32> to vector<1xf32>
    %187 = vector.shape_cast %186 : vector<1xf32> to vector<1x1xf32>
    %cst_55 = arith.constant 0.000000e+00 : f32
    %188 = vector.shape_cast %183 : vector<8x1xi1> to vector<8x1xi1>
    %189 = vector.broadcast %188 : vector<8x1xi1> to vector<8x128xi1>
    %190 = vector.broadcast %cst_55 : f32 to vector<8x128xf32>
    %191 = arith.select %189, %25, %190 : vector<8x128xi1>, vector<8x128xf32>
    %cst_56 = arith.constant dense<0.000000e+00> : vector<128xf32>
    %192 = vector.multi_reduction <add>, %191, %cst_56 [0] : vector<8x128xf32> to vector<128xf32>
    %193 = vector.shape_cast %192 : vector<128xf32> to vector<1x128xf32>
    %cst_57 = arith.constant 0.000000e+00 : f32
    %194 = vector.broadcast %cst_57 : f32 to vector<1x1xf32>
    %195 = arith.cmpf ogt, %187, %194 : vector<1x1xf32>
    %cst_58 = arith.constant 1.000000e+00 : f32
    %196 = vector.broadcast %cst_58 : f32 to vector<1x1xf32>
    %197 = arith.maximumf %187, %196 : vector<1x1xf32>
    %198 = vector.broadcast %197 : vector<1x1xf32> to vector<1x128xf32>
    %199 = arith.divf %193, %198 : vector<1x128xf32>
    %200 = vector.extract_strided_slice %133 {offsets = [1, 0], sizes = [1, 128], strides = [1, 1]} : vector<3x128xf32> to vector<1x128xf32>
    %201 = vector.shape_cast %195 : vector<1x1xi1> to vector<1x1xi1>
    %202 = vector.broadcast %201 : vector<1x1xi1> to vector<1x128xi1>
    %203 = arith.select %202, %199, %200 : vector<1x128xi1>, vector<1x128xf32>
    %c2_i32_59 = arith.constant 2 : i32
    %204 = vector.broadcast %c2_i32_59 : i32 to vector<8x1xi32>
    %205 = arith.cmpi eq, %159, %204 : vector<8x1xi32>
    %206 = arith.extui %205 : vector<8x1xi1> to vector<8x1xi32>
    %207 = arith.sitofp %206 : vector<8x1xi32> to vector<8x1xf32>
    %cst_60 = arith.constant dense<0.000000e+00> : vector<1xf32>
    %208 = vector.multi_reduction <add>, %207, %cst_60 [0] : vector<8x1xf32> to vector<1xf32>
    %209 = vector.shape_cast %208 : vector<1xf32> to vector<1x1xf32>
    %cst_61 = arith.constant 0.000000e+00 : f32
    %210 = vector.shape_cast %205 : vector<8x1xi1> to vector<8x1xi1>
    %211 = vector.broadcast %210 : vector<8x1xi1> to vector<8x128xi1>
    %212 = vector.broadcast %cst_61 : f32 to vector<8x128xf32>
    %213 = arith.select %211, %25, %212 : vector<8x128xi1>, vector<8x128xf32>
    %cst_62 = arith.constant dense<0.000000e+00> : vector<128xf32>
    %214 = vector.multi_reduction <add>, %213, %cst_62 [0] : vector<8x128xf32> to vector<128xf32>
    %215 = vector.shape_cast %214 : vector<128xf32> to vector<1x128xf32>
    %cst_63 = arith.constant 0.000000e+00 : f32
    %216 = vector.broadcast %cst_63 : f32 to vector<1x1xf32>
    %217 = arith.cmpf ogt, %209, %216 : vector<1x1xf32>
    %cst_64 = arith.constant 1.000000e+00 : f32
    %218 = vector.broadcast %cst_64 : f32 to vector<1x1xf32>
    %219 = arith.maximumf %209, %218 : vector<1x1xf32>
    %220 = vector.broadcast %219 : vector<1x1xf32> to vector<1x128xf32>
    %221 = arith.divf %215, %220 : vector<1x128xf32>
    %222 = vector.extract_strided_slice %133 {offsets = [2, 0], sizes = [1, 128], strides = [1, 1]} : vector<3x128xf32> to vector<1x128xf32>
    %223 = vector.shape_cast %217 : vector<1x1xi1> to vector<1x1xi1>
    %224 = vector.broadcast %223 : vector<1x1xi1> to vector<1x128xi1>
    %225 = arith.select %224, %221, %222 : vector<1x128xi1>, vector<1x128xf32>
    %226 = tpu.concatenate %181, %203, %225 in 0 : vector<1x128xf32>, vector<1x128xf32>, vector<1x128xf32> -> vector<3x128xf32>
    %227 = vector.extract_strided_slice %226 {offsets = [0, 0], sizes = [1, 128], strides = [1, 1]} : vector<3x128xf32> to vector<1x128xf32>
    %228 = vector.broadcast %227 : vector<1x128xf32> to vector<8x128xf32>
    %229 = arith.subf %25, %228 : vector<8x128xf32>
    %230 = arith.mulf %229, %229 : vector<8x128xf32>
    %cst_65 = arith.constant dense<0.000000e+00> : vector<8xf32>
    %231 = vector.multi_reduction <add>, %230, %cst_65 [1] : vector<8x128xf32> to vector<8xf32>
    %232 = vector.shape_cast %231 : vector<8xf32> to vector<8x1xf32>
    %c0_i32_66 = arith.constant 0 : i32
    %233 = vector.broadcast %c0_i32_66 : i32 to vector<8x1xi32>
    %234 = vector.extract_strided_slice %226 {offsets = [1, 0], sizes = [1, 128], strides = [1, 1]} : vector<3x128xf32> to vector<1x128xf32>
    %235 = vector.broadcast %234 : vector<1x128xf32> to vector<8x128xf32>
    %236 = arith.subf %25, %235 : vector<8x128xf32>
    %237 = arith.mulf %236, %236 : vector<8x128xf32>
    %cst_67 = arith.constant dense<0.000000e+00> : vector<8xf32>
    %238 = vector.multi_reduction <add>, %237, %cst_67 [1] : vector<8x128xf32> to vector<8xf32>
    %239 = vector.shape_cast %238 : vector<8xf32> to vector<8x1xf32>
    %240 = arith.cmpf olt, %239, %232 : vector<8x1xf32>
    %241 = arith.select %240, %239, %232 : vector<8x1xi1>, vector<8x1xf32>
    %c1_i32_68 = arith.constant 1 : i32
    %242 = vector.broadcast %c1_i32_68 : i32 to vector<8x1xi32>
    %243 = arith.select %240, %242, %233 : vector<8x1xi1>, vector<8x1xi32>
    %244 = vector.extract_strided_slice %226 {offsets = [2, 0], sizes = [1, 128], strides = [1, 1]} : vector<3x128xf32> to vector<1x128xf32>
    %245 = vector.broadcast %244 : vector<1x128xf32> to vector<8x128xf32>
    %246 = arith.subf %25, %245 : vector<8x128xf32>
    %247 = arith.mulf %246, %246 : vector<8x128xf32>
    %cst_69 = arith.constant dense<0.000000e+00> : vector<8xf32>
    %248 = vector.multi_reduction <add>, %247, %cst_69 [1] : vector<8x128xf32> to vector<8xf32>
    %249 = vector.shape_cast %248 : vector<8xf32> to vector<8x1xf32>
    %250 = arith.cmpf olt, %249, %241 : vector<8x1xf32>
    %c2_i32_70 = arith.constant 2 : i32
    %251 = vector.broadcast %c2_i32_70 : i32 to vector<8x1xi32>
    %252 = arith.select %250, %251, %243 : vector<8x1xi1>, vector<8x1xi32>
    %c0_i32_71 = arith.constant 0 : i32
    %253 = vector.broadcast %c0_i32_71 : i32 to vector<8x1xi32>
    %254 = arith.cmpi eq, %252, %253 : vector<8x1xi32>
    %255 = arith.extui %254 : vector<8x1xi1> to vector<8x1xi32>
    %256 = arith.sitofp %255 : vector<8x1xi32> to vector<8x1xf32>
    %cst_72 = arith.constant dense<0.000000e+00> : vector<1xf32>
    %257 = vector.multi_reduction <add>, %256, %cst_72 [0] : vector<8x1xf32> to vector<1xf32>
    %258 = vector.shape_cast %257 : vector<1xf32> to vector<1x1xf32>
    %cst_73 = arith.constant 0.000000e+00 : f32
    %259 = vector.shape_cast %254 : vector<8x1xi1> to vector<8x1xi1>
    %260 = vector.broadcast %259 : vector<8x1xi1> to vector<8x128xi1>
    %261 = vector.broadcast %cst_73 : f32 to vector<8x128xf32>
    %262 = arith.select %260, %25, %261 : vector<8x128xi1>, vector<8x128xf32>
    %cst_74 = arith.constant dense<0.000000e+00> : vector<128xf32>
    %263 = vector.multi_reduction <add>, %262, %cst_74 [0] : vector<8x128xf32> to vector<128xf32>
    %264 = vector.shape_cast %263 : vector<128xf32> to vector<1x128xf32>
    %cst_75 = arith.constant 0.000000e+00 : f32
    %265 = vector.broadcast %cst_75 : f32 to vector<1x1xf32>
    %266 = arith.cmpf ogt, %258, %265 : vector<1x1xf32>
    %cst_76 = arith.constant 1.000000e+00 : f32
    %267 = vector.broadcast %cst_76 : f32 to vector<1x1xf32>
    %268 = arith.maximumf %258, %267 : vector<1x1xf32>
    %269 = vector.broadcast %268 : vector<1x1xf32> to vector<1x128xf32>
    %270 = arith.divf %264, %269 : vector<1x128xf32>
    %271 = vector.extract_strided_slice %226 {offsets = [0, 0], sizes = [1, 128], strides = [1, 1]} : vector<3x128xf32> to vector<1x128xf32>
    %272 = vector.shape_cast %266 : vector<1x1xi1> to vector<1x1xi1>
    %273 = vector.broadcast %272 : vector<1x1xi1> to vector<1x128xi1>
    %274 = arith.select %273, %270, %271 : vector<1x128xi1>, vector<1x128xf32>
    %c1_i32_77 = arith.constant 1 : i32
    %275 = vector.broadcast %c1_i32_77 : i32 to vector<8x1xi32>
    %276 = arith.cmpi eq, %252, %275 : vector<8x1xi32>
    %277 = arith.extui %276 : vector<8x1xi1> to vector<8x1xi32>
    %278 = arith.sitofp %277 : vector<8x1xi32> to vector<8x1xf32>
    %cst_78 = arith.constant dense<0.000000e+00> : vector<1xf32>
    %279 = vector.multi_reduction <add>, %278, %cst_78 [0] : vector<8x1xf32> to vector<1xf32>
    %280 = vector.shape_cast %279 : vector<1xf32> to vector<1x1xf32>
    %cst_79 = arith.constant 0.000000e+00 : f32
    %281 = vector.shape_cast %276 : vector<8x1xi1> to vector<8x1xi1>
    %282 = vector.broadcast %281 : vector<8x1xi1> to vector<8x128xi1>
    %283 = vector.broadcast %cst_79 : f32 to vector<8x128xf32>
    %284 = arith.select %282, %25, %283 : vector<8x128xi1>, vector<8x128xf32>
    %cst_80 = arith.constant dense<0.000000e+00> : vector<128xf32>
    %285 = vector.multi_reduction <add>, %284, %cst_80 [0] : vector<8x128xf32> to vector<128xf32>
    %286 = vector.shape_cast %285 : vector<128xf32> to vector<1x128xf32>
    %cst_81 = arith.constant 0.000000e+00 : f32
    %287 = vector.broadcast %cst_81 : f32 to vector<1x1xf32>
    %288 = arith.cmpf ogt, %280, %287 : vector<1x1xf32>
    %cst_82 = arith.constant 1.000000e+00 : f32
    %289 = vector.broadcast %cst_82 : f32 to vector<1x1xf32>
    %290 = arith.maximumf %280, %289 : vector<1x1xf32>
    %291 = vector.broadcast %290 : vector<1x1xf32> to vector<1x128xf32>
    %292 = arith.divf %286, %291 : vector<1x128xf32>
    %293 = vector.extract_strided_slice %226 {offsets = [1, 0], sizes = [1, 128], strides = [1, 1]} : vector<3x128xf32> to vector<1x128xf32>
    %294 = vector.shape_cast %288 : vector<1x1xi1> to vector<1x1xi1>
    %295 = vector.broadcast %294 : vector<1x1xi1> to vector<1x128xi1>
    %296 = arith.select %295, %292, %293 : vector<1x128xi1>, vector<1x128xf32>
    %c2_i32_83 = arith.constant 2 : i32
    %297 = vector.broadcast %c2_i32_83 : i32 to vector<8x1xi32>
    %298 = arith.cmpi eq, %252, %297 : vector<8x1xi32>
    %299 = arith.extui %298 : vector<8x1xi1> to vector<8x1xi32>
    %300 = arith.sitofp %299 : vector<8x1xi32> to vector<8x1xf32>
    %cst_84 = arith.constant dense<0.000000e+00> : vector<1xf32>
    %301 = vector.multi_reduction <add>, %300, %cst_84 [0] : vector<8x1xf32> to vector<1xf32>
    %302 = vector.shape_cast %301 : vector<1xf32> to vector<1x1xf32>
    %cst_85 = arith.constant 0.000000e+00 : f32
    %303 = vector.shape_cast %298 : vector<8x1xi1> to vector<8x1xi1>
    %304 = vector.broadcast %303 : vector<8x1xi1> to vector<8x128xi1>
    %305 = vector.broadcast %cst_85 : f32 to vector<8x128xf32>
    %306 = arith.select %304, %25, %305 : vector<8x128xi1>, vector<8x128xf32>
    %cst_86 = arith.constant dense<0.000000e+00> : vector<128xf32>
    %307 = vector.multi_reduction <add>, %306, %cst_86 [0] : vector<8x128xf32> to vector<128xf32>
    %308 = vector.shape_cast %307 : vector<128xf32> to vector<1x128xf32>
    %cst_87 = arith.constant 0.000000e+00 : f32
    %309 = vector.broadcast %cst_87 : f32 to vector<1x1xf32>
    %310 = arith.cmpf ogt, %302, %309 : vector<1x1xf32>
    %cst_88 = arith.constant 1.000000e+00 : f32
    %311 = vector.broadcast %cst_88 : f32 to vector<1x1xf32>
    %312 = arith.maximumf %302, %311 : vector<1x1xf32>
    %313 = vector.broadcast %312 : vector<1x1xf32> to vector<1x128xf32>
    %314 = arith.divf %308, %313 : vector<1x128xf32>
    %315 = vector.extract_strided_slice %226 {offsets = [2, 0], sizes = [1, 128], strides = [1, 1]} : vector<3x128xf32> to vector<1x128xf32>
    %316 = vector.shape_cast %310 : vector<1x1xi1> to vector<1x1xi1>
    %317 = vector.broadcast %316 : vector<1x1xi1> to vector<1x128xi1>
    %318 = arith.select %317, %314, %315 : vector<1x128xi1>, vector<1x128xf32>
    %319 = tpu.concatenate %274, %296, %318 in 0 : vector<1x128xf32>, vector<1x128xf32>, vector<1x128xf32> -> vector<3x128xf32>
    %320 = vector.extract_strided_slice %319 {offsets = [0, 0], sizes = [1, 128], strides = [1, 1]} : vector<3x128xf32> to vector<1x128xf32>
    %321 = vector.broadcast %320 : vector<1x128xf32> to vector<8x128xf32>
    %322 = arith.subf %25, %321 : vector<8x128xf32>
    %323 = arith.mulf %322, %322 : vector<8x128xf32>
    %cst_89 = arith.constant dense<0.000000e+00> : vector<8xf32>
    %324 = vector.multi_reduction <add>, %323, %cst_89 [1] : vector<8x128xf32> to vector<8xf32>
    %325 = vector.shape_cast %324 : vector<8xf32> to vector<8x1xf32>
    %c0_i32_90 = arith.constant 0 : i32
    %326 = vector.broadcast %c0_i32_90 : i32 to vector<8x1xi32>
    %327 = vector.extract_strided_slice %319 {offsets = [1, 0], sizes = [1, 128], strides = [1, 1]} : vector<3x128xf32> to vector<1x128xf32>
    %328 = vector.broadcast %327 : vector<1x128xf32> to vector<8x128xf32>
    %329 = arith.subf %25, %328 : vector<8x128xf32>
    %330 = arith.mulf %329, %329 : vector<8x128xf32>
    %cst_91 = arith.constant dense<0.000000e+00> : vector<8xf32>
    %331 = vector.multi_reduction <add>, %330, %cst_91 [1] : vector<8x128xf32> to vector<8xf32>
    %332 = vector.shape_cast %331 : vector<8xf32> to vector<8x1xf32>
    %333 = arith.cmpf olt, %332, %325 : vector<8x1xf32>
    %334 = arith.select %333, %332, %325 : vector<8x1xi1>, vector<8x1xf32>
    %c1_i32_92 = arith.constant 1 : i32
    %335 = vector.broadcast %c1_i32_92 : i32 to vector<8x1xi32>
    %336 = arith.select %333, %335, %326 : vector<8x1xi1>, vector<8x1xi32>
    %337 = vector.extract_strided_slice %319 {offsets = [2, 0], sizes = [1, 128], strides = [1, 1]} : vector<3x128xf32> to vector<1x128xf32>
    %338 = vector.broadcast %337 : vector<1x128xf32> to vector<8x128xf32>
    %339 = arith.subf %25, %338 : vector<8x128xf32>
    %340 = arith.mulf %339, %339 : vector<8x128xf32>
    %cst_93 = arith.constant dense<0.000000e+00> : vector<8xf32>
    %341 = vector.multi_reduction <add>, %340, %cst_93 [1] : vector<8x128xf32> to vector<8xf32>
    %342 = vector.shape_cast %341 : vector<8xf32> to vector<8x1xf32>
    %343 = arith.cmpf olt, %342, %334 : vector<8x1xf32>
    %c2_i32_94 = arith.constant 2 : i32
    %344 = vector.broadcast %c2_i32_94 : i32 to vector<8x1xi32>
    %345 = arith.select %343, %344, %336 : vector<8x1xi1>, vector<8x1xi32>
    %c0_i32_95 = arith.constant 0 : i32
    %346 = vector.broadcast %c0_i32_95 : i32 to vector<8x1xi32>
    %347 = arith.cmpi eq, %345, %346 : vector<8x1xi32>
    %348 = arith.extui %347 : vector<8x1xi1> to vector<8x1xi32>
    %349 = arith.sitofp %348 : vector<8x1xi32> to vector<8x1xf32>
    %cst_96 = arith.constant dense<0.000000e+00> : vector<1xf32>
    %350 = vector.multi_reduction <add>, %349, %cst_96 [0] : vector<8x1xf32> to vector<1xf32>
    %351 = vector.shape_cast %350 : vector<1xf32> to vector<1x1xf32>
    %cst_97 = arith.constant 0.000000e+00 : f32
    %352 = vector.shape_cast %347 : vector<8x1xi1> to vector<8x1xi1>
    %353 = vector.broadcast %352 : vector<8x1xi1> to vector<8x128xi1>
    %354 = vector.broadcast %cst_97 : f32 to vector<8x128xf32>
    %355 = arith.select %353, %25, %354 : vector<8x128xi1>, vector<8x128xf32>
    %cst_98 = arith.constant dense<0.000000e+00> : vector<128xf32>
    %356 = vector.multi_reduction <add>, %355, %cst_98 [0] : vector<8x128xf32> to vector<128xf32>
    %357 = vector.shape_cast %356 : vector<128xf32> to vector<1x128xf32>
    %cst_99 = arith.constant 0.000000e+00 : f32
    %358 = vector.broadcast %cst_99 : f32 to vector<1x1xf32>
    %359 = arith.cmpf ogt, %351, %358 : vector<1x1xf32>
    %cst_100 = arith.constant 1.000000e+00 : f32
    %360 = vector.broadcast %cst_100 : f32 to vector<1x1xf32>
    %361 = arith.maximumf %351, %360 : vector<1x1xf32>
    %362 = vector.broadcast %361 : vector<1x1xf32> to vector<1x128xf32>
    %363 = arith.divf %357, %362 : vector<1x128xf32>
    %364 = vector.extract_strided_slice %319 {offsets = [0, 0], sizes = [1, 128], strides = [1, 1]} : vector<3x128xf32> to vector<1x128xf32>
    %365 = vector.shape_cast %359 : vector<1x1xi1> to vector<1x1xi1>
    %366 = vector.broadcast %365 : vector<1x1xi1> to vector<1x128xi1>
    %367 = arith.select %366, %363, %364 : vector<1x128xi1>, vector<1x128xf32>
    %c1_i32_101 = arith.constant 1 : i32
    %368 = vector.broadcast %c1_i32_101 : i32 to vector<8x1xi32>
    %369 = arith.cmpi eq, %345, %368 : vector<8x1xi32>
    %370 = arith.extui %369 : vector<8x1xi1> to vector<8x1xi32>
    %371 = arith.sitofp %370 : vector<8x1xi32> to vector<8x1xf32>
    %cst_102 = arith.constant dense<0.000000e+00> : vector<1xf32>
    %372 = vector.multi_reduction <add>, %371, %cst_102 [0] : vector<8x1xf32> to vector<1xf32>
    %373 = vector.shape_cast %372 : vector<1xf32> to vector<1x1xf32>
    %cst_103 = arith.constant 0.000000e+00 : f32
    %374 = vector.shape_cast %369 : vector<8x1xi1> to vector<8x1xi1>
    %375 = vector.broadcast %374 : vector<8x1xi1> to vector<8x128xi1>
    %376 = vector.broadcast %cst_103 : f32 to vector<8x128xf32>
    %377 = arith.select %375, %25, %376 : vector<8x128xi1>, vector<8x128xf32>
    %cst_104 = arith.constant dense<0.000000e+00> : vector<128xf32>
    %378 = vector.multi_reduction <add>, %377, %cst_104 [0] : vector<8x128xf32> to vector<128xf32>
    %379 = vector.shape_cast %378 : vector<128xf32> to vector<1x128xf32>
    %cst_105 = arith.constant 0.000000e+00 : f32
    %380 = vector.broadcast %cst_105 : f32 to vector<1x1xf32>
    %381 = arith.cmpf ogt, %373, %380 : vector<1x1xf32>
    %cst_106 = arith.constant 1.000000e+00 : f32
    %382 = vector.broadcast %cst_106 : f32 to vector<1x1xf32>
    %383 = arith.maximumf %373, %382 : vector<1x1xf32>
    %384 = vector.broadcast %383 : vector<1x1xf32> to vector<1x128xf32>
    %385 = arith.divf %379, %384 : vector<1x128xf32>
    %386 = vector.extract_strided_slice %319 {offsets = [1, 0], sizes = [1, 128], strides = [1, 1]} : vector<3x128xf32> to vector<1x128xf32>
    %387 = vector.shape_cast %381 : vector<1x1xi1> to vector<1x1xi1>
    %388 = vector.broadcast %387 : vector<1x1xi1> to vector<1x128xi1>
    %389 = arith.select %388, %385, %386 : vector<1x128xi1>, vector<1x128xf32>
    %c2_i32_107 = arith.constant 2 : i32
    %390 = vector.broadcast %c2_i32_107 : i32 to vector<8x1xi32>
    %391 = arith.cmpi eq, %345, %390 : vector<8x1xi32>
    %392 = arith.extui %391 : vector<8x1xi1> to vector<8x1xi32>
    %393 = arith.sitofp %392 : vector<8x1xi32> to vector<8x1xf32>
    %cst_108 = arith.constant dense<0.000000e+00> : vector<1xf32>
    %394 = vector.multi_reduction <add>, %393, %cst_108 [0] : vector<8x1xf32> to vector<1xf32>
    %395 = vector.shape_cast %394 : vector<1xf32> to vector<1x1xf32>
    %cst_109 = arith.constant 0.000000e+00 : f32
    %396 = vector.shape_cast %391 : vector<8x1xi1> to vector<8x1xi1>
    %397 = vector.broadcast %396 : vector<8x1xi1> to vector<8x128xi1>
    %398 = vector.broadcast %cst_109 : f32 to vector<8x128xf32>
    %399 = arith.select %397, %25, %398 : vector<8x128xi1>, vector<8x128xf32>
    %cst_110 = arith.constant dense<0.000000e+00> : vector<128xf32>
    %400 = vector.multi_reduction <add>, %399, %cst_110 [0] : vector<8x128xf32> to vector<128xf32>
    %401 = vector.shape_cast %400 : vector<128xf32> to vector<1x128xf32>
    %cst_111 = arith.constant 0.000000e+00 : f32
    %402 = vector.broadcast %cst_111 : f32 to vector<1x1xf32>
    %403 = arith.cmpf ogt, %395, %402 : vector<1x1xf32>
    %cst_112 = arith.constant 1.000000e+00 : f32
    %404 = vector.broadcast %cst_112 : f32 to vector<1x1xf32>
    %405 = arith.maximumf %395, %404 : vector<1x1xf32>
    %406 = vector.broadcast %405 : vector<1x1xf32> to vector<1x128xf32>
    %407 = arith.divf %401, %406 : vector<1x128xf32>
    %408 = vector.extract_strided_slice %319 {offsets = [2, 0], sizes = [1, 128], strides = [1, 1]} : vector<3x128xf32> to vector<1x128xf32>
    %409 = vector.shape_cast %403 : vector<1x1xi1> to vector<1x1xi1>
    %410 = vector.broadcast %409 : vector<1x1xi1> to vector<1x128xi1>
    %411 = arith.select %410, %407, %408 : vector<1x128xi1>, vector<1x128xf32>
    %412 = tpu.concatenate %367, %389, %411 in 0 : vector<1x128xf32>, vector<1x128xf32>, vector<1x128xf32> -> vector<3x128xf32>
    %413 = vector.extract_strided_slice %412 {offsets = [0, 0], sizes = [1, 128], strides = [1, 1]} : vector<3x128xf32> to vector<1x128xf32>
    %414 = vector.broadcast %413 : vector<1x128xf32> to vector<8x128xf32>
    %415 = arith.subf %25, %414 : vector<8x128xf32>
    %416 = arith.mulf %415, %415 : vector<8x128xf32>
    %cst_113 = arith.constant dense<0.000000e+00> : vector<8xf32>
    %417 = vector.multi_reduction <add>, %416, %cst_113 [1] : vector<8x128xf32> to vector<8xf32>
    %418 = vector.shape_cast %417 : vector<8xf32> to vector<8x1xf32>
    %c0_i32_114 = arith.constant 0 : i32
    %419 = vector.broadcast %c0_i32_114 : i32 to vector<8x1xi32>
    %420 = vector.extract_strided_slice %412 {offsets = [1, 0], sizes = [1, 128], strides = [1, 1]} : vector<3x128xf32> to vector<1x128xf32>
    %421 = vector.broadcast %420 : vector<1x128xf32> to vector<8x128xf32>
    %422 = arith.subf %25, %421 : vector<8x128xf32>
    %423 = arith.mulf %422, %422 : vector<8x128xf32>
    %cst_115 = arith.constant dense<0.000000e+00> : vector<8xf32>
    %424 = vector.multi_reduction <add>, %423, %cst_115 [1] : vector<8x128xf32> to vector<8xf32>
    %425 = vector.shape_cast %424 : vector<8xf32> to vector<8x1xf32>
    %426 = arith.cmpf olt, %425, %418 : vector<8x1xf32>
    %427 = arith.select %426, %425, %418 : vector<8x1xi1>, vector<8x1xf32>
    %c1_i32_116 = arith.constant 1 : i32
    %428 = vector.broadcast %c1_i32_116 : i32 to vector<8x1xi32>
    %429 = arith.select %426, %428, %419 : vector<8x1xi1>, vector<8x1xi32>
    %430 = vector.extract_strided_slice %412 {offsets = [2, 0], sizes = [1, 128], strides = [1, 1]} : vector<3x128xf32> to vector<1x128xf32>
    %431 = vector.broadcast %430 : vector<1x128xf32> to vector<8x128xf32>
    %432 = arith.subf %25, %431 : vector<8x128xf32>
    %433 = arith.mulf %432, %432 : vector<8x128xf32>
    %cst_117 = arith.constant dense<0.000000e+00> : vector<8xf32>
    %434 = vector.multi_reduction <add>, %433, %cst_117 [1] : vector<8x128xf32> to vector<8xf32>
    %435 = vector.shape_cast %434 : vector<8xf32> to vector<8x1xf32>
    %436 = arith.cmpf olt, %435, %427 : vector<8x1xf32>
    %c2_i32_118 = arith.constant 2 : i32
    %437 = vector.broadcast %c2_i32_118 : i32 to vector<8x1xi32>
    %438 = arith.select %436, %437, %429 : vector<8x1xi1>, vector<8x1xi32>
    %c0_i32_119 = arith.constant 0 : i32
    %439 = vector.broadcast %c0_i32_119 : i32 to vector<8x1xi32>
    %440 = arith.cmpi eq, %438, %439 : vector<8x1xi32>
    %441 = arith.extui %440 : vector<8x1xi1> to vector<8x1xi32>
    %442 = arith.sitofp %441 : vector<8x1xi32> to vector<8x1xf32>
    %cst_120 = arith.constant dense<0.000000e+00> : vector<1xf32>
    %443 = vector.multi_reduction <add>, %442, %cst_120 [0] : vector<8x1xf32> to vector<1xf32>
    %444 = vector.shape_cast %443 : vector<1xf32> to vector<1x1xf32>
    %cst_121 = arith.constant 0.000000e+00 : f32
    %445 = vector.shape_cast %440 : vector<8x1xi1> to vector<8x1xi1>
    %446 = vector.broadcast %445 : vector<8x1xi1> to vector<8x128xi1>
    %447 = vector.broadcast %cst_121 : f32 to vector<8x128xf32>
    %448 = arith.select %446, %25, %447 : vector<8x128xi1>, vector<8x128xf32>
    %cst_122 = arith.constant dense<0.000000e+00> : vector<128xf32>
    %449 = vector.multi_reduction <add>, %448, %cst_122 [0] : vector<8x128xf32> to vector<128xf32>
    %450 = vector.shape_cast %449 : vector<128xf32> to vector<1x128xf32>
    %cst_123 = arith.constant 0.000000e+00 : f32
    %451 = vector.broadcast %cst_123 : f32 to vector<1x1xf32>
    %452 = arith.cmpf ogt, %444, %451 : vector<1x1xf32>
    %cst_124 = arith.constant 1.000000e+00 : f32
    %453 = vector.broadcast %cst_124 : f32 to vector<1x1xf32>
    %454 = arith.maximumf %444, %453 : vector<1x1xf32>
    %455 = vector.broadcast %454 : vector<1x1xf32> to vector<1x128xf32>
    %456 = arith.divf %450, %455 : vector<1x128xf32>
    %457 = vector.extract_strided_slice %412 {offsets = [0, 0], sizes = [1, 128], strides = [1, 1]} : vector<3x128xf32> to vector<1x128xf32>
    %458 = vector.shape_cast %452 : vector<1x1xi1> to vector<1x1xi1>
    %459 = vector.broadcast %458 : vector<1x1xi1> to vector<1x128xi1>
    %460 = arith.select %459, %456, %457 : vector<1x128xi1>, vector<1x128xf32>
    %c1_i32_125 = arith.constant 1 : i32
    %461 = vector.broadcast %c1_i32_125 : i32 to vector<8x1xi32>
    %462 = arith.cmpi eq, %438, %461 : vector<8x1xi32>
    %463 = arith.extui %462 : vector<8x1xi1> to vector<8x1xi32>
    %464 = arith.sitofp %463 : vector<8x1xi32> to vector<8x1xf32>
    %cst_126 = arith.constant dense<0.000000e+00> : vector<1xf32>
    %465 = vector.multi_reduction <add>, %464, %cst_126 [0] : vector<8x1xf32> to vector<1xf32>
    %466 = vector.shape_cast %465 : vector<1xf32> to vector<1x1xf32>
    %cst_127 = arith.constant 0.000000e+00 : f32
    %467 = vector.shape_cast %462 : vector<8x1xi1> to vector<8x1xi1>
    %468 = vector.broadcast %467 : vector<8x1xi1> to vector<8x128xi1>
    %469 = vector.broadcast %cst_127 : f32 to vector<8x128xf32>
    %470 = arith.select %468, %25, %469 : vector<8x128xi1>, vector<8x128xf32>
    %cst_128 = arith.constant dense<0.000000e+00> : vector<128xf32>
    %471 = vector.multi_reduction <add>, %470, %cst_128 [0] : vector<8x128xf32> to vector<128xf32>
    %472 = vector.shape_cast %471 : vector<128xf32> to vector<1x128xf32>
    %cst_129 = arith.constant 0.000000e+00 : f32
    %473 = vector.broadcast %cst_129 : f32 to vector<1x1xf32>
    %474 = arith.cmpf ogt, %466, %473 : vector<1x1xf32>
    %cst_130 = arith.constant 1.000000e+00 : f32
    %475 = vector.broadcast %cst_130 : f32 to vector<1x1xf32>
    %476 = arith.maximumf %466, %475 : vector<1x1xf32>
    %477 = vector.broadcast %476 : vector<1x1xf32> to vector<1x128xf32>
    %478 = arith.divf %472, %477 : vector<1x128xf32>
    %479 = vector.extract_strided_slice %412 {offsets = [1, 0], sizes = [1, 128], strides = [1, 1]} : vector<3x128xf32> to vector<1x128xf32>
    %480 = vector.shape_cast %474 : vector<1x1xi1> to vector<1x1xi1>
    %481 = vector.broadcast %480 : vector<1x1xi1> to vector<1x128xi1>
    %482 = arith.select %481, %478, %479 : vector<1x128xi1>, vector<1x128xf32>
    %c2_i32_131 = arith.constant 2 : i32
    %483 = vector.broadcast %c2_i32_131 : i32 to vector<8x1xi32>
    %484 = arith.cmpi eq, %438, %483 : vector<8x1xi32>
    %485 = arith.extui %484 : vector<8x1xi1> to vector<8x1xi32>
    %486 = arith.sitofp %485 : vector<8x1xi32> to vector<8x1xf32>
    %cst_132 = arith.constant dense<0.000000e+00> : vector<1xf32>
    %487 = vector.multi_reduction <add>, %486, %cst_132 [0] : vector<8x1xf32> to vector<1xf32>
    %488 = vector.shape_cast %487 : vector<1xf32> to vector<1x1xf32>
    %cst_133 = arith.constant 0.000000e+00 : f32
    %489 = vector.shape_cast %484 : vector<8x1xi1> to vector<8x1xi1>
    %490 = vector.broadcast %489 : vector<8x1xi1> to vector<8x128xi1>
    %491 = vector.broadcast %cst_133 : f32 to vector<8x128xf32>
    %492 = arith.select %490, %25, %491 : vector<8x128xi1>, vector<8x128xf32>
    %cst_134 = arith.constant dense<0.000000e+00> : vector<128xf32>
    %493 = vector.multi_reduction <add>, %492, %cst_134 [0] : vector<8x128xf32> to vector<128xf32>
    %494 = vector.shape_cast %493 : vector<128xf32> to vector<1x128xf32>
    %cst_135 = arith.constant 0.000000e+00 : f32
    %495 = vector.broadcast %cst_135 : f32 to vector<1x1xf32>
    %496 = arith.cmpf ogt, %488, %495 : vector<1x1xf32>
    %cst_136 = arith.constant 1.000000e+00 : f32
    %497 = vector.broadcast %cst_136 : f32 to vector<1x1xf32>
    %498 = arith.maximumf %488, %497 : vector<1x1xf32>
    %499 = vector.broadcast %498 : vector<1x1xf32> to vector<1x128xf32>
    %500 = arith.divf %494, %499 : vector<1x128xf32>
    %501 = vector.extract_strided_slice %412 {offsets = [2, 0], sizes = [1, 128], strides = [1, 1]} : vector<3x128xf32> to vector<1x128xf32>
    %502 = vector.shape_cast %496 : vector<1x1xi1> to vector<1x1xi1>
    %503 = vector.broadcast %502 : vector<1x1xi1> to vector<1x128xi1>
    %504 = arith.select %503, %500, %501 : vector<1x128xi1>, vector<1x128xf32>
    %505 = tpu.concatenate %460, %482, %504 in 0 : vector<1x128xf32>, vector<1x128xf32>, vector<1x128xf32> -> vector<3x128xf32>
    %506 = vector.extract_strided_slice %505 {offsets = [0, 0], sizes = [1, 128], strides = [1, 1]} : vector<3x128xf32> to vector<1x128xf32>
    %507 = vector.broadcast %506 : vector<1x128xf32> to vector<8x128xf32>
    %508 = arith.subf %25, %507 : vector<8x128xf32>
    %509 = arith.mulf %508, %508 : vector<8x128xf32>
    %cst_137 = arith.constant dense<0.000000e+00> : vector<8xf32>
    %510 = vector.multi_reduction <add>, %509, %cst_137 [1] : vector<8x128xf32> to vector<8xf32>
    %511 = vector.shape_cast %510 : vector<8xf32> to vector<8x1xf32>
    %c0_i32_138 = arith.constant 0 : i32
    %512 = vector.broadcast %c0_i32_138 : i32 to vector<8x1xi32>
    %513 = vector.extract_strided_slice %505 {offsets = [1, 0], sizes = [1, 128], strides = [1, 1]} : vector<3x128xf32> to vector<1x128xf32>
    %514 = vector.broadcast %513 : vector<1x128xf32> to vector<8x128xf32>
    %515 = arith.subf %25, %514 : vector<8x128xf32>
    %516 = arith.mulf %515, %515 : vector<8x128xf32>
    %cst_139 = arith.constant dense<0.000000e+00> : vector<8xf32>
    %517 = vector.multi_reduction <add>, %516, %cst_139 [1] : vector<8x128xf32> to vector<8xf32>
    %518 = vector.shape_cast %517 : vector<8xf32> to vector<8x1xf32>
    %519 = arith.cmpf olt, %518, %511 : vector<8x1xf32>
    %520 = arith.select %519, %518, %511 : vector<8x1xi1>, vector<8x1xf32>
    %c1_i32_140 = arith.constant 1 : i32
    %521 = vector.broadcast %c1_i32_140 : i32 to vector<8x1xi32>
    %522 = arith.select %519, %521, %512 : vector<8x1xi1>, vector<8x1xi32>
    %523 = vector.extract_strided_slice %505 {offsets = [2, 0], sizes = [1, 128], strides = [1, 1]} : vector<3x128xf32> to vector<1x128xf32>
    %524 = vector.broadcast %523 : vector<1x128xf32> to vector<8x128xf32>
    %525 = arith.subf %25, %524 : vector<8x128xf32>
    %526 = arith.mulf %525, %525 : vector<8x128xf32>
    %cst_141 = arith.constant dense<0.000000e+00> : vector<8xf32>
    %527 = vector.multi_reduction <add>, %526, %cst_141 [1] : vector<8x128xf32> to vector<8xf32>
    %528 = vector.shape_cast %527 : vector<8xf32> to vector<8x1xf32>
    %529 = arith.cmpf olt, %528, %520 : vector<8x1xf32>
    %c2_i32_142 = arith.constant 2 : i32
    %530 = vector.broadcast %c2_i32_142 : i32 to vector<8x1xi32>
    %531 = arith.select %529, %530, %522 : vector<8x1xi1>, vector<8x1xi32>
    %c0_i32_143 = arith.constant 0 : i32
    %532 = vector.broadcast %c0_i32_143 : i32 to vector<8x1xi32>
    %533 = arith.cmpi eq, %531, %532 : vector<8x1xi32>
    %534 = arith.extui %533 : vector<8x1xi1> to vector<8x1xi32>
    %535 = arith.sitofp %534 : vector<8x1xi32> to vector<8x1xf32>
    %cst_144 = arith.constant dense<0.000000e+00> : vector<1xf32>
    %536 = vector.multi_reduction <add>, %535, %cst_144 [0] : vector<8x1xf32> to vector<1xf32>
    %537 = vector.shape_cast %536 : vector<1xf32> to vector<1x1xf32>
    %cst_145 = arith.constant 0.000000e+00 : f32
    %538 = vector.shape_cast %533 : vector<8x1xi1> to vector<8x1xi1>
    %539 = vector.broadcast %538 : vector<8x1xi1> to vector<8x128xi1>
    %540 = vector.broadcast %cst_145 : f32 to vector<8x128xf32>
    %541 = arith.select %539, %25, %540 : vector<8x128xi1>, vector<8x128xf32>
    %cst_146 = arith.constant dense<0.000000e+00> : vector<128xf32>
    %542 = vector.multi_reduction <add>, %541, %cst_146 [0] : vector<8x128xf32> to vector<128xf32>
    %543 = vector.shape_cast %542 : vector<128xf32> to vector<1x128xf32>
    %cst_147 = arith.constant 0.000000e+00 : f32
    %544 = vector.broadcast %cst_147 : f32 to vector<1x1xf32>
    %545 = arith.cmpf ogt, %537, %544 : vector<1x1xf32>
    %cst_148 = arith.constant 1.000000e+00 : f32
    %546 = vector.broadcast %cst_148 : f32 to vector<1x1xf32>
    %547 = arith.maximumf %537, %546 : vector<1x1xf32>
    %548 = vector.broadcast %547 : vector<1x1xf32> to vector<1x128xf32>
    %549 = arith.divf %543, %548 : vector<1x128xf32>
    %550 = vector.extract_strided_slice %505 {offsets = [0, 0], sizes = [1, 128], strides = [1, 1]} : vector<3x128xf32> to vector<1x128xf32>
    %551 = vector.shape_cast %545 : vector<1x1xi1> to vector<1x1xi1>
    %552 = vector.broadcast %551 : vector<1x1xi1> to vector<1x128xi1>
    %553 = arith.select %552, %549, %550 : vector<1x128xi1>, vector<1x128xf32>
    %c1_i32_149 = arith.constant 1 : i32
    %554 = vector.broadcast %c1_i32_149 : i32 to vector<8x1xi32>
    %555 = arith.cmpi eq, %531, %554 : vector<8x1xi32>
    %556 = arith.extui %555 : vector<8x1xi1> to vector<8x1xi32>
    %557 = arith.sitofp %556 : vector<8x1xi32> to vector<8x1xf32>
    %cst_150 = arith.constant dense<0.000000e+00> : vector<1xf32>
    %558 = vector.multi_reduction <add>, %557, %cst_150 [0] : vector<8x1xf32> to vector<1xf32>
    %559 = vector.shape_cast %558 : vector<1xf32> to vector<1x1xf32>
    %cst_151 = arith.constant 0.000000e+00 : f32
    %560 = vector.shape_cast %555 : vector<8x1xi1> to vector<8x1xi1>
    %561 = vector.broadcast %560 : vector<8x1xi1> to vector<8x128xi1>
    %562 = vector.broadcast %cst_151 : f32 to vector<8x128xf32>
    %563 = arith.select %561, %25, %562 : vector<8x128xi1>, vector<8x128xf32>
    %cst_152 = arith.constant dense<0.000000e+00> : vector<128xf32>
    %564 = vector.multi_reduction <add>, %563, %cst_152 [0] : vector<8x128xf32> to vector<128xf32>
    %565 = vector.shape_cast %564 : vector<128xf32> to vector<1x128xf32>
    %cst_153 = arith.constant 0.000000e+00 : f32
    %566 = vector.broadcast %cst_153 : f32 to vector<1x1xf32>
    %567 = arith.cmpf ogt, %559, %566 : vector<1x1xf32>
    %cst_154 = arith.constant 1.000000e+00 : f32
    %568 = vector.broadcast %cst_154 : f32 to vector<1x1xf32>
    %569 = arith.maximumf %559, %568 : vector<1x1xf32>
    %570 = vector.broadcast %569 : vector<1x1xf32> to vector<1x128xf32>
    %571 = arith.divf %565, %570 : vector<1x128xf32>
    %572 = vector.extract_strided_slice %505 {offsets = [1, 0], sizes = [1, 128], strides = [1, 1]} : vector<3x128xf32> to vector<1x128xf32>
    %573 = vector.shape_cast %567 : vector<1x1xi1> to vector<1x1xi1>
    %574 = vector.broadcast %573 : vector<1x1xi1> to vector<1x128xi1>
    %575 = arith.select %574, %571, %572 : vector<1x128xi1>, vector<1x128xf32>
    %c2_i32_155 = arith.constant 2 : i32
    %576 = vector.broadcast %c2_i32_155 : i32 to vector<8x1xi32>
    %577 = arith.cmpi eq, %531, %576 : vector<8x1xi32>
    %578 = arith.extui %577 : vector<8x1xi1> to vector<8x1xi32>
    %579 = arith.sitofp %578 : vector<8x1xi32> to vector<8x1xf32>
    %cst_156 = arith.constant dense<0.000000e+00> : vector<1xf32>
    %580 = vector.multi_reduction <add>, %579, %cst_156 [0] : vector<8x1xf32> to vector<1xf32>
    %581 = vector.shape_cast %580 : vector<1xf32> to vector<1x1xf32>
    %cst_157 = arith.constant 0.000000e+00 : f32
    %582 = vector.shape_cast %577 : vector<8x1xi1> to vector<8x1xi1>
    %583 = vector.broadcast %582 : vector<8x1xi1> to vector<8x128xi1>
    %584 = vector.broadcast %cst_157 : f32 to vector<8x128xf32>
    %585 = arith.select %583, %25, %584 : vector<8x128xi1>, vector<8x128xf32>
    %cst_158 = arith.constant dense<0.000000e+00> : vector<128xf32>
    %586 = vector.multi_reduction <add>, %585, %cst_158 [0] : vector<8x128xf32> to vector<128xf32>
    %587 = vector.shape_cast %586 : vector<128xf32> to vector<1x128xf32>
    %cst_159 = arith.constant 0.000000e+00 : f32
    %588 = vector.broadcast %cst_159 : f32 to vector<1x1xf32>
    %589 = arith.cmpf ogt, %581, %588 : vector<1x1xf32>
    %cst_160 = arith.constant 1.000000e+00 : f32
    %590 = vector.broadcast %cst_160 : f32 to vector<1x1xf32>
    %591 = arith.maximumf %581, %590 : vector<1x1xf32>
    %592 = vector.broadcast %591 : vector<1x1xf32> to vector<1x128xf32>
    %593 = arith.divf %587, %592 : vector<1x128xf32>
    %594 = vector.extract_strided_slice %505 {offsets = [2, 0], sizes = [1, 128], strides = [1, 1]} : vector<3x128xf32> to vector<1x128xf32>
    %595 = vector.shape_cast %589 : vector<1x1xi1> to vector<1x1xi1>
    %596 = vector.broadcast %595 : vector<1x1xi1> to vector<1x128xi1>
    %597 = arith.select %596, %593, %594 : vector<1x128xi1>, vector<1x128xf32>
    %598 = tpu.concatenate %553, %575, %597 in 0 : vector<1x128xf32>, vector<1x128xf32>, vector<1x128xf32> -> vector<3x128xf32>
    %599 = vector.extract_strided_slice %598 {offsets = [0, 0], sizes = [1, 128], strides = [1, 1]} : vector<3x128xf32> to vector<1x128xf32>
    %600 = vector.broadcast %599 : vector<1x128xf32> to vector<8x128xf32>
    %601 = arith.subf %25, %600 : vector<8x128xf32>
    %602 = arith.mulf %601, %601 : vector<8x128xf32>
    %cst_161 = arith.constant dense<0.000000e+00> : vector<8xf32>
    %603 = vector.multi_reduction <add>, %602, %cst_161 [1] : vector<8x128xf32> to vector<8xf32>
    %604 = vector.shape_cast %603 : vector<8xf32> to vector<8x1xf32>
    %c0_i32_162 = arith.constant 0 : i32
    %605 = vector.broadcast %c0_i32_162 : i32 to vector<8x1xi32>
    %606 = vector.extract_strided_slice %598 {offsets = [1, 0], sizes = [1, 128], strides = [1, 1]} : vector<3x128xf32> to vector<1x128xf32>
    %607 = vector.broadcast %606 : vector<1x128xf32> to vector<8x128xf32>
    %608 = arith.subf %25, %607 : vector<8x128xf32>
    %609 = arith.mulf %608, %608 : vector<8x128xf32>
    %cst_163 = arith.constant dense<0.000000e+00> : vector<8xf32>
    %610 = vector.multi_reduction <add>, %609, %cst_163 [1] : vector<8x128xf32> to vector<8xf32>
    %611 = vector.shape_cast %610 : vector<8xf32> to vector<8x1xf32>
    %612 = arith.cmpf olt, %611, %604 : vector<8x1xf32>
    %613 = arith.select %612, %611, %604 : vector<8x1xi1>, vector<8x1xf32>
    %c1_i32_164 = arith.constant 1 : i32
    %614 = vector.broadcast %c1_i32_164 : i32 to vector<8x1xi32>
    %615 = arith.select %612, %614, %605 : vector<8x1xi1>, vector<8x1xi32>
    %616 = vector.extract_strided_slice %598 {offsets = [2, 0], sizes = [1, 128], strides = [1, 1]} : vector<3x128xf32> to vector<1x128xf32>
    %617 = vector.broadcast %616 : vector<1x128xf32> to vector<8x128xf32>
    %618 = arith.subf %25, %617 : vector<8x128xf32>
    %619 = arith.mulf %618, %618 : vector<8x128xf32>
    %cst_165 = arith.constant dense<0.000000e+00> : vector<8xf32>
    %620 = vector.multi_reduction <add>, %619, %cst_165 [1] : vector<8x128xf32> to vector<8xf32>
    %621 = vector.shape_cast %620 : vector<8xf32> to vector<8x1xf32>
    %622 = arith.cmpf olt, %621, %613 : vector<8x1xf32>
    %c2_i32_166 = arith.constant 2 : i32
    %623 = vector.broadcast %c2_i32_166 : i32 to vector<8x1xi32>
    %624 = arith.select %622, %623, %615 : vector<8x1xi1>, vector<8x1xi32>
    %c0_i32_167 = arith.constant 0 : i32
    %625 = vector.broadcast %c0_i32_167 : i32 to vector<8x1xi32>
    %626 = arith.cmpi eq, %624, %625 : vector<8x1xi32>
    %627 = arith.extui %626 : vector<8x1xi1> to vector<8x1xi32>
    %628 = arith.sitofp %627 : vector<8x1xi32> to vector<8x1xf32>
    %cst_168 = arith.constant dense<0.000000e+00> : vector<1xf32>
    %629 = vector.multi_reduction <add>, %628, %cst_168 [0] : vector<8x1xf32> to vector<1xf32>
    %630 = vector.shape_cast %629 : vector<1xf32> to vector<1x1xf32>
    %cst_169 = arith.constant 0.000000e+00 : f32
    %631 = vector.shape_cast %626 : vector<8x1xi1> to vector<8x1xi1>
    %632 = vector.broadcast %631 : vector<8x1xi1> to vector<8x128xi1>
    %633 = vector.broadcast %cst_169 : f32 to vector<8x128xf32>
    %634 = arith.select %632, %25, %633 : vector<8x128xi1>, vector<8x128xf32>
    %cst_170 = arith.constant dense<0.000000e+00> : vector<128xf32>
    %635 = vector.multi_reduction <add>, %634, %cst_170 [0] : vector<8x128xf32> to vector<128xf32>
    %636 = vector.shape_cast %635 : vector<128xf32> to vector<1x128xf32>
    %cst_171 = arith.constant 0.000000e+00 : f32
    %637 = vector.broadcast %cst_171 : f32 to vector<1x1xf32>
    %638 = arith.cmpf ogt, %630, %637 : vector<1x1xf32>
    %cst_172 = arith.constant 1.000000e+00 : f32
    %639 = vector.broadcast %cst_172 : f32 to vector<1x1xf32>
    %640 = arith.maximumf %630, %639 : vector<1x1xf32>
    %641 = vector.broadcast %640 : vector<1x1xf32> to vector<1x128xf32>
    %642 = arith.divf %636, %641 : vector<1x128xf32>
    %643 = vector.extract_strided_slice %598 {offsets = [0, 0], sizes = [1, 128], strides = [1, 1]} : vector<3x128xf32> to vector<1x128xf32>
    %644 = vector.shape_cast %638 : vector<1x1xi1> to vector<1x1xi1>
    %645 = vector.broadcast %644 : vector<1x1xi1> to vector<1x128xi1>
    %646 = arith.select %645, %642, %643 : vector<1x128xi1>, vector<1x128xf32>
    %c1_i32_173 = arith.constant 1 : i32
    %647 = vector.broadcast %c1_i32_173 : i32 to vector<8x1xi32>
    %648 = arith.cmpi eq, %624, %647 : vector<8x1xi32>
    %649 = arith.extui %648 : vector<8x1xi1> to vector<8x1xi32>
    %650 = arith.sitofp %649 : vector<8x1xi32> to vector<8x1xf32>
    %cst_174 = arith.constant dense<0.000000e+00> : vector<1xf32>
    %651 = vector.multi_reduction <add>, %650, %cst_174 [0] : vector<8x1xf32> to vector<1xf32>
    %652 = vector.shape_cast %651 : vector<1xf32> to vector<1x1xf32>
    %cst_175 = arith.constant 0.000000e+00 : f32
    %653 = vector.shape_cast %648 : vector<8x1xi1> to vector<8x1xi1>
    %654 = vector.broadcast %653 : vector<8x1xi1> to vector<8x128xi1>
    %655 = vector.broadcast %cst_175 : f32 to vector<8x128xf32>
    %656 = arith.select %654, %25, %655 : vector<8x128xi1>, vector<8x128xf32>
    %cst_176 = arith.constant dense<0.000000e+00> : vector<128xf32>
    %657 = vector.multi_reduction <add>, %656, %cst_176 [0] : vector<8x128xf32> to vector<128xf32>
    %658 = vector.shape_cast %657 : vector<128xf32> to vector<1x128xf32>
    %cst_177 = arith.constant 0.000000e+00 : f32
    %659 = vector.broadcast %cst_177 : f32 to vector<1x1xf32>
    %660 = arith.cmpf ogt, %652, %659 : vector<1x1xf32>
    %cst_178 = arith.constant 1.000000e+00 : f32
    %661 = vector.broadcast %cst_178 : f32 to vector<1x1xf32>
    %662 = arith.maximumf %652, %661 : vector<1x1xf32>
    %663 = vector.broadcast %662 : vector<1x1xf32> to vector<1x128xf32>
    %664 = arith.divf %658, %663 : vector<1x128xf32>
    %665 = vector.extract_strided_slice %598 {offsets = [1, 0], sizes = [1, 128], strides = [1, 1]} : vector<3x128xf32> to vector<1x128xf32>
    %666 = vector.shape_cast %660 : vector<1x1xi1> to vector<1x1xi1>
    %667 = vector.broadcast %666 : vector<1x1xi1> to vector<1x128xi1>
    %668 = arith.select %667, %664, %665 : vector<1x128xi1>, vector<1x128xf32>
    %c2_i32_179 = arith.constant 2 : i32
    %669 = vector.broadcast %c2_i32_179 : i32 to vector<8x1xi32>
    %670 = arith.cmpi eq, %624, %669 : vector<8x1xi32>
    %671 = arith.extui %670 : vector<8x1xi1> to vector<8x1xi32>
    %672 = arith.sitofp %671 : vector<8x1xi32> to vector<8x1xf32>
    %cst_180 = arith.constant dense<0.000000e+00> : vector<1xf32>
    %673 = vector.multi_reduction <add>, %672, %cst_180 [0] : vector<8x1xf32> to vector<1xf32>
    %674 = vector.shape_cast %673 : vector<1xf32> to vector<1x1xf32>
    %cst_181 = arith.constant 0.000000e+00 : f32
    %675 = vector.shape_cast %670 : vector<8x1xi1> to vector<8x1xi1>
    %676 = vector.broadcast %675 : vector<8x1xi1> to vector<8x128xi1>
    %677 = vector.broadcast %cst_181 : f32 to vector<8x128xf32>
    %678 = arith.select %676, %25, %677 : vector<8x128xi1>, vector<8x128xf32>
    %cst_182 = arith.constant dense<0.000000e+00> : vector<128xf32>
    %679 = vector.multi_reduction <add>, %678, %cst_182 [0] : vector<8x128xf32> to vector<128xf32>
    %680 = vector.shape_cast %679 : vector<128xf32> to vector<1x128xf32>
    %cst_183 = arith.constant 0.000000e+00 : f32
    %681 = vector.broadcast %cst_183 : f32 to vector<1x1xf32>
    %682 = arith.cmpf ogt, %674, %681 : vector<1x1xf32>
    %cst_184 = arith.constant 1.000000e+00 : f32
    %683 = vector.broadcast %cst_184 : f32 to vector<1x1xf32>
    %684 = arith.maximumf %674, %683 : vector<1x1xf32>
    %685 = vector.broadcast %684 : vector<1x1xf32> to vector<1x128xf32>
    %686 = arith.divf %680, %685 : vector<1x128xf32>
    %687 = vector.extract_strided_slice %598 {offsets = [2, 0], sizes = [1, 128], strides = [1, 1]} : vector<3x128xf32> to vector<1x128xf32>
    %688 = vector.shape_cast %682 : vector<1x1xi1> to vector<1x1xi1>
    %689 = vector.broadcast %688 : vector<1x1xi1> to vector<1x128xi1>
    %690 = arith.select %689, %686, %687 : vector<1x128xi1>, vector<1x128xf32>
    %691 = tpu.concatenate %646, %668, %690 in 0 : vector<1x128xf32>, vector<1x128xf32>, vector<1x128xf32> -> vector<3x128xf32>
    %692 = vector.extract_strided_slice %691 {offsets = [0, 0], sizes = [1, 128], strides = [1, 1]} : vector<3x128xf32> to vector<1x128xf32>
    %693 = vector.broadcast %692 : vector<1x128xf32> to vector<8x128xf32>
    %694 = arith.subf %25, %693 : vector<8x128xf32>
    %695 = arith.mulf %694, %694 : vector<8x128xf32>
    %cst_185 = arith.constant dense<0.000000e+00> : vector<8xf32>
    %696 = vector.multi_reduction <add>, %695, %cst_185 [1] : vector<8x128xf32> to vector<8xf32>
    %697 = vector.shape_cast %696 : vector<8xf32> to vector<8x1xf32>
    %c0_i32_186 = arith.constant 0 : i32
    %698 = vector.broadcast %c0_i32_186 : i32 to vector<8x1xi32>
    %699 = vector.extract_strided_slice %691 {offsets = [1, 0], sizes = [1, 128], strides = [1, 1]} : vector<3x128xf32> to vector<1x128xf32>
    %700 = vector.broadcast %699 : vector<1x128xf32> to vector<8x128xf32>
    %701 = arith.subf %25, %700 : vector<8x128xf32>
    %702 = arith.mulf %701, %701 : vector<8x128xf32>
    %cst_187 = arith.constant dense<0.000000e+00> : vector<8xf32>
    %703 = vector.multi_reduction <add>, %702, %cst_187 [1] : vector<8x128xf32> to vector<8xf32>
    %704 = vector.shape_cast %703 : vector<8xf32> to vector<8x1xf32>
    %705 = arith.cmpf olt, %704, %697 : vector<8x1xf32>
    %706 = arith.select %705, %704, %697 : vector<8x1xi1>, vector<8x1xf32>
    %c1_i32_188 = arith.constant 1 : i32
    %707 = vector.broadcast %c1_i32_188 : i32 to vector<8x1xi32>
    %708 = arith.select %705, %707, %698 : vector<8x1xi1>, vector<8x1xi32>
    %709 = vector.extract_strided_slice %691 {offsets = [2, 0], sizes = [1, 128], strides = [1, 1]} : vector<3x128xf32> to vector<1x128xf32>
    %710 = vector.broadcast %709 : vector<1x128xf32> to vector<8x128xf32>
    %711 = arith.subf %25, %710 : vector<8x128xf32>
    %712 = arith.mulf %711, %711 : vector<8x128xf32>
    %cst_189 = arith.constant dense<0.000000e+00> : vector<8xf32>
    %713 = vector.multi_reduction <add>, %712, %cst_189 [1] : vector<8x128xf32> to vector<8xf32>
    %714 = vector.shape_cast %713 : vector<8xf32> to vector<8x1xf32>
    %715 = arith.cmpf olt, %714, %706 : vector<8x1xf32>
    %c2_i32_190 = arith.constant 2 : i32
    %716 = vector.broadcast %c2_i32_190 : i32 to vector<8x1xi32>
    %717 = arith.select %715, %716, %708 : vector<8x1xi1>, vector<8x1xi32>
    %c0_i32_191 = arith.constant 0 : i32
    %718 = vector.broadcast %c0_i32_191 : i32 to vector<8x1xi32>
    %719 = arith.cmpi eq, %717, %718 : vector<8x1xi32>
    %720 = arith.extui %719 : vector<8x1xi1> to vector<8x1xi32>
    %721 = arith.sitofp %720 : vector<8x1xi32> to vector<8x1xf32>
    %cst_192 = arith.constant dense<0.000000e+00> : vector<1xf32>
    %722 = vector.multi_reduction <add>, %721, %cst_192 [0] : vector<8x1xf32> to vector<1xf32>
    %723 = vector.shape_cast %722 : vector<1xf32> to vector<1x1xf32>
    %cst_193 = arith.constant 0.000000e+00 : f32
    %724 = vector.shape_cast %719 : vector<8x1xi1> to vector<8x1xi1>
    %725 = vector.broadcast %724 : vector<8x1xi1> to vector<8x128xi1>
    %726 = vector.broadcast %cst_193 : f32 to vector<8x128xf32>
    %727 = arith.select %725, %25, %726 : vector<8x128xi1>, vector<8x128xf32>
    %cst_194 = arith.constant dense<0.000000e+00> : vector<128xf32>
    %728 = vector.multi_reduction <add>, %727, %cst_194 [0] : vector<8x128xf32> to vector<128xf32>
    %729 = vector.shape_cast %728 : vector<128xf32> to vector<1x128xf32>
    %cst_195 = arith.constant 0.000000e+00 : f32
    %730 = vector.broadcast %cst_195 : f32 to vector<1x1xf32>
    %731 = arith.cmpf ogt, %723, %730 : vector<1x1xf32>
    %cst_196 = arith.constant 1.000000e+00 : f32
    %732 = vector.broadcast %cst_196 : f32 to vector<1x1xf32>
    %733 = arith.maximumf %723, %732 : vector<1x1xf32>
    %734 = vector.broadcast %733 : vector<1x1xf32> to vector<1x128xf32>
    %735 = arith.divf %729, %734 : vector<1x128xf32>
    %736 = vector.extract_strided_slice %691 {offsets = [0, 0], sizes = [1, 128], strides = [1, 1]} : vector<3x128xf32> to vector<1x128xf32>
    %737 = vector.shape_cast %731 : vector<1x1xi1> to vector<1x1xi1>
    %738 = vector.broadcast %737 : vector<1x1xi1> to vector<1x128xi1>
    %739 = arith.select %738, %735, %736 : vector<1x128xi1>, vector<1x128xf32>
    %c1_i32_197 = arith.constant 1 : i32
    %740 = vector.broadcast %c1_i32_197 : i32 to vector<8x1xi32>
    %741 = arith.cmpi eq, %717, %740 : vector<8x1xi32>
    %742 = arith.extui %741 : vector<8x1xi1> to vector<8x1xi32>
    %743 = arith.sitofp %742 : vector<8x1xi32> to vector<8x1xf32>
    %cst_198 = arith.constant dense<0.000000e+00> : vector<1xf32>
    %744 = vector.multi_reduction <add>, %743, %cst_198 [0] : vector<8x1xf32> to vector<1xf32>
    %745 = vector.shape_cast %744 : vector<1xf32> to vector<1x1xf32>
    %cst_199 = arith.constant 0.000000e+00 : f32
    %746 = vector.shape_cast %741 : vector<8x1xi1> to vector<8x1xi1>
    %747 = vector.broadcast %746 : vector<8x1xi1> to vector<8x128xi1>
    %748 = vector.broadcast %cst_199 : f32 to vector<8x128xf32>
    %749 = arith.select %747, %25, %748 : vector<8x128xi1>, vector<8x128xf32>
    %cst_200 = arith.constant dense<0.000000e+00> : vector<128xf32>
    %750 = vector.multi_reduction <add>, %749, %cst_200 [0] : vector<8x128xf32> to vector<128xf32>
    %751 = vector.shape_cast %750 : vector<128xf32> to vector<1x128xf32>
    %cst_201 = arith.constant 0.000000e+00 : f32
    %752 = vector.broadcast %cst_201 : f32 to vector<1x1xf32>
    %753 = arith.cmpf ogt, %745, %752 : vector<1x1xf32>
    %cst_202 = arith.constant 1.000000e+00 : f32
    %754 = vector.broadcast %cst_202 : f32 to vector<1x1xf32>
    %755 = arith.maximumf %745, %754 : vector<1x1xf32>
    %756 = vector.broadcast %755 : vector<1x1xf32> to vector<1x128xf32>
    %757 = arith.divf %751, %756 : vector<1x128xf32>
    %758 = vector.extract_strided_slice %691 {offsets = [1, 0], sizes = [1, 128], strides = [1, 1]} : vector<3x128xf32> to vector<1x128xf32>
    %759 = vector.shape_cast %753 : vector<1x1xi1> to vector<1x1xi1>
    %760 = vector.broadcast %759 : vector<1x1xi1> to vector<1x128xi1>
    %761 = arith.select %760, %757, %758 : vector<1x128xi1>, vector<1x128xf32>
    %c2_i32_203 = arith.constant 2 : i32
    %762 = vector.broadcast %c2_i32_203 : i32 to vector<8x1xi32>
    %763 = arith.cmpi eq, %717, %762 : vector<8x1xi32>
    %764 = arith.extui %763 : vector<8x1xi1> to vector<8x1xi32>
    %765 = arith.sitofp %764 : vector<8x1xi32> to vector<8x1xf32>
    %cst_204 = arith.constant dense<0.000000e+00> : vector<1xf32>
    %766 = vector.multi_reduction <add>, %765, %cst_204 [0] : vector<8x1xf32> to vector<1xf32>
    %767 = vector.shape_cast %766 : vector<1xf32> to vector<1x1xf32>
    %cst_205 = arith.constant 0.000000e+00 : f32
    %768 = vector.shape_cast %763 : vector<8x1xi1> to vector<8x1xi1>
    %769 = vector.broadcast %768 : vector<8x1xi1> to vector<8x128xi1>
    %770 = vector.broadcast %cst_205 : f32 to vector<8x128xf32>
    %771 = arith.select %769, %25, %770 : vector<8x128xi1>, vector<8x128xf32>
    %cst_206 = arith.constant dense<0.000000e+00> : vector<128xf32>
    %772 = vector.multi_reduction <add>, %771, %cst_206 [0] : vector<8x128xf32> to vector<128xf32>
    %773 = vector.shape_cast %772 : vector<128xf32> to vector<1x128xf32>
    %cst_207 = arith.constant 0.000000e+00 : f32
    %774 = vector.broadcast %cst_207 : f32 to vector<1x1xf32>
    %775 = arith.cmpf ogt, %767, %774 : vector<1x1xf32>
    %cst_208 = arith.constant 1.000000e+00 : f32
    %776 = vector.broadcast %cst_208 : f32 to vector<1x1xf32>
    %777 = arith.maximumf %767, %776 : vector<1x1xf32>
    %778 = vector.broadcast %777 : vector<1x1xf32> to vector<1x128xf32>
    %779 = arith.divf %773, %778 : vector<1x128xf32>
    %780 = vector.extract_strided_slice %691 {offsets = [2, 0], sizes = [1, 128], strides = [1, 1]} : vector<3x128xf32> to vector<1x128xf32>
    %781 = vector.shape_cast %775 : vector<1x1xi1> to vector<1x1xi1>
    %782 = vector.broadcast %781 : vector<1x1xi1> to vector<1x128xi1>
    %783 = arith.select %782, %779, %780 : vector<1x128xi1>, vector<1x128xf32>
    %784 = tpu.concatenate %739, %761, %783 in 0 : vector<1x128xf32>, vector<1x128xf32>, vector<1x128xf32> -> vector<3x128xf32>
    %785 = vector.extract_strided_slice %784 {offsets = [0, 0], sizes = [1, 128], strides = [1, 1]} : vector<3x128xf32> to vector<1x128xf32>
    %786 = vector.broadcast %785 : vector<1x128xf32> to vector<8x128xf32>
    %787 = arith.subf %25, %786 : vector<8x128xf32>
    %788 = arith.mulf %787, %787 : vector<8x128xf32>
    %cst_209 = arith.constant dense<0.000000e+00> : vector<8xf32>
    %789 = vector.multi_reduction <add>, %788, %cst_209 [1] : vector<8x128xf32> to vector<8xf32>
    %790 = vector.shape_cast %789 : vector<8xf32> to vector<8x1xf32>
    %c0_i32_210 = arith.constant 0 : i32
    %791 = vector.broadcast %c0_i32_210 : i32 to vector<8x1xi32>
    %792 = vector.extract_strided_slice %784 {offsets = [1, 0], sizes = [1, 128], strides = [1, 1]} : vector<3x128xf32> to vector<1x128xf32>
    %793 = vector.broadcast %792 : vector<1x128xf32> to vector<8x128xf32>
    %794 = arith.subf %25, %793 : vector<8x128xf32>
    %795 = arith.mulf %794, %794 : vector<8x128xf32>
    %cst_211 = arith.constant dense<0.000000e+00> : vector<8xf32>
    %796 = vector.multi_reduction <add>, %795, %cst_211 [1] : vector<8x128xf32> to vector<8xf32>
    %797 = vector.shape_cast %796 : vector<8xf32> to vector<8x1xf32>
    %798 = arith.cmpf olt, %797, %790 : vector<8x1xf32>
    %799 = arith.select %798, %797, %790 : vector<8x1xi1>, vector<8x1xf32>
    %c1_i32_212 = arith.constant 1 : i32
    %800 = vector.broadcast %c1_i32_212 : i32 to vector<8x1xi32>
    %801 = arith.select %798, %800, %791 : vector<8x1xi1>, vector<8x1xi32>
    %802 = vector.extract_strided_slice %784 {offsets = [2, 0], sizes = [1, 128], strides = [1, 1]} : vector<3x128xf32> to vector<1x128xf32>
    %803 = vector.broadcast %802 : vector<1x128xf32> to vector<8x128xf32>
    %804 = arith.subf %25, %803 : vector<8x128xf32>
    %805 = arith.mulf %804, %804 : vector<8x128xf32>
    %cst_213 = arith.constant dense<0.000000e+00> : vector<8xf32>
    %806 = vector.multi_reduction <add>, %805, %cst_213 [1] : vector<8x128xf32> to vector<8xf32>
    %807 = vector.shape_cast %806 : vector<8xf32> to vector<8x1xf32>
    %808 = arith.cmpf olt, %807, %799 : vector<8x1xf32>
    %c2_i32_214 = arith.constant 2 : i32
    %809 = vector.broadcast %c2_i32_214 : i32 to vector<8x1xi32>
    %810 = arith.select %808, %809, %801 : vector<8x1xi1>, vector<8x1xi32>
    %c0_i32_215 = arith.constant 0 : i32
    %811 = vector.broadcast %c0_i32_215 : i32 to vector<8x1xi32>
    %812 = arith.cmpi eq, %810, %811 : vector<8x1xi32>
    %813 = arith.extui %812 : vector<8x1xi1> to vector<8x1xi32>
    %814 = arith.sitofp %813 : vector<8x1xi32> to vector<8x1xf32>
    %cst_216 = arith.constant dense<0.000000e+00> : vector<1xf32>
    %815 = vector.multi_reduction <add>, %814, %cst_216 [0] : vector<8x1xf32> to vector<1xf32>
    %816 = vector.shape_cast %815 : vector<1xf32> to vector<1x1xf32>
    %cst_217 = arith.constant 0.000000e+00 : f32
    %817 = vector.shape_cast %812 : vector<8x1xi1> to vector<8x1xi1>
    %818 = vector.broadcast %817 : vector<8x1xi1> to vector<8x128xi1>
    %819 = vector.broadcast %cst_217 : f32 to vector<8x128xf32>
    %820 = arith.select %818, %25, %819 : vector<8x128xi1>, vector<8x128xf32>
    %cst_218 = arith.constant dense<0.000000e+00> : vector<128xf32>
    %821 = vector.multi_reduction <add>, %820, %cst_218 [0] : vector<8x128xf32> to vector<128xf32>
    %822 = vector.shape_cast %821 : vector<128xf32> to vector<1x128xf32>
    %cst_219 = arith.constant 0.000000e+00 : f32
    %823 = vector.broadcast %cst_219 : f32 to vector<1x1xf32>
    %824 = arith.cmpf ogt, %816, %823 : vector<1x1xf32>
    %cst_220 = arith.constant 1.000000e+00 : f32
    %825 = vector.broadcast %cst_220 : f32 to vector<1x1xf32>
    %826 = arith.maximumf %816, %825 : vector<1x1xf32>
    %827 = vector.broadcast %826 : vector<1x1xf32> to vector<1x128xf32>
    %828 = arith.divf %822, %827 : vector<1x128xf32>
    %829 = vector.extract_strided_slice %784 {offsets = [0, 0], sizes = [1, 128], strides = [1, 1]} : vector<3x128xf32> to vector<1x128xf32>
    %830 = vector.shape_cast %824 : vector<1x1xi1> to vector<1x1xi1>
    %831 = vector.broadcast %830 : vector<1x1xi1> to vector<1x128xi1>
    %832 = arith.select %831, %828, %829 : vector<1x128xi1>, vector<1x128xf32>
    %c1_i32_221 = arith.constant 1 : i32
    %833 = vector.broadcast %c1_i32_221 : i32 to vector<8x1xi32>
    %834 = arith.cmpi eq, %810, %833 : vector<8x1xi32>
    %835 = arith.extui %834 : vector<8x1xi1> to vector<8x1xi32>
    %836 = arith.sitofp %835 : vector<8x1xi32> to vector<8x1xf32>
    %cst_222 = arith.constant dense<0.000000e+00> : vector<1xf32>
    %837 = vector.multi_reduction <add>, %836, %cst_222 [0] : vector<8x1xf32> to vector<1xf32>
    %838 = vector.shape_cast %837 : vector<1xf32> to vector<1x1xf32>
    %cst_223 = arith.constant 0.000000e+00 : f32
    %839 = vector.shape_cast %834 : vector<8x1xi1> to vector<8x1xi1>
    %840 = vector.broadcast %839 : vector<8x1xi1> to vector<8x128xi1>
    %841 = vector.broadcast %cst_223 : f32 to vector<8x128xf32>
    %842 = arith.select %840, %25, %841 : vector<8x128xi1>, vector<8x128xf32>
    %cst_224 = arith.constant dense<0.000000e+00> : vector<128xf32>
    %843 = vector.multi_reduction <add>, %842, %cst_224 [0] : vector<8x128xf32> to vector<128xf32>
    %844 = vector.shape_cast %843 : vector<128xf32> to vector<1x128xf32>
    %cst_225 = arith.constant 0.000000e+00 : f32
    %845 = vector.broadcast %cst_225 : f32 to vector<1x1xf32>
    %846 = arith.cmpf ogt, %838, %845 : vector<1x1xf32>
    %cst_226 = arith.constant 1.000000e+00 : f32
    %847 = vector.broadcast %cst_226 : f32 to vector<1x1xf32>
    %848 = arith.maximumf %838, %847 : vector<1x1xf32>
    %849 = vector.broadcast %848 : vector<1x1xf32> to vector<1x128xf32>
    %850 = arith.divf %844, %849 : vector<1x128xf32>
    %851 = vector.extract_strided_slice %784 {offsets = [1, 0], sizes = [1, 128], strides = [1, 1]} : vector<3x128xf32> to vector<1x128xf32>
    %852 = vector.shape_cast %846 : vector<1x1xi1> to vector<1x1xi1>
    %853 = vector.broadcast %852 : vector<1x1xi1> to vector<1x128xi1>
    %854 = arith.select %853, %850, %851 : vector<1x128xi1>, vector<1x128xf32>
    %c2_i32_227 = arith.constant 2 : i32
    %855 = vector.broadcast %c2_i32_227 : i32 to vector<8x1xi32>
    %856 = arith.cmpi eq, %810, %855 : vector<8x1xi32>
    %857 = arith.extui %856 : vector<8x1xi1> to vector<8x1xi32>
    %858 = arith.sitofp %857 : vector<8x1xi32> to vector<8x1xf32>
    %cst_228 = arith.constant dense<0.000000e+00> : vector<1xf32>
    %859 = vector.multi_reduction <add>, %858, %cst_228 [0] : vector<8x1xf32> to vector<1xf32>
    %860 = vector.shape_cast %859 : vector<1xf32> to vector<1x1xf32>
    %cst_229 = arith.constant 0.000000e+00 : f32
    %861 = vector.shape_cast %856 : vector<8x1xi1> to vector<8x1xi1>
    %862 = vector.broadcast %861 : vector<8x1xi1> to vector<8x128xi1>
    %863 = vector.broadcast %cst_229 : f32 to vector<8x128xf32>
    %864 = arith.select %862, %25, %863 : vector<8x128xi1>, vector<8x128xf32>
    %cst_230 = arith.constant dense<0.000000e+00> : vector<128xf32>
    %865 = vector.multi_reduction <add>, %864, %cst_230 [0] : vector<8x128xf32> to vector<128xf32>
    %866 = vector.shape_cast %865 : vector<128xf32> to vector<1x128xf32>
    %cst_231 = arith.constant 0.000000e+00 : f32
    %867 = vector.broadcast %cst_231 : f32 to vector<1x1xf32>
    %868 = arith.cmpf ogt, %860, %867 : vector<1x1xf32>
    %cst_232 = arith.constant 1.000000e+00 : f32
    %869 = vector.broadcast %cst_232 : f32 to vector<1x1xf32>
    %870 = arith.maximumf %860, %869 : vector<1x1xf32>
    %871 = vector.broadcast %870 : vector<1x1xf32> to vector<1x128xf32>
    %872 = arith.divf %866, %871 : vector<1x128xf32>
    %873 = vector.extract_strided_slice %784 {offsets = [2, 0], sizes = [1, 128], strides = [1, 1]} : vector<3x128xf32> to vector<1x128xf32>
    %874 = vector.shape_cast %868 : vector<1x1xi1> to vector<1x1xi1>
    %875 = vector.broadcast %874 : vector<1x1xi1> to vector<1x128xi1>
    %876 = arith.select %875, %872, %873 : vector<1x128xi1>, vector<1x128xf32>
    %877 = tpu.concatenate %832, %854, %876 in 0 : vector<1x128xf32>, vector<1x128xf32>, vector<1x128xf32> -> vector<3x128xf32>
    %878 = vector.extract_strided_slice %877 {offsets = [0, 0], sizes = [1, 128], strides = [1, 1]} : vector<3x128xf32> to vector<1x128xf32>
    %879 = vector.broadcast %878 : vector<1x128xf32> to vector<8x128xf32>
    %880 = arith.subf %25, %879 : vector<8x128xf32>
    %881 = arith.mulf %880, %880 : vector<8x128xf32>
    %cst_233 = arith.constant dense<0.000000e+00> : vector<8xf32>
    %882 = vector.multi_reduction <add>, %881, %cst_233 [1] : vector<8x128xf32> to vector<8xf32>
    %883 = vector.shape_cast %882 : vector<8xf32> to vector<8x1xf32>
    %c0_i32_234 = arith.constant 0 : i32
    %884 = vector.broadcast %c0_i32_234 : i32 to vector<8x1xi32>
    %885 = vector.extract_strided_slice %877 {offsets = [1, 0], sizes = [1, 128], strides = [1, 1]} : vector<3x128xf32> to vector<1x128xf32>
    %886 = vector.broadcast %885 : vector<1x128xf32> to vector<8x128xf32>
    %887 = arith.subf %25, %886 : vector<8x128xf32>
    %888 = arith.mulf %887, %887 : vector<8x128xf32>
    %cst_235 = arith.constant dense<0.000000e+00> : vector<8xf32>
    %889 = vector.multi_reduction <add>, %888, %cst_235 [1] : vector<8x128xf32> to vector<8xf32>
    %890 = vector.shape_cast %889 : vector<8xf32> to vector<8x1xf32>
    %891 = arith.cmpf olt, %890, %883 : vector<8x1xf32>
    %892 = arith.select %891, %890, %883 : vector<8x1xi1>, vector<8x1xf32>
    %c1_i32_236 = arith.constant 1 : i32
    %893 = vector.broadcast %c1_i32_236 : i32 to vector<8x1xi32>
    %894 = arith.select %891, %893, %884 : vector<8x1xi1>, vector<8x1xi32>
    %895 = vector.extract_strided_slice %877 {offsets = [2, 0], sizes = [1, 128], strides = [1, 1]} : vector<3x128xf32> to vector<1x128xf32>
    %896 = vector.broadcast %895 : vector<1x128xf32> to vector<8x128xf32>
    %897 = arith.subf %25, %896 : vector<8x128xf32>
    %898 = arith.mulf %897, %897 : vector<8x128xf32>
    %cst_237 = arith.constant dense<0.000000e+00> : vector<8xf32>
    %899 = vector.multi_reduction <add>, %898, %cst_237 [1] : vector<8x128xf32> to vector<8xf32>
    %900 = vector.shape_cast %899 : vector<8xf32> to vector<8x1xf32>
    %901 = arith.cmpf olt, %900, %892 : vector<8x1xf32>
    %c2_i32_238 = arith.constant 2 : i32
    %902 = vector.broadcast %c2_i32_238 : i32 to vector<8x1xi32>
    %903 = arith.select %901, %902, %894 : vector<8x1xi1>, vector<8x1xi32>
    %c0_i32_239 = arith.constant 0 : i32
    %904 = vector.broadcast %c0_i32_239 : i32 to vector<8x1xi32>
    %905 = arith.cmpi eq, %903, %904 : vector<8x1xi32>
    %906 = arith.extui %905 : vector<8x1xi1> to vector<8x1xi32>
    %907 = arith.sitofp %906 : vector<8x1xi32> to vector<8x1xf32>
    %cst_240 = arith.constant dense<0.000000e+00> : vector<1xf32>
    %908 = vector.multi_reduction <add>, %907, %cst_240 [0] : vector<8x1xf32> to vector<1xf32>
    %909 = vector.shape_cast %908 : vector<1xf32> to vector<1x1xf32>
    %cst_241 = arith.constant 0.000000e+00 : f32
    %910 = vector.shape_cast %905 : vector<8x1xi1> to vector<8x1xi1>
    %911 = vector.broadcast %910 : vector<8x1xi1> to vector<8x128xi1>
    %912 = vector.broadcast %cst_241 : f32 to vector<8x128xf32>
    %913 = arith.select %911, %25, %912 : vector<8x128xi1>, vector<8x128xf32>
    %cst_242 = arith.constant dense<0.000000e+00> : vector<128xf32>
    %914 = vector.multi_reduction <add>, %913, %cst_242 [0] : vector<8x128xf32> to vector<128xf32>
    %915 = vector.shape_cast %914 : vector<128xf32> to vector<1x128xf32>
    %cst_243 = arith.constant 0.000000e+00 : f32
    %916 = vector.broadcast %cst_243 : f32 to vector<1x1xf32>
    %917 = arith.cmpf ogt, %909, %916 : vector<1x1xf32>
    %cst_244 = arith.constant 1.000000e+00 : f32
    %918 = vector.broadcast %cst_244 : f32 to vector<1x1xf32>
    %919 = arith.maximumf %909, %918 : vector<1x1xf32>
    %920 = vector.broadcast %919 : vector<1x1xf32> to vector<1x128xf32>
    %921 = arith.divf %915, %920 : vector<1x128xf32>
    %922 = vector.extract_strided_slice %877 {offsets = [0, 0], sizes = [1, 128], strides = [1, 1]} : vector<3x128xf32> to vector<1x128xf32>
    %923 = vector.shape_cast %917 : vector<1x1xi1> to vector<1x1xi1>
    %924 = vector.broadcast %923 : vector<1x1xi1> to vector<1x128xi1>
    %925 = arith.select %924, %921, %922 : vector<1x128xi1>, vector<1x128xf32>
    %c1_i32_245 = arith.constant 1 : i32
    %926 = vector.broadcast %c1_i32_245 : i32 to vector<8x1xi32>
    %927 = arith.cmpi eq, %903, %926 : vector<8x1xi32>
    %928 = arith.extui %927 : vector<8x1xi1> to vector<8x1xi32>
    %929 = arith.sitofp %928 : vector<8x1xi32> to vector<8x1xf32>
    %cst_246 = arith.constant dense<0.000000e+00> : vector<1xf32>
    %930 = vector.multi_reduction <add>, %929, %cst_246 [0] : vector<8x1xf32> to vector<1xf32>
    %931 = vector.shape_cast %930 : vector<1xf32> to vector<1x1xf32>
    %cst_247 = arith.constant 0.000000e+00 : f32
    %932 = vector.shape_cast %927 : vector<8x1xi1> to vector<8x1xi1>
    %933 = vector.broadcast %932 : vector<8x1xi1> to vector<8x128xi1>
    %934 = vector.broadcast %cst_247 : f32 to vector<8x128xf32>
    %935 = arith.select %933, %25, %934 : vector<8x128xi1>, vector<8x128xf32>
    %cst_248 = arith.constant dense<0.000000e+00> : vector<128xf32>
    %936 = vector.multi_reduction <add>, %935, %cst_248 [0] : vector<8x128xf32> to vector<128xf32>
    %937 = vector.shape_cast %936 : vector<128xf32> to vector<1x128xf32>
    %cst_249 = arith.constant 0.000000e+00 : f32
    %938 = vector.broadcast %cst_249 : f32 to vector<1x1xf32>
    %939 = arith.cmpf ogt, %931, %938 : vector<1x1xf32>
    %cst_250 = arith.constant 1.000000e+00 : f32
    %940 = vector.broadcast %cst_250 : f32 to vector<1x1xf32>
    %941 = arith.maximumf %931, %940 : vector<1x1xf32>
    %942 = vector.broadcast %941 : vector<1x1xf32> to vector<1x128xf32>
    %943 = arith.divf %937, %942 : vector<1x128xf32>
    %944 = vector.extract_strided_slice %877 {offsets = [1, 0], sizes = [1, 128], strides = [1, 1]} : vector<3x128xf32> to vector<1x128xf32>
    %945 = vector.shape_cast %939 : vector<1x1xi1> to vector<1x1xi1>
    %946 = vector.broadcast %945 : vector<1x1xi1> to vector<1x128xi1>
    %947 = arith.select %946, %943, %944 : vector<1x128xi1>, vector<1x128xf32>
    %c2_i32_251 = arith.constant 2 : i32
    %948 = vector.broadcast %c2_i32_251 : i32 to vector<8x1xi32>
    %949 = arith.cmpi eq, %903, %948 : vector<8x1xi32>
    %950 = arith.extui %949 : vector<8x1xi1> to vector<8x1xi32>
    %951 = arith.sitofp %950 : vector<8x1xi32> to vector<8x1xf32>
    %cst_252 = arith.constant dense<0.000000e+00> : vector<1xf32>
    %952 = vector.multi_reduction <add>, %951, %cst_252 [0] : vector<8x1xf32> to vector<1xf32>
    %953 = vector.shape_cast %952 : vector<1xf32> to vector<1x1xf32>
    %cst_253 = arith.constant 0.000000e+00 : f32
    %954 = vector.shape_cast %949 : vector<8x1xi1> to vector<8x1xi1>
    %955 = vector.broadcast %954 : vector<8x1xi1> to vector<8x128xi1>
    %956 = vector.broadcast %cst_253 : f32 to vector<8x128xf32>
    %957 = arith.select %955, %25, %956 : vector<8x128xi1>, vector<8x128xf32>
    %cst_254 = arith.constant dense<0.000000e+00> : vector<128xf32>
    %958 = vector.multi_reduction <add>, %957, %cst_254 [0] : vector<8x128xf32> to vector<128xf32>
    %959 = vector.shape_cast %958 : vector<128xf32> to vector<1x128xf32>
    %cst_255 = arith.constant 0.000000e+00 : f32
    %960 = vector.broadcast %cst_255 : f32 to vector<1x1xf32>
    %961 = arith.cmpf ogt, %953, %960 : vector<1x1xf32>
    %cst_256 = arith.constant 1.000000e+00 : f32
    %962 = vector.broadcast %cst_256 : f32 to vector<1x1xf32>
    %963 = arith.maximumf %953, %962 : vector<1x1xf32>
    %964 = vector.broadcast %963 : vector<1x1xf32> to vector<1x128xf32>
    %965 = arith.divf %959, %964 : vector<1x128xf32>
    %966 = vector.extract_strided_slice %877 {offsets = [2, 0], sizes = [1, 128], strides = [1, 1]} : vector<3x128xf32> to vector<1x128xf32>
    %967 = vector.shape_cast %961 : vector<1x1xi1> to vector<1x1xi1>
    %968 = vector.broadcast %967 : vector<1x1xi1> to vector<1x128xi1>
    %969 = arith.select %968, %965, %966 : vector<1x128xi1>, vector<1x128xf32>
    %970 = tpu.concatenate %925, %947, %969 in 0 : vector<1x128xf32>, vector<1x128xf32>, vector<1x128xf32> -> vector<3x128xf32>
    %971 = vector.extract_strided_slice %970 {offsets = [0, 0], sizes = [1, 128], strides = [1, 1]} : vector<3x128xf32> to vector<1x128xf32>
    %972 = vector.broadcast %971 : vector<1x128xf32> to vector<8x128xf32>
    %973 = arith.subf %25, %972 : vector<8x128xf32>
    %974 = arith.mulf %973, %973 : vector<8x128xf32>
    %cst_257 = arith.constant dense<0.000000e+00> : vector<8xf32>
    %975 = vector.multi_reduction <add>, %974, %cst_257 [1] : vector<8x128xf32> to vector<8xf32>
    %976 = vector.shape_cast %975 : vector<8xf32> to vector<8x1xf32>
    %c0_i32_258 = arith.constant 0 : i32
    %977 = vector.broadcast %c0_i32_258 : i32 to vector<8x1xi32>
    %978 = vector.extract_strided_slice %970 {offsets = [1, 0], sizes = [1, 128], strides = [1, 1]} : vector<3x128xf32> to vector<1x128xf32>
    %979 = vector.broadcast %978 : vector<1x128xf32> to vector<8x128xf32>
    %980 = arith.subf %25, %979 : vector<8x128xf32>
    %981 = arith.mulf %980, %980 : vector<8x128xf32>
    %cst_259 = arith.constant dense<0.000000e+00> : vector<8xf32>
    %982 = vector.multi_reduction <add>, %981, %cst_259 [1] : vector<8x128xf32> to vector<8xf32>
    %983 = vector.shape_cast %982 : vector<8xf32> to vector<8x1xf32>
    %984 = arith.cmpf olt, %983, %976 : vector<8x1xf32>
    %985 = arith.select %984, %983, %976 : vector<8x1xi1>, vector<8x1xf32>
    %c1_i32_260 = arith.constant 1 : i32
    %986 = vector.broadcast %c1_i32_260 : i32 to vector<8x1xi32>
    %987 = arith.select %984, %986, %977 : vector<8x1xi1>, vector<8x1xi32>
    %988 = vector.extract_strided_slice %970 {offsets = [2, 0], sizes = [1, 128], strides = [1, 1]} : vector<3x128xf32> to vector<1x128xf32>
    %989 = vector.broadcast %988 : vector<1x128xf32> to vector<8x128xf32>
    %990 = arith.subf %25, %989 : vector<8x128xf32>
    %991 = arith.mulf %990, %990 : vector<8x128xf32>
    %cst_261 = arith.constant dense<0.000000e+00> : vector<8xf32>
    %992 = vector.multi_reduction <add>, %991, %cst_261 [1] : vector<8x128xf32> to vector<8xf32>
    %993 = vector.shape_cast %992 : vector<8xf32> to vector<8x1xf32>
    %994 = arith.cmpf olt, %993, %985 : vector<8x1xf32>
    %c2_i32_262 = arith.constant 2 : i32
    %995 = vector.broadcast %c2_i32_262 : i32 to vector<8x1xi32>
    %996 = arith.select %994, %995, %987 : vector<8x1xi1>, vector<8x1xi32>
    %c0_263 = arith.constant 0 : index
    %c0_264 = arith.constant 0 : index
    %997 = vector.load %arg6[%c0_263, %c0_264] : memref<8x128xf32, #tpu.memory_space<vmem>>, vector<8x128xf32>
    tpu.vector_store %arg6[%c0_263, %c0_264], %25 {strides = array<i32>} : memref<8x128xf32, #tpu.memory_space<vmem>>, vector<8x128xf32>,
    %c0_265 = arith.constant 0 : index
    %c0_266 = arith.constant 0 : index
    %998 = vector.load %arg7[%c0_265, %c0_266] : memref<8x1xi32, #tpu.memory_space<vmem>>, vector<8x1xi32>
    tpu.vector_store %arg7[%c0_265, %c0_266], %996 {strides = array<i32>} : memref<8x1xi32, #tpu.memory_space<vmem>>, vector<8x1xi32>,
    %c0_267 = arith.constant 0 : index
    %c0_268 = arith.constant 0 : index
    %999 = vector.load %arg8[%c0_267, %c0_268] : memref<8x1xi32, #tpu.memory_space<vmem>>, vector<8x1xi32>
    tpu.vector_store %arg8[%c0_267, %c0_268], %39 {strides = array<i32>} : memref<8x1xi32, #tpu.memory_space<vmem>>, vector<8x1xi32>,
    return
  }
}

</mosaic_0001>

<bundles_post_ra>
// kernel: squeeze.3
= control target key start
LH: loop header
LB: loop body
LE: loop exit
PB: predicated region body
PF: predicated region fallthrough
CT: control target
= control target key end

     0   :  { %s258_s8 = smov 119   ;;  %s259_s9 = smov 122   ;;  %vm7_vm0 = vcmask 23552   ;;  %s429_s0 = inlined_call_operand.vmem [shape: f32[96], index: 0, kind: input, shape index: {}]   ;;  %s430_s1 = inlined_call_operand.vmem [shape: f32[32,3], index: 1, kind: output, shape index: {}]  }
   0x1   :  { %v4_v0 = vld [vmem:[%s429_s0] sm:$0x1]  ;;  %s257_s0 = smov 125   ;;  %s260_s10 = smov 116  }
   0x2   :  { %5 = vst [vmem:[#allocation0] sm:$0x1] %v4_v0  ;;  %s261_s11 = smov 113   ;;  %s262_s12 = smov 110  }
   0x3   :  { %s263_s13 = smov 107   ;;  %s264_s14 = smov 104  }
   0x4   :  { %s265_s15 = smov 101   ;;  %s266_s16 = smov 98  }
   0x5   :  { %s267_s17 = smov 95   ;;  %s268_s18 = smov 92  }
   0x6   :  { %s269_s19 = smov 89   ;;  %s270_s20 = smov 86  }
   0x7   :  { %s271_s21 = smov 83   ;;  %s272_s22 = smov 80  }
   0x8   :  { %s273_s23 = smov 77   ;;  %s274_s24 = smov 74  }
   0x9   :  { %v9_v1 = vld [vmem:[#allocation0] sm:$0x1]   ;;  %s275_s25 = smov 71   ;;  %s276_s26 = smov 68  }
   0xa   :  { %v21_v2 = vld [vmem:[#allocation0] sm:$0x1]   ;;  %10 = vrot.lane.b32.xlu0 %v9_v1, %s257_s0  ;;  %s277_s27 = smov 65   ;;  %s278_s28 = smov 62  }
   0xb   :  { %22 = vrot.lane.b32.xlu1 %v21_v2, %s258_s8  ;;  %v15_v3 = vld [vmem:[#allocation0] sm:$0x1]   ;;  %s279_s29 = smov 59   ;;  %s280_s30 = smov 56  }
   0xc   :  { %v27_v4 = vld [vmem:[#allocation0] sm:$0x1]   ;;  %s281_s4 = smov 53   ;;  %s282_s5 = smov 50  }
   0xd   :  { %v33_v5 = vld [vmem:[#allocation0] sm:$0x1]   ;;  %s283_s6 = smov 47   ;;  %s284_s7 = smov 44  }
   0xe   :  { %16 = vrot.lane.b32.xlu0 %v15_v3, %s259_s9  ;;  %v39_v6 = vld [vmem:[#allocation0] sm:$0x1]   ;;  %s285_s0 = smov 41   ;;  %s286_s8 = smov 38  }
   0xf   :  { %28 = vrot.lane.b32.xlu1 %v27_v4, %s260_s10  ;;  %v45_v7 = vld [vmem:[#allocation0] sm:$0x1]   ;;  %s287_s9 = smov 35  }
  0x10   :  { %v51_v8 = vld [vmem:[#allocation0] sm:$0x1]  }
  0x11   :  { %v57_v9 = vld [vmem:[#allocation0] sm:$0x1]  }
  0x12   :  { %34 = vrot.lane.b32.xlu0 %v33_v5, %s261_s11  ;;  %v63_v10 = vld [vmem:[#allocation0] sm:$0x1]  }
  0x13   :  { %40 = vrot.lane.b32.xlu1 %v39_v6, %s262_s12  ;;  %v69_v11 = vld [vmem:[#allocation0] sm:$0x1]  }
  0x14   :  { %v75_v12 = vld [vmem:[#allocation0] sm:$0x1]  }
  0x15   :  { %v81_v13 = vld [vmem:[#allocation0] sm:$0x1]  }
  0x16   :  { %46 = vrot.lane.b32.xlu0 %v45_v7, %s263_s13  ;;  %v87_v14 = vld [vmem:[#allocation0] sm:$0x1]  }
  0x17   :  { %52 = vrot.lane.b32.xlu1 %v51_v8, %s264_s14  ;;  %v93_v15 = vld [vmem:[#allocation0] sm:$0x1]  }
  0x18   :  { %v99_v16 = vld [vmem:[#allocation0] sm:$0x1]  }
  0x19   :  { %v105_v17 = vld [vmem:[#allocation0] sm:$0x1]  }
  0x1a   :  { %58 = vrot.lane.b32.xlu0 %v57_v9, %s265_s15  ;;  %v111_v18 = vld [vmem:[#allocation0] sm:$0x1]  }
  0x1b   :  { %64 = vrot.lane.b32.xlu1 %v63_v10, %s266_s16  ;;  %v117_v19 = vld [vmem:[#allocation0] sm:$0x1]  }
  0x1c   :  { %v123_v20 = vld [vmem:[#allocation0] sm:$0x1]  }
  0x1d   :  { %v129_v21 = vld [vmem:[#allocation0] sm:$0x1]  }
  0x1e   :  { %70 = vrot.lane.b32.xlu0 %v69_v11, %s267_s17  ;;  %v135_v22 = vld [vmem:[#allocation0] sm:$0x1]  }
  0x1f   :  { %76 = vrot.lane.b32.xlu1 %v75_v12, %s268_s18  ;;  %v141_v23 = vld [vmem:[#allocation0] sm:$0x1]  }
  0x20   :  { %v147_v24 = vld [vmem:[#allocation0] sm:$0x1]  }
  0x21   :  { %v153_v25 = vld [vmem:[#allocation0] sm:$0x1]  }
  0x22   :  { %82 = vrot.lane.b32.xlu0 %v81_v13, %s269_s19  ;;  %v159_v26 = vld [vmem:[#allocation0] sm:$0x1]  }
  0x23   :  { %88 = vrot.lane.b32.xlu1 %v87_v14, %s270_s20  ;;  %v6_v27 = vld [vmem:[#allocation0] sm:$0x1]  }
  0x24   :  { %8 = vst.msk [vmem:[%s430_s1] sm:$0x1] %vm7_vm0, %v6_v27   ;;  %v165_v28 = vld [vmem:[#allocation0] sm:$0x1]  }
  0x25   :  { %v171_v29 = vld [vmem:[#allocation0] sm:$0x1]  }
  0x26   :  { %94 = vrot.lane.b32.xlu0 %v93_v15, %s271_s21  ;;  %v177_v30 = vld [vmem:[#allocation0] sm:$0x1]  }
  0x27   :  { %100 = vrot.lane.b32.xlu1 %v99_v16, %s272_s22  ;;  %v183_v31 = vld [vmem:[#allocation0] sm:$0x1]  }
  0x28   :  { %v189_v32 = vld [vmem:[#allocation0] sm:$0x1]  }
  0x2a   :  { %106 = vrot.lane.b32.xlu0 %v105_v17, %s273_s23 }
  0x2b   :  { %112 = vrot.lane.b32.xlu1 %v111_v18, %s274_s24 }
  0x2e   :  { %118 = vrot.lane.b32.xlu0 %v117_v19, %s275_s25 }
  0x2f   :  { %124 = vrot.lane.b32.xlu1 %v123_v20, %s276_s26 }
  0x32   :  { %130 = vrot.lane.b32.xlu0 %v129_v21, %s277_s27 }
  0x33   :  { %136 = vrot.lane.b32.xlu1 %v135_v22, %s278_s28 }
  0x36   :  { %142 = vrot.lane.b32.xlu0 %v141_v23, %s279_s29 }
  0x37   :  { %148 = vrot.lane.b32.xlu1 %v147_v24, %s280_s30 }
  0x3a   :  { %154 = vrot.lane.b32.xlu0 %v153_v25, %s281_s4 }
  0x3b   :  { %160 = vrot.lane.b32.xlu1 %v159_v26, %s282_s5 }
  0x3e   :  { %166 = vrot.lane.b32.xlu0 %v165_v28, %s283_s6 }
  0x3f   :  { %172 = vrot.lane.b32.xlu1 %v171_v29, %s284_s7 }
  0x42   :  { %178 = vrot.lane.b32.xlu0 %v177_v30, %s285_s0 }
  0x43   :  { %184 = vrot.lane.b32.xlu1 %v183_v31, %s286_s8 }
  0x46   :  { %190 = vrot.lane.b32.xlu0 %v189_v32, %s287_s9 }
  0x7c   :  { %v11_v33 = vpop.permute.xlu0 %10  }
  0x7d   :  { %v23_v34 = vpop.permute.xlu1 %22   ;;  %195 = vst.msk [vmem:[%s430_s1 + $0x1] sm:$0x1] %vm7_vm0, %v11_v33  }
  0x7e   :  { %197 = vst.msk [vmem:[%s430_s1 + $0x3] sm:$0x1] %vm7_vm0, %v23_v34  }
  0x80   :  { %v17_v35 = vpop.permute.xlu0 %16  }
  0x81   :  { %v29_v36 = vpop.permute.xlu1 %28   ;;  %196 = vst.msk [vmem:[%s430_s1 + $0x2] sm:$0x1] %vm7_vm0, %v17_v35  }
  0x82   :  { %198 = vst.msk [vmem:[%s430_s1 + $0x4] sm:$0x1] %vm7_vm0, %v29_v36  }
  0x84   :  { %v35_v37 = vpop.permute.xlu0 %34  }
  0x85   :  { %v41_v38 = vpop.permute.xlu1 %40   ;;  %199 = vst.msk [vmem:[%s430_s1 + $0x5] sm:$0x1] %vm7_vm0, %v35_v37  }
  0x86   :  { %200 = vst.msk [vmem:[%s430_s1 + $0x6] sm:$0x1] %vm7_vm0, %v41_v38  }
  0x88   :  { %v47_v39 = vpop.permute.xlu0 %46  }
  0x89   :  { %v53_v40 = vpop.permute.xlu1 %52   ;;  %201 = vst.msk [vmem:[%s430_s1 + $0x7] sm:$0x1] %vm7_vm0, %v47_v39  }
  0x8a   :  { %202 = vst.msk [vmem:[%s430_s1 + $0x8] sm:$0x1] %vm7_vm0, %v53_v40  }
  0x8c   :  { %v59_v41 = vpop.permute.xlu0 %58  }
  0x8d   :  { %v65_v42 = vpop.permute.xlu1 %64   ;;  %203 = vst.msk [vmem:[%s430_s1 + $0x9] sm:$0x1] %vm7_vm0, %v59_v41  }
  0x8e   :  { %204 = vst.msk [vmem:[%s430_s1 + $0xa] sm:$0x1] %vm7_vm0, %v65_v42  }
  0x90   :  { %v71_v43 = vpop.permute.xlu0 %70  }
  0x91   :  { %v77_v44 = vpop.permute.xlu1 %76   ;;  %205 = vst.msk [vmem:[%s430_s1 + $0xb] sm:$0x1] %vm7_vm0, %v71_v43  }
  0x92   :  { %206 = vst.msk [vmem:[%s430_s1 + $0xc] sm:$0x1] %vm7_vm0, %v77_v44  }
  0x94   :  { %v83_v45 = vpop.permute.xlu0 %82  }
  0x95   :  { %v89_v46 = vpop.permute.xlu1 %88   ;;  %207 = vst.msk [vmem:[%s430_s1 + $0xd] sm:$0x1] %vm7_vm0, %v83_v45  }
  0x96   :  { %208 = vst.msk [vmem:[%s430_s1 + $0xe] sm:$0x1] %vm7_vm0, %v89_v46  }
  0x98   :  { %v95_v47 = vpop.permute.xlu0 %94  }
  0x99   :  { %v101_v48 = vpop.permute.xlu1 %100   ;;  %209 = vst.msk [vmem:[%s430_s1 + $0xf] sm:$0x1] %vm7_vm0, %v95_v47  }
  0x9a   :  { %210 = vst.msk [vmem:[%s430_s1 + $0x10] sm:$0x1] %vm7_vm0, %v101_v48  }
  0x9c   :  { %v107_v49 = vpop.permute.xlu0 %106  }
  0x9d   :  { %v113_v50 = vpop.permute.xlu1 %112   ;;  %211 = vst.msk [vmem:[%s430_s1 + $0x11] sm:$0x1] %vm7_vm0, %v107_v49  }
  0x9e   :  { %212 = vst.msk [vmem:[%s430_s1 + $0x12] sm:$0x1] %vm7_vm0, %v113_v50  }
  0xa0   :  { %v119_v51 = vpop.permute.xlu0 %118  }
  0xa1   :  { %v125_v52 = vpop.permute.xlu1 %124   ;;  %213 = vst.msk [vmem:[%s430_s1 + $0x13] sm:$0x1] %vm7_vm0, %v119_v51  }
  0xa2   :  { %214 = vst.msk [vmem:[%s430_s1 + $0x14] sm:$0x1] %vm7_vm0, %v125_v52  }
  0xa4   :  { %v131_v53 = vpop.permute.xlu0 %130  }
  0xa5   :  { %v137_v54 = vpop.permute.xlu1 %136   ;;  %215 = vst.msk [vmem:[%s430_s1 + $0x15] sm:$0x1] %vm7_vm0, %v131_v53  }
  0xa6   :  { %216 = vst.msk [vmem:[%s430_s1 + $0x16] sm:$0x1] %vm7_vm0, %v137_v54  }
  0xa8   :  { %v143_v55 = vpop.permute.xlu0 %142  }
  0xa9   :  { %v149_v56 = vpop.permute.xlu1 %148   ;;  %217 = vst.msk [vmem:[%s430_s1 + $0x17] sm:$0x1] %vm7_vm0, %v143_v55  }
  0xaa   :  { %218 = vst.msk [vmem:[%s430_s1 + $0x18] sm:$0x1] %vm7_vm0, %v149_v56  }
  0xac   :  { %v155_v57 = vpop.permute.xlu0 %154  }
  0xad   :  { %v161_v58 = vpop.permute.xlu1 %160   ;;  %219 = vst.msk [vmem:[%s430_s1 + $0x19] sm:$0x1] %vm7_vm0, %v155_v57  }
  0xae   :  { %220 = vst.msk [vmem:[%s430_s1 + $0x1a] sm:$0x1] %vm7_vm0, %v161_v58  }
  0xb0   :  { %v167_v59 = vpop.permute.xlu0 %166  }
  0xb1   :  { %v173_v60 = vpop.permute.xlu1 %172   ;;  %221 = vst.msk [vmem:[%s430_s1 + $0x1b] sm:$0x1] %vm7_vm0, %v167_v59  }
  0xb2   :  { %222 = vst.msk [vmem:[%s430_s1 + $0x1c] sm:$0x1] %vm7_vm0, %v173_v60  }
  0xb4   :  { %v179_v61 = vpop.permute.xlu0 %178  }
  0xb5   :  { %v185_v62 = vpop.permute.xlu1 %184   ;;  %223 = vst.msk [vmem:[%s430_s1 + $0x1d] sm:$0x1] %vm7_vm0, %v179_v61  }
  0xb6   :  { %224 = vst.msk [vmem:[%s430_s1 + $0x1e] sm:$0x1] %vm7_vm0, %v185_v62  }
  0xb8   :  { %v191_v63 = vpop.permute.xlu0 %190  }
  0xb9   :  { %225 = vst.msk [vmem:[%s430_s1 + $0x1f] sm:$0x1] %vm7_vm0, %v191_v63  }

// kernel: shot_scale_cluster_forward.2
= control target key start
LH: loop header
LB: loop body
LE: loop exit
PB: predicated region body
PF: predicated region fallthrough
CT: control target
= control target key end

     0   :  { %s260_s6 = smov 0   ;;  %s287_s0 = inlined_call_operand.vmem [shape: f32[96,256], index: 0, kind: input, shape index: {}]   ;;  %s288_s1 = inlined_call_operand.vmem [shape: f32[96,1], index: 1, kind: output, shape index: {}]  }
   0x1 LB: > { %s223_s7 = sadd.s32 4294967295, %s248_s6   ;;  %p227_p0 = scmp.ge.s32.totalorder %s248_s6, 1  ;;  %s248_s6 = sphi %s260_s6, %s11_s6  }
   0x2   : > { %p89_p1 = scmp.lt.s32.totalorder %s248_s6, 3 }
   0x4   : > { %p90_p2 = pnand %p227_p0, %p89_p1 }
   0x5   : > { %s110_s8 = smul.u32 (!%p90_p2), 6, %s223_s7  ;;  %vm160_vm0 = vcmask (!%p90_p2), 7168  }
   0x6   : > { %93 = sbr.rel (%p90_p2) target bundleno = 173 (0xad), region = 24 }
   0x7   : > { %p111_p3 = scmp.lt.s32.totalorder (!%p90_p2), %s110_s8, 11 }
   0xd   : > { %s290_s8 = smov (!%p111_p3, %s110_s8), 11 }
   0xe   : > { %s233_s9 = sshll.u32 %s290_s8, 4  ;;  %s230_s13 = sshll.u32 %s290_s8, 3 }
   0xf   : > { %s115_s12 = scalar_lea.vmem %s287_s0, %s233_s9  ;;  %s121_s16 = scalar_lea.vmem %s288_s1, %s230_s13 }
  0x10   : > { %v127_v0 = vld [vmem:[%s115_s12 + $0x20] sm:$0xff]  ;;  %v128_v1 = vld [vmem:[%s115_s12 + $0x28] sm:$0xff]  ;;  %v129_v5 = vld [vmem:[%s115_s12 + $0x30] sm:$0xff] }
  0x11   : > { %v123_v2 = vld [vmem:[%s115_s12] sm:$0xff]  ;;  %v141_v3 = vadd.f32 %v128_v1, %v127_v0  ;;  %v124_v4 = vld [vmem:[%s115_s12 + $0x8] sm:$0xff]  ;;  %v130_v6 = vld [vmem:[%s115_s12 + $0x38] sm:$0xff] }
  0x12   : > { %v135_v7 = vadd.f32 %v124_v4, %v123_v2  ;;  %v125_v8 = vld [vmem:[%s115_s12 + $0x10] sm:$0xff]  ;;  %v126_v9 = vld [vmem:[%s115_s12 + $0x18] sm:$0xff]  ;;  %v144_v10 = vadd.f32 %v130_v6, %v129_v5  ;;  %v131_v14 = vld [vmem:[%s115_s12 + $0x40] sm:$0xff] }
  0x13   : > { %142 = vadd.xlane.f32.xlu1 %v141_v3  ;;  %v138_v11 = vadd.f32 %v126_v9, %v125_v8  ;;  %v133_v12 = vld [vmem:[%s115_s12 + $0x50] sm:$0xff]  ;;  %v134_v13 = vld [vmem:[%s115_s12 + $0x58] sm:$0xff]  ;;  %v132_v15 = vld [vmem:[%s115_s12 + $0x48] sm:$0xff] }
  0x14   : > { %136 = vadd.xlane.f32.xlu0 %v135_v7  ;;  %v150_v16 = vadd.f32 %v134_v13, %v133_v12  ;;  %v147_v17 = vadd.f32 %v132_v15, %v131_v14 }
  0x17   : > { %145 = vadd.xlane.f32.xlu1 %v144_v10 }
  0x18   : > { %139 = vadd.xlane.f32.xlu0 %v138_v11 }
  0x1b   : > { %151 = vadd.xlane.f32.xlu1 %v150_v16 }
  0x1c   : > { %148 = vadd.xlane.f32.xlu0 %v147_v17 }
  0xa0   : > { %v143_v18 = vpop.xlane.xlu1 %142 }
  0xa1   : > { %v156_v19 = vmul.f32 0.00390625, %v143_v18  ;;  %v137_v20 = vpop.xlane.xlu0 %136 }
  0xa2   : > { %v154_v21 = vmul.f32 0.00390625, %v137_v20 }
  0xa3   : > { %163 = vst.msk [vmem:[%s121_s16 + $0x10] sm:$0xff] %vm160_vm0, %v156_v19 }
  0xa4   : > { %161 = vst.msk [vmem:[%s121_s16] sm:$0xff] %vm160_vm0, %v154_v21  ;;  %v146_v22 = vpop.xlane.xlu1 %145 }
  0xa5   : > { %v157_v23 = vmul.f32 0.00390625, %v146_v22  ;;  %v140_v24 = vpop.xlane.xlu0 %139 }
  0xa6   : > { %v155_v25 = vmul.f32 0.00390625, %v140_v24 }
  0xa7   : > { %164 = vst.msk [vmem:[%s121_s16 + $0x18] sm:$0xff] %vm160_vm0, %v157_v23 }
  0xa8   : > { %162 = vst.msk [vmem:[%s121_s16 + $0x8] sm:$0xff] %vm160_vm0, %v155_v25  ;;  %v152_v26 = vpop.xlane.xlu1 %151 }
  0xa9   : > { %v159_v27 = vmul.f32 0.00390625, %v152_v26  ;;  %v149_v28 = vpop.xlane.xlu0 %148 }
  0xaa   : > { %v158_v29 = vmul.f32 0.00390625, %v149_v28 }
  0xab   : > { %166 = vst.msk [vmem:[%s121_s16 + $0x28] sm:$0xff] %vm160_vm0, %v159_v27 }
  0xac   : > { %165 = vst.msk [vmem:[%s121_s16 + $0x20] sm:$0xff] %vm160_vm0, %v158_v29 }
  0xad PF: > { %s11_s6 = sadd.s32 1, %s248_s6  }
  0xae   : > { %p8_p4 = scmp.ge.s32.totalorder %s11_s6, 4  }
  0xb0   :  { %10 = sbr.rel (!%p8_p4) target bundleno = 1 (0x1), region = 54 }

// kernel: shot_scale_cluster_forward.3
= control target key start
LH: loop header
LB: loop body
LE: loop exit
PB: predicated region body
PF: predicated region fallthrough
CT: control target
= control target key end

     0   :  { %vm63_vm0 = vcmask 1042432   ;;  %vm50_vm1 = vcmask 23552   ;;  %s2100_s0 = inlined_call_operand.vmem [shape: f32[32,3], index: 0, kind: input, shape index: {}]   ;;  %s2101_s1 = inlined_call_operand.vmem [shape: f32[1,3], index: 1, kind: input, shape index: {}]   ;;  %s2102_s2 = inlined_call_operand.vmem [shape: f32[3,128], index: 2, kind: input, shape index: {}]   ;;  %s2103_s3 = inlined_call_operand.vmem [shape: f32[1,128], index: 3, kind: input, shape index: {}]   ;;  %s2104_s4 = inlined_call_operand.vmem [shape: f32[128,5], index: 4, kind: input, shape index: {}]   ;;  %s2105_s5 = inlined_call_operand.vmem [shape: f32[1,5], index: 5, kind: input, shape index: {}]   ;;  %s2106_s6 = inlined_call_operand.hbm [shape: f32[8,128], index: 6, kind: output, shape index: {0}]   ;;  %s2107_s7 = inlined_call_operand.vmem [shape: s32[8,1], index: 7, kind: output, shape index: {1}]   ;;  %s2108_s8 = inlined_call_operand.vmem [shape: s32[8,1], index: 8, kind: output, shape index: {2}]  }
   0x1   :  { %v42_v0 = vld [vmem:[%s2102_s2] sm:$0x7]  ;;  %v28_v4 = vld [vmem:[%s2100_s0 + $0x8] sm:$0xff]  ;;  %v29_v5 = vld [vmem:[%s2100_s0 + $0x10] sm:$0xff] }
   0x2   :  { %v27_v1 = vld [vmem:[%s2100_s0] sm:$0xff]  ;;  %1508 = vmatprep.subr.msk.mxu1 %vm63_vm0, %v42_v0  ;;  %v30_v6 = vld [vmem:[%s2100_s0 + $0x18] sm:$0xff] }
   0x3   :  { %v1442_v2 = vld [vmem:[%s2101_s1] ss:$0 sm:$0xff]  ;;  %1509 = vmatpush3.msk.msra.mxu1 %vm63_vm0, %v42_v0 }
   0x4   :  { %v38_v3 = vsub.f32 %v27_v1, %v1442_v2  ;;  %v39_v7 = vsub.f32 %v28_v4, %v1442_v2  ;;  %v40_v8 = vsub.f32 %v29_v5, %v1442_v2 }
   0x5   :  { %14 = vsyncpa [#allocation3], 0  ;;  %v41_v9 = vsub.f32 %v30_v6, %v1442_v2  ;;  %v1682_v10 = vmov 0.0|0.0   ;;  %vm1683_vm2 = vmmov 0   ;;  %v1684_v11 = vmov 0.0   ;;  %v241_v12 = vld [vmem:[%s2104_s4] sm:$0xff] }
   0x6   :  { %1510 = vmatprep.mubr.msk.f32.mxu1 %vm50_vm1, %v38_v3  ;;  %1562 = vmatprep.subr.bf16.mxu1 %v1682_v10  ;;  %v242_v13 = vld [vmem:[%s2104_s4 + $0x8] sm:$0xff]  ;;  %v243_v14 = vld [vmem:[%s2104_s4 + $0x10] sm:$0xff]  ;;  %v244_v16 = vld [vmem:[%s2104_s4 + $0x18] sm:$0xff]  ;;  %v156_v36 = vlaneseq  ;;  %vm167_vm6 = vcmask 261120   ;;  %vm456_vm13 = vcmask 1040384   ;;  %vm458_vm15 = vcmask 1041408  }
   0x7   :  { %1511 = vmatmul.mubr.msk.f32.vlgmr.msra.gmra.mrb[0].mxu1 %vm50_vm1, %v39_v7  ;;  %1568 = vmatprep.subr.bf16.mxu0 %v1682_v10  ;;  %v1569_v15 = vpack.c.bf16 %v242_v13, %v241_v12  ;;  %v1572_v17 = vpack.c.bf16 %v244_v16, %v243_v14  ;;  %v245_v18 = vld [vmem:[%s2104_s4 + $0x20] sm:$0xff]  ;;  %v246_v19 = vld [vmem:[%s2104_s4 + $0x28] sm:$0xff]  ;;  %v247_v21 = vld [vmem:[%s2104_s4 + $0x30] sm:$0xff]  ;;  %v1685_v13 = vmov 0  }
   0x8   :  { %1513 = vmatprep.mubr.msk.f32.mxu1 %vm50_vm1, %v40_v8  ;;  %1559 = vmatprep.mubr.msk.f32.mxu0 %vm1683_vm2, %v1684_v11  ;;  %v1575_v20 = vpack.c.bf16 %v246_v19, %v245_v18  ;;  %v248_v22 = vld [vmem:[%s2104_s4 + $0x38] sm:$0xff]  ;;  %v249_v24 = vld [vmem:[%s2104_s4 + $0x40] sm:$0xff]  ;;  %v250_v25 = vld [vmem:[%s2104_s4 + $0x48] sm:$0xff]  ;;  %v157_v37 = vshrl.u32 %v156_v36, 7  ;;  %v1812_v44 = vand.u32 127, %v156_v36 }
   0x9   :  { %1570 = vmatpush3.bf16.msra.mxu0 %v1569_v15  ;;  %v1578_v23 = vpack.c.bf16 %v248_v22, %v247_v21  ;;  %v1581_v26 = vpack.c.bf16 %v250_v25, %v249_v24  ;;  %v251_v27 = vld [vmem:[%s2104_s4 + $0x50] sm:$0xff]  ;;  %v252_v28 = vld [vmem:[%s2104_s4 + $0x58] sm:$0xff]  ;;  %v253_v30 = vld [vmem:[%s2104_s4 + $0x60] sm:$0xff] }
   0xa   :  { %1571 = vmatprep.subr.bf16.mxu0 %v1682_v10  ;;  %v1584_v29 = vpack.c.bf16 %v252_v28, %v251_v27  ;;  %v254_v31 = vld [vmem:[%s2104_s4 + $0x68] sm:$0xff]  ;;  %v255_v33 = vld [vmem:[%s2104_s4 + $0x70] sm:$0xff]  ;;  %v256_v34 = vld [vmem:[%s2104_s4 + $0x78] sm:$0xff]  ;;  %v162_v39 = vadd.s32 1, %v157_v37  ;;  %v160_v45 = vmul.u32 4, %v157_v37  ;;  %v1818_v58 = vsub.s32 0, %v157_v37 }
   0xb   :  { %1514 = vmatmul.mubr.msk.f32.gmra.mrb[2].mxu1 %vm50_vm1, %v41_v9  ;;  %v1587_v32 = vpack.c.bf16 %v254_v31, %v253_v30  ;;  %v1590_v35 = vpack.c.bf16 %v256_v34, %v255_v33  ;;  %v1443_v38 = vld [vmem:[%s2103_s3] ss:$0 sm:$0xff]  ;;  %v1820_v59 = vsub.s32 1, %v157_v37  ;;  %v1822_v60 = vsub.s32 2, %v157_v37 }
   0xc   :  { %1524 = vmatprep.mubr.msk.f32.mxu1 %vm1683_vm2, %v1684_v11  ;;  %v163_v46 = vmul.u32 4, %v162_v39  ;;  %vm161_vm3 = vcmp.ge.s32.totalorder %v1812_v44, %v160_v45 }
   0xd   :  { %1573 = vmatpush3.bf16.msra.mxu0 %v1572_v17 }
   0xe   :  { %1574 = vmatprep.subr.bf16.mxu0 %v1682_v10  ;;  %vm164_vm4 = vcmp.lt.s32.totalorder %v1812_v44, %v163_v46 }
   0xf   :  { %vm165_vm5 = vmand %vm161_vm3, %vm164_vm4 }
  0x10   :  { %v166_v57 = vsel %vm165_vm5, 0.25, %v1684_v11 }
  0x11   :  { %1576 = vmatpush3.bf16.msra.mxu0 %v1575_v20 }
  0x12   :  { %1577 = vmatprep.subr.bf16.mxu0 %v1682_v10 }
  0x15   :  { %1579 = vmatpush3.bf16.msra.mxu0 %v1578_v23 }
  0x16   :  { %1580 = vmatprep.subr.bf16.mxu0 %v1682_v10 }
  0x19   :  { %1582 = vmatpush3.bf16.msra.mxu0 %v1581_v26 }
  0x1a   :  { %1583 = vmatprep.subr.bf16.mxu0 %v1682_v10 }
  0x1d   :  { %1585 = vmatpush3.bf16.msra.mxu0 %v1584_v29 }
  0x1e   :  { %1586 = vmatprep.subr.bf16.mxu0 %v1682_v10 }
  0x21   :  { %1588 = vmatpush3.bf16.msra.mxu0 %v1587_v32 }
  0x22   :  { %1589 = vmatprep.subr.bf16.mxu0 %v1682_v10 }
  0x25   :  { %1591 = vmatpush3.bf16.msra.mxu0 %v1590_v35 }
  0xda   :  { %v1512_v40 = vpop.f32.mrb[0].mxu1 }
  0xdb   :  { %v139_v41 = vadd.f32 %v1512_v40, %v1443_v38  ;;  %v133_v42 = vpop.f32.mrb[1].mxu1 }
  0xdc   :  { %v134_v43 = vadd.f32 %v1443_v38, %v133_v42 }
  0xdd   :  { %v153_v47 = vmax.f32 %v139_v41, 0.0 }
  0xde   :  { %v152_v48 = vmax.f32 %v134_v43, 0.0  ;;  %v1515_v49 = vpop.f32.mrb[2].mxu1 }
  0xdf   :  { %v149_v50 = vadd.f32 %v1515_v49, %v1443_v38  ;;  %v143_v51 = vpop.f32.mrb[3].mxu1 }
  0xe0   :  { %v1563_v52 = vpack.c.bf16 %v153_v47, %v152_v48  ;;  %v144_v53 = vadd.f32 %v1443_v38, %v143_v51 }
  0xe1   :  { %v155_v54 = vmax.f32 %v149_v50, 0.0 }
  0xe2   :  { %v154_v55 = vmax.f32 %v144_v53, 0.0  ;;  %1564 = vmatpush3.bf16.msra.mxu1 %v1563_v52 }
  0xe3   :  { %1565 = vmatprep.subr.bf16.mxu1 %v1682_v10 }
  0xe4   :  { %v1566_v56 = vpack.c.bf16 %v155_v54, %v154_v55 }
  0xe6   :  { %1567 = vmatpush3.bf16.msra.mxu1 %v1566_v56 }
  0xe9   :  { %1525 = vmatmul.mubr.msk.f32.vlgmr.msra.gmra.mrb[4].mxu1 %vm167_vm6, %v166_v57 }
 0x1bc   :  { %v1824_v61 = vpop.f32.mrb[4].mxu1 }
 0x1bd   :  { %1416 = vst [vmem:[#allocation2] sm:$0xff] %v1824_v61  ;;  %v1526_v62 = vpop.f32.mrb[5].mxu1  ;;  %1560 = vmatmul.mubr.f32.vlgmr.msra.gmra.mrb[0].mxu0 %v1824_v61  ;;  %v377_v63 = vrot.slane %v1824_v61, %v1822_v60  ;;  %v358_v0 = vrot.slane %v1824_v61, %v1818_v58  ;;  %v366_v1 = vrot.slane %v1824_v61, %v1820_v59 }
 0x1bf   :  { %v378_v2 = vsub.f32 %v1824_v61, %v377_v63  ;;  %v359_v3 = vsub.f32 %v1824_v61, %v358_v0  ;;  %v367_v6 = vsub.f32 %v1824_v61, %v366_v1 }
 0x1c1   :  { %v379_v4 = vmul.f32 %v378_v2, %v378_v2  ;;  %v360_v5 = vmul.f32 %v359_v3, %v359_v3  ;;  %v368_v7 = vmul.f32 %v367_v6, %v367_v6 }
 0x1c3   :  { %380 = vadd.xlane.f32.xlu1 %v379_v4  ;;  %361 = vadd.xlane.f32.xlu0 %v360_v5 }
 0x1c7   :  { %369 = vadd.xlane.f32.xlu0 %v368_v7 }
 0x250   :  { %v362_v8 = vpop.xlane.xlu0 %361  ;;  %v381_v10 = vpop.xlane.xlu1 %380 }
 0x254   :  { %v370_v9 = vpop.xlane.xlu0 %369 }
 0x255   :  { %vm371_vm7 = vcmp.lt.f32.partialorder %v370_v9, %v362_v8 }
 0x256   :  { %v372_v12 = vsel %vm371_vm7, %v370_v9, %v362_v8  ;;  %v373_v14 = vsel %vm371_vm7, 1, %v1685_v13 }
 0x257   :  { %vm382_vm8 = vcmp.lt.f32.partialorder %v381_v10, %v372_v12 }
 0x258   :  { %v383_v15 = vsel %vm382_vm8, 2, %v373_v14 }
 0x259   :  { %vm384_vm9 = vcmp.eq.s32.totalorder %v383_v15, 0  ;;  %vm408_vm10 = vcmp.eq.s32.totalorder %v383_v15, 1  ;;  %vm432_vm11 = vcmp.eq.s32.totalorder %v383_v15, 2 }
 0x25a   :  { %v1451_v16 = vsel %vm384_vm9, 1.0, %v1684_v11  ;;  %v1452_v17 = vsel %vm408_vm10, 1.0, %v1684_v11  ;;  %v394_v19 = vsel %vm384_vm9, %v1824_v61, 0.0  ;;  %v418_v21 = vsel %vm408_vm10, %v1824_v61, 0.0 }
 0x25b   :  { %v387_v18 = vrot.slane %v1451_v16, 4  ;;  %v411_v20 = vrot.slane %v1452_v17, 4  ;;  %v1453_v22 = vsel %vm432_vm11, 1.0, %v1684_v11  ;;  %v395_v25 = vrot.slane %v394_v19, 4 }
 0x25c   :  { %v435_v26 = vrot.slane %v1453_v22, 4  ;;  %v442_v27 = vsel %vm432_vm11, %v1824_v61, 0.0  ;;  %v419_v30 = vrot.slane %v418_v21, 4 }
 0x25d   :  { %v388_v23 = vadd.f32 %v1451_v16, %v387_v18  ;;  %v412_v24 = vadd.f32 %v1452_v17, %v411_v20  ;;  %v443_v34 = vrot.slane %v442_v27, 4  ;;  %v396_v35 = vadd.f32 %v395_v25, %v394_v19 }
 0x25e   :  { %v436_v31 = vadd.f32 %v1453_v22, %v435_v26  ;;  %v420_v39 = vadd.f32 %v419_v30, %v418_v21 }
 0x25f   :  { %v389_v28 = vrot.slane %v388_v23, 2  ;;  %v413_v29 = vrot.slane %v412_v24, 2  ;;  %v444_v43 = vadd.f32 %v443_v34, %v442_v27  ;;  %v397_v45 = vrot.slane %v396_v35, 2 }
 0x260   :  { %v437_v36 = vrot.slane %v436_v31, 2  ;;  %v421_v48 = vrot.slane %v420_v39, 2 }
 0x261   :  { %v390_v32 = vadd.f32 %v389_v28, %v388_v23  ;;  %v414_v33 = vadd.f32 %v413_v29, %v412_v24  ;;  %v445_v51 = vrot.slane %v444_v43, 2  ;;  %v398_v52 = vadd.f32 %v397_v45, %v396_v35 }
 0x262   :  { %v438_v40 = vadd.f32 %v437_v36, %v436_v31  ;;  %v422_v54 = vadd.f32 %v421_v48, %v420_v39 }
 0x263   :  { %v391_v37 = vrot.slane %v390_v32, 1  ;;  %v415_v38 = vrot.slane %v414_v33, 1  ;;  %v446_v55 = vadd.f32 %v445_v51, %v444_v43  ;;  %v399_v56 = vrot.slane %v398_v52, 1 }
 0x264   :  { %v439_v46 = vrot.slane %v438_v40, 1  ;;  %v423_v57 = vrot.slane %v422_v54, 1 }
 0x265   :  { %v392_v41 = vadd.f32 %v391_v37, %v390_v32  ;;  %v416_v42 = vadd.f32 %v415_v38, %v414_v33  ;;  %v447_v62 = vrot.slane %v446_v55, 1  ;;  %v400_v63 = vadd.f32 %v399_v56, %v398_v52 }
 0x266   :  { %v440_v50 = vadd.f32 %v439_v46, %v438_v40  ;;  %v424_v1 = vadd.f32 %v423_v57, %v422_v54 }
 0x267   :  { %v402_v47 = vmax.f32 %v392_v41, 1.0  ;;  %v426_v49 = vmax.f32 %v416_v42, 1.0  ;;  %vm401_vm12 = vcmp.gt.f32.partialorder %v392_v41, 0.0  ;;  %v448_v5 = vadd.f32 %v447_v62, %v446_v55 }
 0x268   :  { %v450_v53 = vmax.f32 %v440_v50, 1.0  ;;  %vm425_vm14 = vcmp.gt.f32.partialorder %v416_v42, 0.0  ;;  %vm449_vm0 = vcmp.gt.f32.partialorder %v440_v50, 0.0 }
 0x269   :  { %1597 = vrcp.f32 %v402_v47 }
 0x26a   :  { %1599 = vrcp.f32 %v426_v49 }
 0x26b   :  { %1601 = vrcp.f32 %v450_v53 }
 0x273   :  { %v1598_v0 = vpop.eup %1597 }
 0x274   :  { %v1600_v2 = vpop.eup %1599  ;;  %v404_v3 = vmul.f32 %v1598_v0, %v400_v63 }
 0x275   :  { %v428_v4 = vmul.f32 %v1600_v2, %v424_v1  ;;  %v1602_v6 = vpop.eup %1601 }
 0x276   :  { %v407_v7 = vsel %vm401_vm12, %v404_v3, %v1824_v61  ;;  %v452_v9 = vmul.f32 %v1602_v6, %v448_v5 }
 0x277   :  { %v431_v8 = vsel %vm425_vm14, %v428_v4, %v1824_v61 }
 0x278   :  { %v457_v10 = vsel %vm456_vm13, %v407_v7, %v431_v8  ;;  %v455_v12 = vsel %vm449_vm0, %v452_v9, %v1824_v61 }
 0x279   :  { %v1849_v14 = vsel %vm458_vm15, %v457_v10, %v455_v12 }
 0x27a   :  { %v471_v15 = vrot.slane %v1849_v14, %v1820_v59  ;;  %v463_v16 = vrot.slane %v1849_v14, %v1818_v58  ;;  %v482_v17 = vrot.slane %v1849_v14, %v1822_v60 }
 0x27c   :  { %v472_v18 = vsub.f32 %v1824_v61, %v471_v15  ;;  %v464_v19 = vsub.f32 %v1824_v61, %v463_v16  ;;  %v483_v22 = vsub.f32 %v1824_v61, %v482_v17 }
 0x27e   :  { %v473_v20 = vmul.f32 %v472_v18, %v472_v18  ;;  %v465_v21 = vmul.f32 %v464_v19, %v464_v19  ;;  %v484_v23 = vmul.f32 %v483_v22, %v483_v22 }
 0x280   :  { %474 = vadd.xlane.f32.xlu0 %v473_v20  ;;  %466 = vadd.xlane.f32.xlu1 %v465_v21 }
 0x284   :  { %485 = vadd.xlane.f32.xlu1 %v484_v23 }
 0x290   :  { %v1860_v24 = vpop.f32.mrb[0].mxu0 }
 0x291   :  { %v1561_v25 = vpop.f32.mrb[1].mxu0 }
 0x30d   :  { %v475_v26 = vpop.xlane.xlu0 %474  ;;  %v467_v27 = vpop.xlane.xlu1 %466 }
 0x30e   :  { %vm476_vm1 = vcmp.lt.f32.partialorder %v475_v26, %v467_v27 }
 0x30f   :  { %v477_v28 = vsel %vm476_vm1, %v475_v26, %v467_v27  ;;  %v478_v30 = vsel %vm476_vm1, 1, %v1685_v13 }
 0x311   :  { %v486_v29 = vpop.xlane.xlu1 %485 }
 0x312   :  { %vm487_vm2 = vcmp.lt.f32.partialorder %v486_v29, %v477_v28 }
 0x313   :  { %v488_v31 = vsel %vm487_vm2, 2, %v478_v30 }
 0x314   :  { %vm489_vm3 = vcmp.eq.s32.totalorder %v488_v31, 0  ;;  %vm513_vm4 = vcmp.eq.s32.totalorder %v488_v31, 1  ;;  %vm537_vm5 = vcmp.eq.s32.totalorder %v488_v31, 2 }
 0x315   :  { %v1454_v32 = vsel %vm489_vm3, 1.0, %v1684_v11  ;;  %v1455_v33 = vsel %vm513_vm4, 1.0, %v1684_v11  ;;  %v499_v35 = vsel %vm489_vm3, %v1824_v61, 0.0  ;;  %v523_v37 = vsel %vm513_vm4, %v1824_v61, 0.0 }
 0x316   :  { %v492_v34 = vrot.slane %v1454_v32, 4  ;;  %v516_v36 = vrot.slane %v1455_v33, 4  ;;  %v1456_v38 = vsel %vm537_vm5, 1.0, %v1684_v11  ;;  %v500_v41 = vrot.slane %v499_v35, 4 }
 0x317   :  { %v540_v42 = vrot.slane %v1456_v38, 4  ;;  %v547_v43 = vsel %vm537_vm5, %v1824_v61, 0.0  ;;  %v524_v47 = vrot.slane %v523_v37, 4 }
 0x318   :  { %v493_v39 = vadd.f32 %v1454_v32, %v492_v34  ;;  %v517_v40 = vadd.f32 %v1455_v33, %v516_v36  ;;  %v548_v51 = vrot.slane %v547_v43, 4  ;;  %v501_v52 = vadd.f32 %v500_v41, %v499_v35 }
 0x319   :  { %v541_v48 = vadd.f32 %v1456_v38, %v540_v42  ;;  %v525_v56 = vadd.f32 %v524_v47, %v523_v37 }
 0x31a   :  { %v494_v45 = vrot.slane %v493_v39, 2  ;;  %v518_v46 = vrot.slane %v517_v40, 2  ;;  %v549_v0 = vadd.f32 %v548_v51, %v547_v43  ;;  %v502_v1 = vrot.slane %v501_v52, 2 }
 0x31b   :  { %v542_v53 = vrot.slane %v541_v48, 2  ;;  %v526_v4 = vrot.slane %v525_v56, 2 }
 0x31c   :  { %v495_v49 = vadd.f32 %v494_v45, %v493_v39  ;;  %v519_v50 = vadd.f32 %v518_v46, %v517_v40  ;;  %v550_v7 = vrot.slane %v549_v0, 2  ;;  %v503_v8 = vadd.f32 %v502_v1, %v501_v52 }
 0x31d   :  { %v543_v57 = vadd.f32 %v542_v53, %v541_v48  ;;  %v527_v10 = vadd.f32 %v526_v4, %v525_v56 }
 0x31e   :  { %v496_v54 = vrot.slane %v495_v49, 1  ;;  %v520_v55 = vrot.slane %v519_v50, 1  ;;  %v551_v12 = vadd.f32 %v550_v7, %v549_v0  ;;  %v504_v15 = vrot.slane %v503_v8, 1 }
 0x31f   :  { %v544_v2 = vrot.slane %v543_v57, 1  ;;  %v528_v16 = vrot.slane %v527_v10, 1 }
 0x320   :  { %v497_v62 = vadd.f32 %v496_v54, %v495_v49  ;;  %v521_v63 = vadd.f32 %v520_v55, %v519_v50  ;;  %v552_v17 = vrot.slane %v551_v12, 1  ;;  %v505_v18 = vadd.f32 %v504_v15, %v503_v8 }
 0x321   :  { %v545_v6 = vadd.f32 %v544_v2, %v543_v57  ;;  %v529_v20 = vadd.f32 %v528_v16, %v527_v10 }
 0x322   :  { %v507_v3 = vmax.f32 %v497_v62, 1.0  ;;  %v531_v5 = vmax.f32 %v521_v63, 1.0  ;;  %vm506_vm6 = vcmp.gt.f32.partialorder %v497_v62, 0.0  ;;  %v553_v25 = vadd.f32 %v552_v17, %v551_v12 }
 0x323   :  { %v555_v9 = vmax.f32 %v545_v6, 1.0  ;;  %vm530_vm7 = vcmp.gt.f32.partialorder %v521_v63, 0.0  ;;  %vm554_vm8 = vcmp.gt.f32.partialorder %v545_v6, 0.0 }
 0x324   :  { %1603 = vrcp.f32 %v507_v3 }
 0x325   :  { %1605 = vrcp.f32 %v531_v5 }
 0x326   :  { %1607 = vrcp.f32 %v555_v9 }
 0x32e   :  { %v1604_v19 = vpop.eup %1603 }
 0x32f   :  { %v1606_v21 = vpop.eup %1605  ;;  %v509_v22 = vmul.f32 %v1604_v19, %v505_v18 }
 0x330   :  { %v533_v23 = vmul.f32 %v1606_v21, %v529_v20  ;;  %v1608_v26 = vpop.eup %1607 }
 0x331   :  { %v512_v27 = vsel %vm506_vm6, %v509_v22, %v1849_v14  ;;  %v557_v29 = vmul.f32 %v1608_v26, %v553_v25 }
 0x332   :  { %v536_v28 = vsel %vm530_vm7, %v533_v23, %v1849_v14 }
 0x333   :  { %v561_v30 = vsel %vm456_vm13, %v512_v27, %v536_v28  ;;  %v560_v31 = vsel %vm554_vm8, %v557_v29, %v1849_v14 }
 0x334   :  { %v1874_v32 = vsel %vm458_vm15, %v561_v30, %v560_v31 }
 0x335   :  { %v574_v33 = vrot.slane %v1874_v32, %v1820_v59  ;;  %v566_v34 = vrot.slane %v1874_v32, %v1818_v58  ;;  %v585_v35 = vrot.slane %v1874_v32, %v1822_v60 }
 0x337   :  { %v575_v36 = vsub.f32 %v1824_v61, %v574_v33  ;;  %v567_v37 = vsub.f32 %v1824_v61, %v566_v34  ;;  %v586_v14 = vsub.f32 %v1824_v61, %v585_v35 }
 0x339   :  { %v576_v38 = vmul.f32 %v575_v36, %v575_v36  ;;  %v568_v39 = vmul.f32 %v567_v37, %v567_v37  ;;  %v587_v40 = vmul.f32 %v586_v14, %v586_v14 }
 0x33b   :  { %577 = vadd.xlane.f32.xlu1 %v576_v38  ;;  %569 = vadd.xlane.f32.xlu0 %v568_v39 }
 0x33f   :  { %588 = vadd.xlane.f32.xlu0 %v587_v40 }
 0x3c8   :  { %v578_v41 = vpop.xlane.xlu1 %577  ;;  %v570_v42 = vpop.xlane.xlu0 %569 }
 0x3c9   :  { %vm579_vm9 = vcmp.lt.f32.partialorder %v578_v41, %v570_v42 }
 0x3ca   :  { %v580_v43 = vsel %vm579_vm9, %v578_v41, %v570_v42  ;;  %v581_v46 = vsel %vm579_vm9, 1, %v1685_v13 }
 0x3cc   :  { %v589_v45 = vpop.xlane.xlu0 %588 }
 0x3cd   :  { %vm590_vm10 = vcmp.lt.f32.partialorder %v589_v45, %v580_v43 }
 0x3ce   :  { %v591_v47 = vsel %vm590_vm10, 2, %v581_v46 }
 0x3cf   :  { %vm592_vm11 = vcmp.eq.s32.totalorder %v591_v47, 0  ;;  %vm616_vm12 = vcmp.eq.s32.totalorder %v591_v47, 1  ;;  %vm640_vm14 = vcmp.eq.s32.totalorder %v591_v47, 2 }
 0x3d0   :  { %v1457_v48 = vsel %vm592_vm11, 1.0, %v1684_v11  ;;  %v1458_v49 = vsel %vm616_vm12, 1.0, %v1684_v11  ;;  %v602_v51 = vsel %vm592_vm11, %v1824_v61, 0.0  ;;  %v626_v53 = vsel %vm616_vm12, %v1824_v61, 0.0 }
 0x3d1   :  { %v595_v50 = vrot.slane %v1457_v48, 4  ;;  %v619_v52 = vrot.slane %v1458_v49, 4  ;;  %v1459_v54 = vsel %vm640_vm14, 1.0, %v1684_v11  ;;  %v603_v57 = vrot.slane %v602_v51, 4 }
 0x3d2   :  { %v643_v62 = vrot.slane %v1459_v54, 4  ;;  %v650_v63 = vsel %vm640_vm14, %v1824_v61, 0.0  ;;  %v627_v2 = vrot.slane %v626_v53, 4 }
 0x3d3   :  { %v596_v55 = vadd.f32 %v1457_v48, %v595_v50  ;;  %v620_v56 = vadd.f32 %v1458_v49, %v619_v52  ;;  %v651_v6 = vrot.slane %v650_v63, 4  ;;  %v604_v7 = vadd.f32 %v603_v57, %v602_v51 }
 0x3d4   :  { %v644_v3 = vadd.f32 %v1459_v54, %v643_v62  ;;  %v628_v12 = vadd.f32 %v627_v2, %v626_v53 }
 0x3d5   :  { %v597_v0 = vrot.slane %v596_v55, 2  ;;  %v621_v1 = vrot.slane %v620_v56, 2  ;;  %v652_v18 = vadd.f32 %v651_v6, %v650_v63  ;;  %v605_v19 = vrot.slane %v604_v7, 2 }
 0x3d6   :  { %v645_v8 = vrot.slane %v644_v3, 2  ;;  %v629_v22 = vrot.slane %v628_v12, 2 }
 0x3d7   :  { %v598_v4 = vadd.f32 %v597_v0, %v596_v55  ;;  %v622_v5 = vadd.f32 %v621_v1, %v620_v56  ;;  %v653_v26 = vrot.slane %v652_v18, 2  ;;  %v606_v27 = vadd.f32 %v605_v19, %v604_v7 }
 0x3d8   :  { %v646_v15 = vadd.f32 %v645_v8, %v644_v3  ;;  %v630_v29 = vadd.f32 %v629_v22, %v628_v12 }
 0x3d9   :  { %v599_v9 = vrot.slane %v598_v4, 1  ;;  %v623_v10 = vrot.slane %v622_v5, 1  ;;  %v654_v30 = vadd.f32 %v653_v26, %v652_v18  ;;  %v607_v31 = vrot.slane %v606_v27, 1 }
 0x3da   :  { %v647_v20 = vrot.slane %v646_v15, 1  ;;  %v631_v33 = vrot.slane %v630_v29, 1 }
 0x3db   :  { %v600_v16 = vadd.f32 %v599_v9, %v598_v4  ;;  %v624_v17 = vadd.f32 %v623_v10, %v622_v5  ;;  %v655_v34 = vrot.slane %v654_v30, 1  ;;  %v608_v35 = vadd.f32 %v607_v31, %v606_v27 }
 0x3dc   :  { %v648_v25 = vadd.f32 %v647_v20, %v646_v15  ;;  %v632_v37 = vadd.f32 %v631_v33, %v630_v29 }
 0x3dd   :  { %v610_v21 = vmax.f32 %v600_v16, 1.0  ;;  %v634_v23 = vmax.f32 %v624_v17, 1.0  ;;  %vm609_vm0 = vcmp.gt.f32.partialorder %v600_v16, 0.0  ;;  %v656_v40 = vadd.f32 %v655_v34, %v654_v30 }
 0x3de   :  { %v658_v28 = vmax.f32 %v648_v25, 1.0  ;;  %vm633_vm1 = vcmp.gt.f32.partialorder %v624_v17, 0.0  ;;  %vm657_vm2 = vcmp.gt.f32.partialorder %v648_v25, 0.0 }
 0x3df   :  { %1609 = vrcp.f32 %v610_v21 }
 0x3e0   :  { %1611 = vrcp.f32 %v634_v23 }
 0x3e1   :  { %1613 = vrcp.f32 %v658_v28 }
 0x3e9   :  { %v1610_v36 = vpop.eup %1609 }
 0x3ea   :  { %v1612_v38 = vpop.eup %1611  ;;  %v612_v39 = vmul.f32 %v1610_v36, %v608_v35 }
 0x3eb   :  { %v636_v14 = vmul.f32 %v1612_v38, %v632_v37  ;;  %v1614_v41 = vpop.eup %1613 }
 0x3ec   :  { %v615_v42 = vsel %vm609_vm0, %v612_v39, %v1874_v32  ;;  %v660_v45 = vmul.f32 %v1614_v41, %v656_v40 }
 0x3ed   :  { %v639_v43 = vsel %vm633_vm1, %v636_v14, %v1874_v32 }
 0x3ee   :  { %v664_v46 = vsel %vm456_vm13, %v615_v42, %v639_v43  ;;  %v663_v47 = vsel %vm657_vm2, %v660_v45, %v1874_v32 }
 0x3ef   :  { %v1897_v48 = vsel %vm458_vm15, %v664_v46, %v663_v47 }
 0x3f0   :  { %v677_v49 = vrot.slane %v1897_v48, %v1820_v59  ;;  %v669_v50 = vrot.slane %v1897_v48, %v1818_v58  ;;  %v688_v51 = vrot.slane %v1897_v48, %v1822_v60 }
 0x3f2   :  { %v678_v52 = vsub.f32 %v1824_v61, %v677_v49  ;;  %v670_v53 = vsub.f32 %v1824_v61, %v669_v50  ;;  %v689_v32 = vsub.f32 %v1824_v61, %v688_v51 }
 0x3f4   :  { %v679_v54 = vmul.f32 %v678_v52, %v678_v52  ;;  %v671_v55 = vmul.f32 %v670_v53, %v670_v53  ;;  %v690_v56 = vmul.f32 %v689_v32, %v689_v32 }
 0x3f6   :  { %680 = vadd.xlane.f32.xlu0 %v679_v54  ;;  %672 = vadd.xlane.f32.xlu1 %v671_v55 }
 0x3fa   :  { %691 = vadd.xlane.f32.xlu1 %v690_v56 }
 0x483   :  { %v681_v57 = vpop.xlane.xlu0 %680  ;;  %v673_v62 = vpop.xlane.xlu1 %672 }
 0x484   :  { %vm682_vm3 = vcmp.lt.f32.partialorder %v681_v57, %v673_v62 }
 0x485   :  { %v683_v63 = vsel %vm682_vm3, %v681_v57, %v673_v62  ;;  %v684_v1 = vsel %vm682_vm3, 1, %v1685_v13 }
 0x487   :  { %v692_v0 = vpop.xlane.xlu1 %691 }
 0x488   :  { %vm693_vm4 = vcmp.lt.f32.partialorder %v692_v0, %v683_v63 }
 0x489   :  { %v694_v2 = vsel %vm693_vm4, 2, %v684_v1 }
 0x48a   :  { %vm695_vm5 = vcmp.eq.s32.totalorder %v694_v2, 0  ;;  %vm719_vm6 = vcmp.eq.s32.totalorder %v694_v2, 1  ;;  %vm743_vm7 = vcmp.eq.s32.totalorder %v694_v2, 2 }
 0x48b   :  { %v1460_v3 = vsel %vm695_vm5, 1.0, %v1684_v11  ;;  %v1461_v4 = vsel %vm719_vm6, 1.0, %v1684_v11  ;;  %v705_v6 = vsel %vm695_vm5, %v1824_v61, 0.0  ;;  %v729_v8 = vsel %vm719_vm6, %v1824_v61, 0.0 }
 0x48c   :  { %v698_v5 = vrot.slane %v1460_v3, 4  ;;  %v722_v7 = vrot.slane %v1461_v4, 4  ;;  %v1462_v9 = vsel %vm743_vm7, 1.0, %v1684_v11  ;;  %v706_v15 = vrot.slane %v705_v6, 4 }
 0x48d   :  { %v746_v16 = vrot.slane %v1462_v9, 4  ;;  %v753_v17 = vsel %vm743_vm7, %v1824_v61, 0.0  ;;  %v730_v20 = vrot.slane %v729_v8, 4 }
 0x48e   :  { %v699_v10 = vadd.f32 %v1460_v3, %v698_v5  ;;  %v723_v12 = vadd.f32 %v1461_v4, %v722_v7  ;;  %v754_v25 = vrot.slane %v753_v17, 4  ;;  %v707_v26 = vadd.f32 %v706_v15, %v705_v6 }
 0x48f   :  { %v747_v21 = vadd.f32 %v1462_v9, %v746_v16  ;;  %v731_v30 = vadd.f32 %v730_v20, %v729_v8 }
 0x490   :  { %v700_v18 = vrot.slane %v699_v10, 2  ;;  %v724_v19 = vrot.slane %v723_v12, 2  ;;  %v755_v35 = vadd.f32 %v754_v25, %v753_v17  ;;  %v708_v36 = vrot.slane %v707_v26, 2 }
 0x491   :  { %v748_v27 = vrot.slane %v747_v21, 2  ;;  %v732_v39 = vrot.slane %v731_v30, 2 }
 0x492   :  { %v701_v22 = vadd.f32 %v700_v18, %v699_v10  ;;  %v725_v23 = vadd.f32 %v724_v19, %v723_v12  ;;  %v756_v41 = vrot.slane %v755_v35, 2  ;;  %v709_v42 = vadd.f32 %v708_v36, %v707_v26 }
 0x493   :  { %v749_v31 = vadd.f32 %v748_v27, %v747_v21  ;;  %v733_v45 = vadd.f32 %v732_v39, %v731_v30 }
 0x494   :  { %v702_v28 = vrot.slane %v701_v22, 1  ;;  %v726_v29 = vrot.slane %v725_v23, 1  ;;  %v757_v46 = vadd.f32 %v756_v41, %v755_v35  ;;  %v710_v47 = vrot.slane %v709_v42, 1 }
 0x495   :  { %v750_v37 = vrot.slane %v749_v31, 1  ;;  %v734_v49 = vrot.slane %v733_v45, 1 }
 0x496   :  { %v703_v33 = vadd.f32 %v702_v28, %v701_v22  ;;  %v727_v34 = vadd.f32 %v726_v29, %v725_v23  ;;  %v758_v50 = vrot.slane %v757_v46, 1  ;;  %v711_v51 = vadd.f32 %v710_v47, %v709_v42 }
 0x497   :  { %v751_v40 = vadd.f32 %v750_v37, %v749_v31  ;;  %v735_v53 = vadd.f32 %v734_v49, %v733_v45 }
 0x498   :  { %v713_v38 = vmax.f32 %v703_v33, 1.0  ;;  %v737_v14 = vmax.f32 %v727_v34, 1.0  ;;  %vm712_vm8 = vcmp.gt.f32.partialorder %v703_v33, 0.0  ;;  %v759_v56 = vadd.f32 %v758_v50, %v757_v46 }
 0x499   :  { %v761_v43 = vmax.f32 %v751_v40, 1.0  ;;  %vm736_vm9 = vcmp.gt.f32.partialorder %v727_v34, 0.0  ;;  %vm760_vm10 = vcmp.gt.f32.partialorder %v751_v40, 0.0 }
 0x49a   :  { %1615 = vrcp.f32 %v713_v38 }
 0x49b   :  { %1617 = vrcp.f32 %v737_v14 }
 0x49c   :  { %1619 = vrcp.f32 %v761_v43 }
 0x4a4   :  { %v1616_v52 = vpop.eup %1615 }
 0x4a5   :  { %v1618_v54 = vpop.eup %1617  ;;  %v715_v55 = vmul.f32 %v1616_v52, %v711_v51 }
 0x4a6   :  { %v739_v32 = vmul.f32 %v1618_v54, %v735_v53  ;;  %v1620_v57 = vpop.eup %1619 }
 0x4a7   :  { %v718_v62 = vsel %vm712_vm8, %v715_v55, %v1897_v48  ;;  %v763_v0 = vmul.f32 %v1620_v57, %v759_v56 }
 0x4a8   :  { %v742_v63 = vsel %vm736_vm9, %v739_v32, %v1897_v48 }
 0x4a9   :  { %v767_v1 = vsel %vm456_vm13, %v718_v62, %v742_v63  ;;  %v766_v2 = vsel %vm760_vm10, %v763_v0, %v1897_v48 }
 0x4aa   :  { %v1920_v3 = vsel %vm458_vm15, %v767_v1, %v766_v2 }
 0x4ab   :  { %v780_v4 = vrot.slane %v1920_v3, %v1820_v59  ;;  %v772_v5 = vrot.slane %v1920_v3, %v1818_v58  ;;  %v791_v6 = vrot.slane %v1920_v3, %v1822_v60 }
 0x4ad   :  { %v781_v7 = vsub.f32 %v1824_v61, %v780_v4  ;;  %v773_v8 = vsub.f32 %v1824_v61, %v772_v5  ;;  %v792_v48 = vsub.f32 %v1824_v61, %v791_v6 }
 0x4af   :  { %v782_v9 = vmul.f32 %v781_v7, %v781_v7  ;;  %v774_v10 = vmul.f32 %v773_v8, %v773_v8  ;;  %v793_v12 = vmul.f32 %v792_v48, %v792_v48 }
 0x4b1   :  { %783 = vadd.xlane.f32.xlu1 %v782_v9  ;;  %775 = vadd.xlane.f32.xlu0 %v774_v10 }
 0x4b5   :  { %794 = vadd.xlane.f32.xlu0 %v793_v12 }
 0x53e   :  { %v784_v15 = vpop.xlane.xlu1 %783  ;;  %v776_v16 = vpop.xlane.xlu0 %775 }
 0x53f   :  { %vm785_vm11 = vcmp.lt.f32.partialorder %v784_v15, %v776_v16 }
 0x540   :  { %v786_v17 = vsel %vm785_vm11, %v784_v15, %v776_v16  ;;  %v787_v19 = vsel %vm785_vm11, 1, %v1685_v13 }
 0x542   :  { %v795_v18 = vpop.xlane.xlu0 %794 }
 0x543   :  { %vm796_vm12 = vcmp.lt.f32.partialorder %v795_v18, %v786_v17 }
 0x544   :  { %v797_v20 = vsel %vm796_vm12, 2, %v787_v19 }
 0x545   :  { %vm798_vm14 = vcmp.eq.s32.totalorder %v797_v20, 0  ;;  %vm822_vm0 = vcmp.eq.s32.totalorder %v797_v20, 1  ;;  %vm846_vm1 = vcmp.eq.s32.totalorder %v797_v20, 2 }
 0x546   :  { %v1463_v21 = vsel %vm798_vm14, 1.0, %v1684_v11  ;;  %v1464_v22 = vsel %vm822_vm0, 1.0, %v1684_v11  ;;  %v808_v25 = vsel %vm798_vm14, %v1824_v61, 0.0  ;;  %v832_v27 = vsel %vm822_vm0, %v1824_v61, 0.0 }
 0x547   :  { %v801_v23 = vrot.slane %v1463_v21, 4  ;;  %v825_v26 = vrot.slane %v1464_v22, 4  ;;  %v1465_v28 = vsel %vm846_vm1, 1.0, %v1684_v11  ;;  %v809_v31 = vrot.slane %v808_v25, 4 }
 0x548   :  { %v849_v33 = vrot.slane %v1465_v28, 4  ;;  %v856_v34 = vsel %vm846_vm1, %v1824_v61, 0.0  ;;  %v833_v37 = vrot.slane %v832_v27, 4 }
 0x549   :  { %v802_v29 = vadd.f32 %v1463_v21, %v801_v23  ;;  %v826_v30 = vadd.f32 %v1464_v22, %v825_v26  ;;  %v857_v40 = vrot.slane %v856_v34, 4  ;;  %v810_v41 = vadd.f32 %v809_v31, %v808_v25 }
 0x54a   :  { %v850_v38 = vadd.f32 %v1465_v28, %v849_v33  ;;  %v834_v46 = vadd.f32 %v833_v37, %v832_v27 }
 0x54b   :  { %v803_v35 = vrot.slane %v802_v29, 2  ;;  %v827_v36 = vrot.slane %v826_v30, 2  ;;  %v858_v51 = vadd.f32 %v857_v40, %v856_v34  ;;  %v811_v52 = vrot.slane %v810_v41, 2 }
 0x54c   :  { %v851_v42 = vrot.slane %v850_v38, 2  ;;  %v835_v55 = vrot.slane %v834_v46, 2 }
 0x54d   :  { %v804_v39 = vadd.f32 %v803_v35, %v802_v29  ;;  %v828_v14 = vadd.f32 %v827_v36, %v826_v30  ;;  %v859_v57 = vrot.slane %v858_v51, 2  ;;  %v812_v62 = vadd.f32 %v811_v52, %v810_v41 }
 0x54e   :  { %v852_v47 = vadd.f32 %v851_v42, %v850_v38  ;;  %v836_v0 = vadd.f32 %v835_v55, %v834_v46 }
 0x54f   :  { %v805_v43 = vrot.slane %v804_v39, 1  ;;  %v829_v45 = vrot.slane %v828_v14, 1  ;;  %v860_v1 = vadd.f32 %v859_v57, %v858_v51  ;;  %v813_v2 = vrot.slane %v812_v62, 1 }
 0x550   :  { %v853_v53 = vrot.slane %v852_v47, 1  ;;  %v837_v4 = vrot.slane %v836_v0, 1 }
 0x551   :  { %v806_v49 = vadd.f32 %v805_v43, %v804_v39  ;;  %v830_v50 = vadd.f32 %v829_v45, %v828_v14  ;;  %v861_v5 = vrot.slane %v860_v1, 1  ;;  %v814_v6 = vadd.f32 %v813_v2, %v812_v62 }
 0x552   :  { %v854_v56 = vadd.f32 %v853_v53, %v852_v47  ;;  %v838_v8 = vadd.f32 %v837_v4, %v836_v0 }
 0x553   :  { %v816_v54 = vmax.f32 %v806_v49, 1.0  ;;  %v840_v32 = vmax.f32 %v830_v50, 1.0  ;;  %vm815_vm2 = vcmp.gt.f32.partialorder %v806_v49, 0.0  ;;  %v862_v12 = vadd.f32 %v861_v5, %v860_v1 }
 0x554   :  { %v864_v63 = vmax.f32 %v854_v56, 1.0  ;;  %vm839_vm3 = vcmp.gt.f32.partialorder %v830_v50, 0.0  ;;  %vm863_vm4 = vcmp.gt.f32.partialorder %v854_v56, 0.0 }
 0x555   :  { %1621 = vrcp.f32 %v816_v54 }
 0x556   :  { %1623 = vrcp.f32 %v840_v32 }
 0x557   :  { %1625 = vrcp.f32 %v864_v63 }
 0x55f   :  { %v1622_v7 = vpop.eup %1621 }
 0x560   :  { %v1624_v9 = vpop.eup %1623  ;;  %v818_v10 = vmul.f32 %v1622_v7, %v814_v6 }
 0x561   :  { %v842_v48 = vmul.f32 %v1624_v9, %v838_v8  ;;  %v1626_v15 = vpop.eup %1625 }
 0x562   :  { %v821_v16 = vsel %vm815_vm2, %v818_v10, %v1920_v3  ;;  %v866_v18 = vmul.f32 %v1626_v15, %v862_v12 }
 0x563   :  { %v845_v17 = vsel %vm839_vm3, %v842_v48, %v1920_v3 }
 0x564   :  { %v870_v19 = vsel %vm456_vm13, %v821_v16, %v845_v17  ;;  %v869_v20 = vsel %vm863_vm4, %v866_v18, %v1920_v3 }
 0x565   :  { %v1943_v21 = vsel %vm458_vm15, %v870_v19, %v869_v20 }
 0x566   :  { %v883_v22 = vrot.slane %v1943_v21, %v1820_v59  ;;  %v875_v23 = vrot.slane %v1943_v21, %v1818_v58  ;;  %v894_v25 = vrot.slane %v1943_v21, %v1822_v60 }
 0x568   :  { %v884_v26 = vsub.f32 %v1824_v61, %v883_v22  ;;  %v876_v27 = vsub.f32 %v1824_v61, %v875_v23  ;;  %v895_v3 = vsub.f32 %v1824_v61, %v894_v25 }
 0x56a   :  { %v885_v28 = vmul.f32 %v884_v26, %v884_v26  ;;  %v877_v29 = vmul.f32 %v876_v27, %v876_v27  ;;  %v896_v30 = vmul.f32 %v895_v3, %v895_v3 }
 0x56c   :  { %886 = vadd.xlane.f32.xlu0 %v885_v28  ;;  %878 = vadd.xlane.f32.xlu1 %v877_v29 }
 0x570   :  { %897 = vadd.xlane.f32.xlu1 %v896_v30 }
 0x5f9   :  { %v887_v31 = vpop.xlane.xlu0 %886  ;;  %v879_v33 = vpop.xlane.xlu1 %878 }
 0x5fa   :  { %vm888_vm5 = vcmp.lt.f32.partialorder %v887_v31, %v879_v33 }
 0x5fb   :  { %v889_v34 = vsel %vm888_vm5, %v887_v31, %v879_v33  ;;  %v890_v36 = vsel %vm888_vm5, 1, %v1685_v13 }
 0x5fd   :  { %v898_v35 = vpop.xlane.xlu1 %897 }
 0x5fe   :  { %vm899_vm6 = vcmp.lt.f32.partialorder %v898_v35, %v889_v34 }
 0x5ff   :  { %v900_v37 = vsel %vm899_vm6, 2, %v890_v36 }
 0x600   :  { %vm901_vm7 = vcmp.eq.s32.totalorder %v900_v37, 0  ;;  %vm925_vm8 = vcmp.eq.s32.totalorder %v900_v37, 1  ;;  %vm949_vm9 = vcmp.eq.s32.totalorder %v900_v37, 2 }
 0x601   :  { %v1466_v38 = vsel %vm901_vm7, 1.0, %v1684_v11  ;;  %v1467_v39 = vsel %vm925_vm8, 1.0, %v1684_v11  ;;  %v911_v40 = vsel %vm901_vm7, %v1824_v61, 0.0  ;;  %v935_v42 = vsel %vm925_vm8, %v1824_v61, 0.0 }
 0x602   :  { %v904_v14 = vrot.slane %v1466_v38, 4  ;;  %v928_v41 = vrot.slane %v1467_v39, 4  ;;  %v1468_v43 = vsel %vm949_vm9, 1.0, %v1684_v11  ;;  %v912_v47 = vrot.slane %v911_v40, 4 }
 0x603   :  { %v952_v49 = vrot.slane %v1468_v43, 4  ;;  %v959_v50 = vsel %vm949_vm9, %v1824_v61, 0.0  ;;  %v936_v53 = vrot.slane %v935_v42, 4 }
 0x604   :  { %v905_v45 = vadd.f32 %v1466_v38, %v904_v14  ;;  %v929_v46 = vadd.f32 %v1467_v39, %v928_v41  ;;  %v960_v56 = vrot.slane %v959_v50, 4  ;;  %v913_v57 = vadd.f32 %v912_v47, %v911_v40  ;;  %v1974_v40 = vld [vmem:[#allocation2] sm:$0xff] }
 0x605   :  { %v953_v54 = vadd.f32 %v1468_v43, %v952_v49  ;;  %v937_v1 = vadd.f32 %v936_v53, %v935_v42 }
 0x606   :  { %v906_v51 = vrot.slane %v905_v45, 2  ;;  %v930_v52 = vrot.slane %v929_v46, 2  ;;  %v961_v6 = vadd.f32 %v960_v56, %v959_v50  ;;  %v914_v7 = vrot.slane %v913_v57, 2 }
 0x607   :  { %v954_v62 = vrot.slane %v953_v54, 2  ;;  %v938_v61 = vrot.slane %v937_v1, 2 }
 0x608   :  { %v907_v55 = vadd.f32 %v906_v51, %v905_v45  ;;  %v931_v32 = vadd.f32 %v930_v52, %v929_v46  ;;  %v962_v12 = vrot.slane %v961_v6, 2  ;;  %v915_v15 = vadd.f32 %v914_v7, %v913_v57 }
 0x609   :  { %v955_v2 = vadd.f32 %v954_v62, %v953_v54  ;;  %v939_v17 = vadd.f32 %v938_v61, %v937_v1 }
 0x60a   :  { %v908_v63 = vrot.slane %v907_v55, 1  ;;  %v932_v0 = vrot.slane %v931_v32, 1  ;;  %v963_v18 = vadd.f32 %v962_v12, %v961_v6  ;;  %v916_v19 = vrot.slane %v915_v15, 1 }
 0x60b   :  { %v956_v8 = vrot.slane %v955_v2, 1  ;;  %v940_v20 = vrot.slane %v939_v17, 1 }
 0x60c   :  { %v909_v4 = vadd.f32 %v908_v63, %v907_v55  ;;  %v933_v5 = vadd.f32 %v932_v0, %v931_v32  ;;  %v964_v22 = vrot.slane %v963_v18, 1  ;;  %v917_v23 = vadd.f32 %v916_v19, %v915_v15 }
 0x60d   :  { %v957_v48 = vadd.f32 %v956_v8, %v955_v2  ;;  %v941_v26 = vadd.f32 %v940_v20, %v939_v17 }
 0x60e   :  { %v919_v9 = vmax.f32 %v909_v4, 1.0  ;;  %v943_v10 = vmax.f32 %v933_v5, 1.0  ;;  %vm918_vm10 = vcmp.gt.f32.partialorder %v909_v4, 0.0  ;;  %v965_v3 = vadd.f32 %v964_v22, %v963_v18 }
 0x60f   :  { %v967_v16 = vmax.f32 %v957_v48, 1.0  ;;  %vm942_vm11 = vcmp.gt.f32.partialorder %v933_v5, 0.0  ;;  %vm966_vm12 = vcmp.gt.f32.partialorder %v957_v48, 0.0 }
 0x610   :  { %1627 = vrcp.f32 %v919_v9 }
 0x611   :  { %1629 = vrcp.f32 %v943_v10 }
 0x612   :  { %1631 = vrcp.f32 %v967_v16 }
 0x61a   :  { %v1628_v25 = vpop.eup %1627 }
 0x61b   :  { %v1630_v27 = vpop.eup %1629  ;;  %v921_v28 = vmul.f32 %v1628_v25, %v917_v23 }
 0x61c   :  { %v945_v29 = vmul.f32 %v1630_v27, %v941_v26  ;;  %v1632_v30 = vpop.eup %1631 }
 0x61d   :  { %v924_v31 = vsel %vm918_vm10, %v921_v28, %v1943_v21  ;;  %v969_v34 = vmul.f32 %v1632_v30, %v965_v3 }
 0x61e   :  { %v948_v33 = vsel %vm942_vm11, %v945_v29, %v1943_v21 }
 0x61f   :  { %v973_v35 = vsel %vm456_vm13, %v924_v31, %v948_v33  ;;  %v972_v36 = vsel %vm966_vm12, %v969_v34, %v1943_v21 }
 0x620   :  { %v1966_v37 = vsel %vm458_vm15, %v973_v35, %v972_v36 }
 0x621   :  { %v986_v38 = vrot.slane %v1966_v37, %v1820_v59  ;;  %v978_v39 = vrot.slane %v1966_v37, %v1818_v58  ;;  %v997_v14 = vrot.slane %v1966_v37, %v1822_v60 }
 0x623   :  { %v987_v41 = vsub.f32 %v1974_v40, %v986_v38  ;;  %v979_v42 = vsub.f32 %v1974_v40, %v978_v39  ;;  %v998_v45 = vsub.f32 %v1974_v40, %v997_v14 }
 0x625   :  { %v988_v43 = vmul.f32 %v987_v41, %v987_v41  ;;  %v980_v21 = vmul.f32 %v979_v42, %v979_v42  ;;  %v999_v46 = vmul.f32 %v998_v45, %v998_v45 }
 0x627   :  { %989 = vadd.xlane.f32.xlu1 %v988_v43  ;;  %981 = vadd.xlane.f32.xlu0 %v980_v21 }
 0x62b   :  { %1000 = vadd.xlane.f32.xlu0 %v999_v46 }
 0x6b4   :  { %v990_v47 = vpop.xlane.xlu1 %989  ;;  %v982_v49 = vpop.xlane.xlu0 %981 }
 0x6b5   :  { %vm991_vm14 = vcmp.lt.f32.partialorder %v990_v47, %v982_v49 }
 0x6b6   :  { %v992_v50 = vsel %vm991_vm14, %v990_v47, %v982_v49  ;;  %v993_v52 = vsel %vm991_vm14, 1, %v1685_v13 }
 0x6b8   :  { %v1001_v51 = vpop.xlane.xlu0 %1000 }
 0x6b9   :  { %vm1002_vm0 = vcmp.lt.f32.partialorder %v1001_v51, %v992_v50 }
 0x6ba   :  { %v1003_v53 = vsel %vm1002_vm0, 2, %v993_v52 }
 0x6bb   :  { %vm1004_vm1 = vcmp.eq.s32.totalorder %v1003_v53, 0  ;;  %vm1028_vm2 = vcmp.eq.s32.totalorder %v1003_v53, 1  ;;  %vm1052_vm3 = vcmp.eq.s32.totalorder %v1003_v53, 2 }
 0x6bc   :  { %v1469_v54 = vsel %vm1004_vm1, 1.0, %v1684_v11  ;;  %v1470_v55 = vsel %vm1028_vm2, 1.0, %v1684_v11  ;;  %v1014_v56 = vsel %vm1004_vm1, %v1974_v40, 0.0  ;;  %v1038_v62 = vsel %vm1028_vm2, %v1974_v40, 0.0 }
 0x6bd   :  { %v1007_v32 = vrot.slane %v1469_v54, 4  ;;  %v1031_v57 = vrot.slane %v1470_v55, 4  ;;  %v1471_v63 = vsel %vm1052_vm3, 1.0, %v1684_v11  ;;  %v1015_v2 = vrot.slane %v1014_v56, 4 }
 0x6be   :  { %v1055_v4 = vrot.slane %v1471_v63, 4  ;;  %v1062_v5 = vsel %vm1052_vm3, %v1974_v40, 0.0  ;;  %v1039_v8 = vrot.slane %v1038_v62, 4  ;;  %vm334_vm1 = vcmask 39936  }
 0x6bf   :  { %v1008_v0 = vadd.f32 %v1469_v54, %v1007_v32  ;;  %v1032_v1 = vadd.f32 %v1470_v55, %v1031_v57  ;;  %v1063_v48 = vrot.slane %v1062_v5, 4  ;;  %v1016_v12 = vadd.f32 %v1015_v2, %v1014_v56 }
 0x6c0   :  { %v1056_v9 = vadd.f32 %v1471_v63, %v1055_v4  ;;  %v1040_v18 = vadd.f32 %v1039_v8, %v1038_v62 }
 0x6c1   :  { %v1009_v6 = vrot.slane %v1008_v0, 2  ;;  %v1033_v7 = vrot.slane %v1032_v1, 2  ;;  %v1064_v23 = vadd.f32 %v1063_v48, %v1062_v5  ;;  %v1017_v25 = vrot.slane %v1016_v12, 2 }
 0x6c2   :  { %v1057_v15 = vrot.slane %v1056_v9, 2  ;;  %v1041_v28 = vrot.slane %v1040_v18, 2 }
 0x6c3   :  { %v1010_v61 = vadd.f32 %v1009_v6, %v1008_v0  ;;  %v1034_v10 = vadd.f32 %v1033_v7, %v1032_v1  ;;  %v1065_v30 = vrot.slane %v1064_v23, 2  ;;  %v1018_v31 = vadd.f32 %v1017_v25, %v1016_v12 }
 0x6c4   :  { %v1058_v19 = vadd.f32 %v1057_v15, %v1056_v9  ;;  %v1042_v34 = vadd.f32 %v1041_v28, %v1040_v18 }
 0x6c5   :  { %v1011_v16 = vrot.slane %v1010_v61, 1  ;;  %v1035_v17 = vrot.slane %v1034_v10, 1  ;;  %v1066_v35 = vadd.f32 %v1065_v30, %v1064_v23  ;;  %v1019_v36 = vrot.slane %v1018_v31, 1 }
 0x6c6   :  { %v1059_v26 = vrot.slane %v1058_v19, 1  ;;  %v1043_v38 = vrot.slane %v1042_v34, 1 }
 0x6c7   :  { %v1012_v20 = vadd.f32 %v1011_v16, %v1010_v61  ;;  %v1036_v22 = vadd.f32 %v1035_v17, %v1034_v10  ;;  %v1067_v39 = vrot.slane %v1066_v35, 1  ;;  %v1020_v14 = vadd.f32 %v1019_v36, %v1018_v31 }
 0x6c8   :  { %v1060_v3 = vadd.f32 %v1059_v26, %v1058_v19  ;;  %v1044_v42 = vadd.f32 %v1043_v38, %v1042_v34 }
 0x6c9   :  { %v1022_v27 = vmax.f32 %v1012_v20, 1.0  ;;  %v1046_v29 = vmax.f32 %v1036_v22, 1.0  ;;  %vm1021_vm4 = vcmp.gt.f32.partialorder %v1012_v20, 0.0  ;;  %v1068_v46 = vadd.f32 %v1067_v39, %v1066_v35 }
 0x6ca   :  { %v1070_v33 = vmax.f32 %v1060_v3, 1.0  ;;  %vm1045_vm5 = vcmp.gt.f32.partialorder %v1036_v22, 0.0  ;;  %vm1069_vm6 = vcmp.gt.f32.partialorder %v1060_v3, 0.0 }
 0x6cb   :  { %1633 = vrcp.f32 %v1022_v27 }
 0x6cc   :  { %1635 = vrcp.f32 %v1046_v29 }
 0x6cd   :  { %1637 = vrcp.f32 %v1070_v33 }
 0x6d5   :  { %v1634_v41 = vpop.eup %1633 }
 0x6d6   :  { %v1636_v43 = vpop.eup %1635  ;;  %v1024_v21 = vmul.f32 %v1634_v41, %v1020_v14 }
 0x6d7   :  { %v1048_v45 = vmul.f32 %v1636_v43, %v1044_v42  ;;  %v1638_v47 = vpop.eup %1637 }
 0x6d8   :  { %v1027_v49 = vsel %vm1021_vm4, %v1024_v21, %v1966_v37  ;;  %v1072_v51 = vmul.f32 %v1638_v47, %v1068_v46 }
 0x6d9   :  { %v1051_v50 = vsel %vm1045_vm5, %v1048_v45, %v1966_v37 }
 0x6da   :  { %v1076_v52 = vsel %vm456_vm13, %v1027_v49, %v1051_v50  ;;  %v1075_v53 = vsel %vm1069_vm6, %v1072_v51, %v1966_v37 }
 0x6db   :  { %v1991_v54 = vsel %vm458_vm15, %v1076_v52, %v1075_v53 }
 0x6dc   :  { %v1089_v55 = vrot.slane %v1991_v54, %v1820_v59  ;;  %v1081_v32 = vrot.slane %v1991_v54, %v1818_v58  ;;  %v1100_v56 = vrot.slane %v1991_v54, %v1822_v60 }
 0x6de   :  { %v1090_v57 = vsub.f32 %v1974_v40, %v1089_v55  ;;  %v1082_v62 = vsub.f32 %v1974_v40, %v1081_v32  ;;  %v1101_v37 = vsub.f32 %v1974_v40, %v1100_v56 }
 0x6e0   :  { %v1091_v63 = vmul.f32 %v1090_v57, %v1090_v57  ;;  %v1083_v0 = vmul.f32 %v1082_v62, %v1082_v62  ;;  %v1102_v1 = vmul.f32 %v1101_v37, %v1101_v37 }
 0x6e2   :  { %1092 = vadd.xlane.f32.xlu0 %v1091_v63  ;;  %1084 = vadd.xlane.f32.xlu1 %v1083_v0 }
 0x6e6   :  { %1103 = vadd.xlane.f32.xlu1 %v1102_v1 }
 0x76f   :  { %v1093_v2 = vpop.xlane.xlu0 %1092  ;;  %v1085_v4 = vpop.xlane.xlu1 %1084 }
 0x770   :  { %vm1094_vm7 = vcmp.lt.f32.partialorder %v1093_v2, %v1085_v4 }
 0x771   :  { %v1095_v5 = vsel %vm1094_vm7, %v1093_v2, %v1085_v4  ;;  %v1096_v7 = vsel %vm1094_vm7, 1, %v1685_v13 }
 0x773   :  { %v1104_v6 = vpop.xlane.xlu1 %1103 }
 0x774   :  { %vm1105_vm8 = vcmp.lt.f32.partialorder %v1104_v6, %v1095_v5 }
 0x775   :  { %v1106_v8 = vsel %vm1105_vm8, 2, %v1096_v7 }
 0x776   :  { %vm1107_vm9 = vcmp.eq.s32.totalorder %v1106_v8, 0  ;;  %vm1131_vm10 = vcmp.eq.s32.totalorder %v1106_v8, 1  ;;  %vm1155_vm11 = vcmp.eq.s32.totalorder %v1106_v8, 2 }
 0x777   :  { %v1472_v9 = vsel %vm1107_vm9, 1.0, %v1684_v11  ;;  %v1473_v61 = vsel %vm1131_vm10, 1.0, %v1684_v11  ;;  %v1117_v48 = vsel %vm1107_vm9, %v1974_v40, 0.0  ;;  %v1141_v15 = vsel %vm1131_vm10, %v1974_v40, 0.0 }
 0x778   :  { %v1110_v10 = vrot.slane %v1472_v9, 4  ;;  %v1134_v12 = vrot.slane %v1473_v61, 4  ;;  %v1474_v16 = vsel %vm1155_vm11, 1.0, %v1684_v11  ;;  %v1118_v19 = vrot.slane %v1117_v48, 4 }
 0x779   :  { %v1158_v20 = vrot.slane %v1474_v16, 4  ;;  %v1165_v22 = vsel %vm1155_vm11, %v1974_v40, 0.0  ;;  %v1142_v26 = vrot.slane %v1141_v15, 4 }
 0x77a   :  { %v1111_v17 = vadd.f32 %v1472_v9, %v1110_v10  ;;  %v1135_v18 = vadd.f32 %v1473_v61, %v1134_v12  ;;  %v1166_v3 = vrot.slane %v1165_v22, 4  ;;  %v1119_v30 = vadd.f32 %v1118_v19, %v1117_v48  ;;  %v1450_v12 = vld [vmem:[%s2105_s5] ss:$0 sm:$0xff]  ;;  %s1686_s5 = smov [#allocation2]  }
 0x77b   :  { %v1159_v27 = vadd.f32 %v1474_v16, %v1158_v20  ;;  %v1143_v35 = vadd.f32 %v1142_v26, %v1141_v15  ;;  %v2029_v19 = vadd.f32 %v1450_v12, %v1860_v24  ;;  %s1426_s23 = sshll.u32 %s1686_s5, 4  ;;  %s1427_s23 = int_to_ptr.vmem [resolvable:$true] %s1426_s23 }
 0x77c   :  { %v1112_v23 = vrot.slane %v1111_v17, 2  ;;  %v1136_v25 = vrot.slane %v1135_v18, 2  ;;  %v1167_v14 = vadd.f32 %v1166_v3, %v1165_v22  ;;  %v1120_v41 = vrot.slane %v1119_v30, 2  ;;  %s1658_s24 = scalar_lea.vmem %s1427_s23, 128  ;;  %p1663_p1 = scmp.lt.s32.totalorder %s1427_s23, %s1427_s23 }
 0x77d   :  { %v1160_v31 = vrot.slane %v1159_v27, 2  ;;  %v1144_v21 = vrot.slane %v1143_v35, 2  ;;  %v335_v22 = vsel %vm334_vm1, %v2029_v19, -inf  ;;  %p1659_p0 = scmp.ne.s32.totalorder %s1427_s23, %s1658_s24  ;;  %p1664_p2 = scmp.lt.s32.totalorder %s1658_s24, %s1658_s24 }
 0x77e   :  { %v1113_v28 = vadd.f32 %v1112_v23, %v1111_v17  ;;  %v1137_v29 = vadd.f32 %v1136_v25, %v1135_v18  ;;  %v1168_v47 = vrot.slane %v1167_v14, 2  ;;  %v1121_v49 = vadd.f32 %v1120_v41, %v1119_v30 }
 0x77f   :  { %v1161_v36 = vadd.f32 %v1160_v31, %v1159_v27  ;;  %v1145_v51 = vadd.f32 %v1144_v21, %v1143_v35  ;;  %p1665_p3 = por %p1664_p2, %p1663_p1 }
 0x780   :  { %v1114_v33 = vrot.slane %v1113_v28, 1  ;;  %v1138_v34 = vrot.slane %v1137_v29, 1  ;;  %v1169_v52 = vadd.f32 %v1168_v47, %v1167_v14  ;;  %v1122_v53 = vrot.slane %v1121_v49, 1 }
 0x781   :  { %v1162_v42 = vrot.slane %v1161_v36, 1  ;;  %v1146_v55 = vrot.slane %v1145_v51, 1  ;;  %p1666_p4 = pnand %p1665_p3, %p1659_p0 }
 0x782   :  { %v1115_v38 = vadd.f32 %v1114_v33, %v1113_v28  ;;  %v1139_v39 = vadd.f32 %v1138_v34, %v1137_v29  ;;  %v1170_v32 = vrot.slane %v1169_v52, 1  ;;  %v1123_v56 = vadd.f32 %v1122_v53, %v1121_v49 }
 0x783   :  { %v1163_v46 = vadd.f32 %v1162_v42, %v1161_v36  ;;  %v1147_v62 = vadd.f32 %v1146_v55, %v1145_v51 }
 0x784   :  { %v1125_v43 = vmax.f32 %v1115_v38, 1.0  ;;  %v1149_v45 = vmax.f32 %v1139_v39, 1.0  ;;  %vm1124_vm12 = vcmp.gt.f32.partialorder %v1115_v38, 0.0  ;;  %v1171_v1 = vadd.f32 %v1170_v32, %v1169_v52 }
 0x785   :  { %v1173_v50 = vmax.f32 %v1163_v46, 1.0  ;;  %vm1148_vm14 = vcmp.gt.f32.partialorder %v1139_v39, 0.0  ;;  %vm1172_vm0 = vcmp.gt.f32.partialorder %v1163_v46, 0.0 }
 0x786   :  { %1639 = vrcp.f32 %v1125_v43 }
 0x787   :  { %1641 = vrcp.f32 %v1149_v45 }
 0x788   :  { %1643 = vrcp.f32 %v1173_v50 }
 0x790   :  { %v1640_v57 = vpop.eup %1639 }
 0x791   :  { %v1642_v63 = vpop.eup %1641  ;;  %v1127_v0 = vmul.f32 %v1640_v57, %v1123_v56 }
 0x792   :  { %v1151_v37 = vmul.f32 %v1642_v63, %v1147_v62  ;;  %v1644_v2 = vpop.eup %1643 }
 0x793   :  { %v1130_v4 = vsel %vm1124_vm12, %v1127_v0, %v1991_v54  ;;  %v1175_v6 = vmul.f32 %v1644_v2, %v1171_v1 }
 0x794   :  { %v1154_v5 = vsel %vm1148_vm14, %v1151_v37, %v1991_v54 }
 0x795   :  { %v1179_v7 = vsel %vm456_vm13, %v1130_v4, %v1154_v5  ;;  %v1178_v8 = vsel %vm1172_vm0, %v1175_v6, %v1991_v54 }
 0x796   :  { %v2014_v9 = vsel %vm458_vm15, %v1179_v7, %v1178_v8 }
 0x797   :  { %v1192_v61 = vrot.slane %v2014_v9, %v1820_v59  ;;  %v1184_v10 = vrot.slane %v2014_v9, %v1818_v58  ;;  %v1203_v48 = vrot.slane %v2014_v9, %v1822_v60 }
 0x799   :  { %v1193_v15 = vsub.f32 %v1974_v40, %v1192_v61  ;;  %v1185_v54 = vsub.f32 %v1974_v40, %v1184_v10  ;;  %v1204_v18 = vsub.f32 %v1974_v40, %v1203_v48 }
 0x79b   :  { %v1194_v16 = vmul.f32 %v1193_v15, %v1193_v15  ;;  %v1186_v17 = vmul.f32 %v1185_v54, %v1185_v54  ;;  %v1205_v20 = vmul.f32 %v1204_v18, %v1204_v18 }
 0x79d   :  { %1195 = vadd.xlane.f32.xlu1 %v1194_v16  ;;  %1187 = vadd.xlane.f32.xlu0 %v1186_v17 }
 0x7a1   :  { %1206 = vadd.xlane.f32.xlu0 %v1205_v20  ;;  %336 = vmax.xlane.f32.xlu1 %v335_v22 }
 0x82a   :  { %v1196_v23 = vpop.xlane.xlu1 %1195  ;;  %v1188_v25 = vpop.xlane.xlu0 %1187 }
 0x82b   :  { %vm1197_vm2 = vcmp.lt.f32.partialorder %v1196_v23, %v1188_v25 }
 0x82c   :  { %v1198_v26 = vsel %vm1197_vm2, %v1196_v23, %v1188_v25  ;;  %v1199_v28 = vsel %vm1197_vm2, 1, %v1685_v13 }
 0x82e   :  { %v1207_v27 = vpop.xlane.xlu0 %1206  ;;  %v337_v17 = vpop.xlane.xlu1 %336 }
 0x82f   :  { %vm1208_vm3 = vcmp.lt.f32.partialorder %v1207_v27, %v1198_v26  ;;  %vm338_vm9 = vcmp.eq.f32.partialorder %v2029_v19, %v337_v17 }
 0x830   :  { %v1209_v29 = vsel %vm1208_vm3, 2, %v1199_v28 }
 0x831   :  { %vm1210_vm4 = vcmp.eq.s32.totalorder %v1209_v29, 0  ;;  %vm1234_vm5 = vcmp.eq.s32.totalorder %v1209_v29, 1  ;;  %vm1258_vm6 = vcmp.eq.s32.totalorder %v1209_v29, 2 }
 0x832   :  { %v1475_v24 = vsel %vm1210_vm4, 1.0, %v1684_v11  ;;  %v1476_v3 = vsel %vm1234_vm5, 1.0, %v1684_v11  ;;  %v1220_v31 = vsel %vm1210_vm4, %v1974_v40, 0.0  ;;  %v1244_v34 = vsel %vm1234_vm5, %v1974_v40, 0.0 }
 0x833   :  { %v1213_v30 = vrot.slane %v1475_v24, 4  ;;  %v1237_v33 = vrot.slane %v1476_v3, 4  ;;  %v1477_v35 = vsel %vm1258_vm6, 1.0, %v1684_v11  ;;  %v1221_v39 = vrot.slane %v1220_v31, 4 }
 0x834   :  { %v1261_v14 = vrot.slane %v1477_v35, 4  ;;  %v1268_v41 = vsel %vm1258_vm6, %v1974_v40, 0.0  ;;  %v1245_v21 = vrot.slane %v1244_v34, 4 }
 0x835   :  { %v1214_v36 = vadd.f32 %v1475_v24, %v1213_v30  ;;  %v1238_v38 = vadd.f32 %v1476_v3, %v1237_v33  ;;  %v1269_v49 = vrot.slane %v1268_v41, 4  ;;  %v1222_v50 = vadd.f32 %v1221_v39, %v1220_v31 }
 0x836   :  { %v1262_v45 = vadd.f32 %v1477_v35, %v1261_v14  ;;  %v1246_v55 = vadd.f32 %v1245_v21, %v1244_v34  ;;  %v339_v3 = vsel %vm338_vm9, %v1812_v44, 2147483647 }
 0x837   :  { %v1215_v42 = vrot.slane %v1214_v36, 2  ;;  %v1239_v43 = vrot.slane %v1238_v38, 2  ;;  %v1270_v62 = vadd.f32 %v1269_v49, %v1268_v41  ;;  %v1223_v63 = vrot.slane %v1222_v50, 2 }
 0x838   :  { %v1263_v51 = vrot.slane %v1262_v45, 2  ;;  %v1247_v1 = vrot.slane %v1246_v55, 2  ;;  %v340_v34 = vsel %vm334_vm1, %v339_v3, 2147483647 }
 0x839   :  { %v1216_v46 = vadd.f32 %v1215_v42, %v1214_v36  ;;  %v1240_v47 = vadd.f32 %v1239_v43, %v1238_v38  ;;  %v1271_v5 = vrot.slane %v1270_v62, 2  ;;  %v1224_v6 = vadd.f32 %v1223_v63, %v1222_v50 }
 0x83a   :  { %v1264_v32 = vadd.f32 %v1263_v51, %v1262_v45  ;;  %v1248_v8 = vadd.f32 %v1247_v1, %v1246_v55  ;;  %v342_v39 = vshra.s32 %v340_v34, 16  ;;  %v341_v21 = vand.u32 65535, %v340_v34 }
 0x83b   :  { %v1217_v52 = vrot.slane %v1216_v46, 1  ;;  %v1241_v53 = vrot.slane %v1240_v47, 1  ;;  %v1272_v61 = vadd.f32 %v1271_v5, %v1270_v62  ;;  %v1225_v10 = vrot.slane %v1224_v6, 1 }
 0x83c   :  { %v1265_v0 = vrot.slane %v1264_v32, 1  ;;  %v1249_v48 = vrot.slane %v1248_v8, 1  ;;  %v344_v41 = vcvt.s32.f32 %v342_v39  ;;  %v343_v49 = vcvt.s32.f32 %v341_v21 }
 0x83d   :  { %v1218_v56 = vadd.f32 %v1217_v52, %v1216_v46  ;;  %v1242_v57 = vadd.f32 %v1241_v53, %v1240_v47  ;;  %v1273_v12 = vrot.slane %v1272_v61, 1  ;;  %v1226_v15 = vadd.f32 %v1225_v10, %v1224_v6 }
 0x83e   :  { %v1266_v4 = vadd.f32 %v1265_v0, %v1264_v32  ;;  %v1250_v16 = vadd.f32 %v1249_v48, %v1248_v8 }
 0x83f   :  { %v1228_v37 = vmax.f32 %v1218_v56, 1.0  ;;  %v1252_v2 = vmax.f32 %v1242_v57, 1.0  ;;  %vm1227_vm7 = vcmp.gt.f32.partialorder %v1218_v56, 0.0  ;;  %v1274_v23 = vadd.f32 %v1273_v12, %v1272_v61 }
 0x840   :  { %v1276_v7 = vmax.f32 %v1266_v4, 1.0  ;;  %vm1251_vm8 = vcmp.gt.f32.partialorder %v1242_v57, 0.0  ;;  %vm1275_vm10 = vcmp.gt.f32.partialorder %v1266_v4, 0.0 }
 0x841   :  { %1645 = vrcp.f32 %v1228_v37 }
 0x842   :  { %1647 = vrcp.f32 %v1252_v2 }
 0x843   :  { %1649 = vrcp.f32 %v1276_v7 }
 0x84b   :  { %v1646_v54 = vpop.eup %1645 }
 0x84c   :  { %v1648_v18 = vpop.eup %1647  ;;  %v1230_v20 = vmul.f32 %v1646_v54, %v1226_v15 }
 0x84d   :  { %v1254_v22 = vmul.f32 %v1648_v18, %v1250_v16  ;;  %v1650_v25 = vpop.eup %1649 }
 0x84e   :  { %v1233_v26 = vsel %vm1227_vm7, %v1230_v20, %v2014_v9  ;;  %v1278_v28 = vmul.f32 %v1650_v25, %v1274_v23 }
 0x84f   :  { %v1257_v27 = vsel %vm1251_vm8, %v1254_v22, %v2014_v9 }
 0x850   :  { %v1282_v29 = vsel %vm456_vm13, %v1233_v26, %v1257_v27  ;;  %v1281_v24 = vsel %vm1275_vm10, %v1278_v28, %v2014_v9 }
 0x851   :  { %v2047_v30 = vsel %vm458_vm15, %v1282_v29, %v1281_v24 }
 0x852   :  { %v1287_v31 = vrot.slane %v2047_v30, %v1818_v58  ;;  %v1295_v33 = vrot.slane %v2047_v30, %v1820_v59  ;;  %v1306_v19 = vrot.slane %v2047_v30, %v1822_v60 }
 0x854   :  { %v1288_v35 = vsub.f32 %v1974_v40, %v1287_v31  ;;  %v1296_v9 = vsub.f32 %v1974_v40, %v1295_v33  ;;  %v1307_v38 = vsub.f32 %v1974_v40, %v1306_v19 }
 0x856   :  { %v1289_v36 = vmul.f32 %v1288_v35, %v1288_v35  ;;  %v1297_v44 = vmul.f32 %v1296_v9, %v1296_v9  ;;  %v1308_v14 = vmul.f32 %v1307_v38, %v1307_v38 }
 0x858   :  { %1290 = vadd.xlane.f32.xlu0 %v1289_v36  ;;  %1298 = vadd.xlane.f32.xlu1 %v1297_v44 }
 0x85c   :  { %1309 = vadd.xlane.f32.xlu0 %v1308_v14  ;;  %345 = vmin.xlane.f32.xlu1 %v344_v41 }
 0x8e5   :  { %v1291_v42 = vpop.xlane.xlu0 %1290  ;;  %v1299_v43 = vpop.xlane.xlu1 %1298 }
 0x8e6   :  { %vm1300_vm11 = vcmp.lt.f32.partialorder %v1299_v43, %v1291_v42 }
 0x8e7   :  { %v1301_v46 = vsel %vm1300_vm11, %v1299_v43, %v1291_v42  ;;  %v1302_v50 = vsel %vm1300_vm11, 1, %v1685_v13 }
 0x8e9   :  { %v1310_v45 = vpop.xlane.xlu0 %1309  ;;  %v2059_v47 = vpop.xlane.xlu1 %345 }
 0x8ea   :  { %vm1311_vm12 = vcmp.lt.f32.partialorder %v1310_v45, %v1301_v46  ;;  %vm347_vm14 = vcmp.eq.f32.partialorder %v344_v41, %v2059_v47 }
 0x8eb   :  { %v1312_v51 = vsel %vm1311_vm12, 2, %v1302_v50  ;;  %v348_v52 = vsel %vm347_vm14, %v343_v49, inf }
 0x8ec   :  { %vm1313_vm0 = vcmp.eq.s32.totalorder %v1312_v51, 0  ;;  %vm1337_vm1 = vcmp.eq.s32.totalorder %v1312_v51, 1  ;;  %vm1361_vm2 = vcmp.eq.s32.totalorder %v1312_v51, 2  ;;  %349 = vmin.xlane.f32.xlu0 %v348_v52 }
 0x8ed   :  { %v1478_v53 = vsel %vm1313_vm0, 1.0, %v1684_v11  ;;  %v1479_v55 = vsel %vm1337_vm1, 1.0, %v1684_v11  ;;  %v1323_v56 = vsel %vm1313_vm0, %v1974_v40, 0.0  ;;  %v1347_v62 = vsel %vm1337_vm1, %v1974_v40, 0.0 }
 0x8ee   :  { %v1316_v32 = vrot.slane %v1478_v53, 4  ;;  %v1340_v57 = vrot.slane %v1479_v55, 4  ;;  %v1480_v63 = vsel %vm1361_vm2, 1.0, %v1684_v11  ;;  %v1324_v1 = vrot.slane %v1323_v56, 4 }
 0x8ef   :  { %v1364_v2 = vrot.slane %v1480_v63, 4  ;;  %v1371_v4 = vsel %vm1361_vm2, %v1974_v40, 0.0  ;;  %v1348_v7 = vrot.slane %v1347_v62, 4 }
 0x8f0   :  { %v1317_v0 = vadd.f32 %v1478_v53, %v1316_v32  ;;  %v1341_v37 = vadd.f32 %v1479_v55, %v1340_v57  ;;  %v1372_v48 = vrot.slane %v1371_v4, 4  ;;  %v1325_v12 = vadd.f32 %v1324_v1, %v1323_v56 }
 0x8f1   :  { %v1365_v8 = vadd.f32 %v1480_v63, %v1364_v2  ;;  %v1349_v17 = vadd.f32 %v1348_v7, %v1347_v62 }
 0x8f2   :  { %v1318_v5 = vrot.slane %v1317_v0, 2  ;;  %v1342_v6 = vrot.slane %v1341_v37, 2  ;;  %v1373_v22 = vadd.f32 %v1372_v48, %v1371_v4  ;;  %v1326_v23 = vrot.slane %v1325_v12, 2 }
 0x8f3   :  { %v1366_v15 = vrot.slane %v1365_v8, 2  ;;  %v1350_v27 = vrot.slane %v1349_v17, 2 }
 0x8f4   :  { %v1319_v61 = vadd.f32 %v1318_v5, %v1317_v0  ;;  %v1343_v10 = vadd.f32 %v1342_v6, %v1341_v37  ;;  %v1374_v24 = vrot.slane %v1373_v22, 2  ;;  %v1327_v3 = vadd.f32 %v1326_v23, %v1325_v12 }
 0x8f5   :  { %v1367_v18 = vadd.f32 %v1366_v15, %v1365_v8  ;;  %v1351_v33 = vadd.f32 %v1350_v27, %v1349_v17 }
 0x8f6   :  { %v1320_v54 = vrot.slane %v1319_v61, 1  ;;  %v1344_v16 = vrot.slane %v1343_v10, 1  ;;  %v1375_v19 = vadd.f32 %v1374_v24, %v1373_v22  ;;  %v1328_v34 = vrot.slane %v1327_v3, 1 }
 0x8f7   :  { %v1368_v25 = vrot.slane %v1367_v18, 1  ;;  %v1352_v35 = vrot.slane %v1351_v33, 1 }
 0x8f8   :  { %v1321_v11 = vadd.f32 %v1320_v54, %v1319_v61  ;;  %v1345_v20 = vadd.f32 %v1344_v16, %v1343_v10  ;;  %v1376_v9 = vrot.slane %v1375_v19, 1  ;;  %v1329_v36 = vadd.f32 %v1328_v34, %v1327_v3 }
 0x8f9   :  { %v1369_v29 = vadd.f32 %v1368_v25, %v1367_v18  ;;  %v1353_v38 = vadd.f32 %v1352_v35, %v1351_v33 }
 0x8fa   :  { %v1331_v26 = vmax.f32 %v1321_v11, 1.0  ;;  %v1355_v28 = vmax.f32 %v1345_v20, 1.0  ;;  %vm1330_vm3 = vcmp.gt.f32.partialorder %v1321_v11, 0.0  ;;  %v1377_v42 = vadd.f32 %v1376_v9, %v1375_v19 }
 0x8fb   :  { %v1379_v31 = vmax.f32 %v1369_v29, 1.0  ;;  %vm1354_vm4 = vcmp.gt.f32.partialorder %v1345_v20, 0.0  ;;  %vm1378_vm5 = vcmp.gt.f32.partialorder %v1369_v29, 0.0 }
 0x8fc   :  { %1651 = vrcp.f32 %v1331_v26 }
 0x8fd   :  { %1653 = vrcp.f32 %v1355_v28 }
 0x8fe   :  { %1655 = vrcp.f32 %v1379_v31 }
 0x906   :  { %v1652_v44 = vpop.eup %1651 }
 0x907   :  { %v1654_v39 = vpop.eup %1653  ;;  %v1333_v14 = vmul.f32 %v1652_v44, %v1329_v36 }
 0x908   :  { %v1357_v41 = vmul.f32 %v1654_v39, %v1353_v38  ;;  %v1656_v43 = vpop.eup %1655 }
 0x909   :  { %v1336_v21 = vsel %vm1330_vm3, %v1333_v14, %v2047_v30  ;;  %v1381_v45 = vmul.f32 %v1656_v43, %v1377_v42 }
 0x90a   :  { %v1360_v46 = vsel %vm1354_vm4, %v1357_v41, %v2047_v30 }
 0x90b   :  { %v1385_v49 = vsel %vm456_vm13, %v1336_v21, %v1360_v46  ;;  %v1384_v50 = vsel %vm1378_vm5, %v1381_v45, %v2047_v30 }
 0x90c   :  { %v1386_v51 = vsel %vm458_vm15, %v1385_v49, %v1384_v50 }
 0x90d   :  { %v1390_v52 = vrot.slane %v1386_v51, %v1818_v58  ;;  %v1398_v53 = vrot.slane %v1386_v51, %v1820_v59  ;;  %v1409_v55 = vrot.slane %v1386_v51, %v1822_v60 }
 0x90f   :  { %v1391_v32 = vsub.f32 %v1974_v40, %v1390_v52  ;;  %v1399_v56 = vsub.f32 %v1974_v40, %v1398_v53  ;;  %v1410_v63 = vsub.f32 %v1974_v40, %v1409_v55 }
 0x911   :  { %v1392_v57 = vmul.f32 %v1391_v32, %v1391_v32  ;;  %v1400_v62 = vmul.f32 %v1399_v56, %v1399_v56  ;;  %v1411_v0 = vmul.f32 %v1410_v63, %v1410_v63 }
 0x913   :  { %1393 = vadd.xlane.f32.xlu1 %v1392_v57  ;;  %1401 = vadd.xlane.f32.xlu0 %v1400_v62 }
 0x917   :  { %1412 = vadd.xlane.f32.xlu1 %v1411_v0 }
 0x918   :  { %1669 = shalt.err (!%p1666_p4)
}
 0x919   :  { %s1670_s27 = scalar_lea.hbm %s2106_s6, 128 }
 0x91a   :  { %p1671_p5 = scmp.ne.s32.totalorder %s2106_s6, %s1670_s27  ;;  %p1674_p6 = scmp.lt.u32.totalorder %s1670_s27, %s2106_s6 }
 0x91c   :  { %p1676_p7 = pnand %p1674_p6, %p1671_p5 }
 0x91e   :  { %1679 = shalt.err (!%p1676_p7)
}
 0x91f   :  { %1429 = dma.vmem_to_hbm [thread:$0]  %s1427_s23, 128, %s2106_s6, [#allocation3]   ;;  %v352_v58 = vcvt.f32.s32 %v2059_v47  ;;  %vm1417_vm13 = vcmask 7168  }
 0x921   :  { %v353_v60 = vshll.u32 %v352_v58, 16 }
 0x979   :  { %v350_v59 = vpop.xlane.xlu0 %349 }
 0x97a   :  { %v351_v40 = vcvt.f32.s32 %v350_v59 }
 0x97c   :  { %v354_v30 = vadd.s32 %v353_v60, %v351_v40 }
 0x97e   :  { %1419 = vst.msk [vmem:[%s2108_s8] sm:$0xff] %vm1417_vm13, %v354_v30 }
 0x9a0   :  { %v1402_v37 = vpop.xlane.xlu0 %1401  ;;  %v1394_v1 = vpop.xlane.xlu1 %1393 }
 0x9a1   :  { %vm1403_vm15 = vcmp.lt.f32.partialorder %v1402_v37, %v1394_v1 }
 0x9a2   :  { %v1404_v2 = vsel %vm1403_vm15, %v1402_v37, %v1394_v1  ;;  %v1405_v5 = vsel %vm1403_vm15, 1, %v1685_v13 }
 0x9a4   :  { %v1413_v4 = vpop.xlane.xlu1 %1412 }
 0x9a5   :  { %vm1414_vm6 = vcmp.lt.f32.partialorder %v1413_v4, %v1404_v2 }
 0x9a6   :  { %v1415_v6 = vsel %vm1414_vm6, 2, %v1405_v5 }
 0x9a7   :  { %1418 = vst.msk [vmem:[%s2107_s7] sm:$0xff] %vm1417_vm13, %v1415_v6 }
 0x9a8   :  { %1680 = dma.done.wait [#allocation3], 128  }
 0x9a9   :  { %1681 = vsyncadd [#allocation3], 4294967168 }
 0x9aa   :  { %1441 = vsyncpa [#allocation3], 1 }

</bundles_post_ra>
